<compile_context>
chip_gen: v7x
topology: tpu7x:2x2x1
jax: 0.10.0
libtpu: 0.0.40
codegen_flags: <defaults>
</compile_context>

<pallas_src>
import jax
import jax.numpy as jnp
from jax import lax
from jax.experimental import pallas as pl
from jax.experimental.pallas import tpu as pltpu

IN_FEATURES = 12
HIDDEN = 256
BN_EPS = 1e-5
PACK_ROWS = 8          # packed param slab: one (8, 128)-aligned f32 vreg tile
TILE_B = 256           # rows per BN mini-batch / grid step


def _generator_kernel(x_ref, w1_ref, w2_ref, w3_ref, p_ref, o_ref):
    # Packed param slab rows (all f32):
    #   0: g1   1: be1   2: g2   3: be2   4: b3   5: w4 (row)   6: [b4, 0...]
    g1 = p_ref[0:1, :]
    be1 = p_ref[1:2, :]
    g2 = p_ref[2:3, :]
    be2 = p_ref[3:4, :]
    b3 = p_ref[4:5, :]
    w4 = p_ref[5:6, :]
    b4 = p_ref[6:7, 0:1]                                     # [1, 1]

    # ---- Linear(12 -> 256) [bf16 operands, bias cancelled by BN] ----------
    x = x_ref[...].astype(jnp.bfloat16)
    h = jnp.dot(x, w1_ref[...], preferred_element_type=jnp.float32)
    # training-mode BN over this tile's rows, fused scale/shift, then ReLU
    hc = h - jnp.mean(h, axis=0, keepdims=True)
    var = jnp.mean(hc * hc, axis=0, keepdims=True)            # biased variance
    h = jnp.maximum(hc * (g1 * lax.rsqrt(var + BN_EPS)) + be1, 0.0)

    # ---- Linear(256 -> 256) [bf16 weights, bias cancelled by BN] ----------
    h = jnp.dot(h.astype(jnp.bfloat16), w2_ref[...],
                preferred_element_type=jnp.float32)
    hc = h - jnp.mean(h, axis=0, keepdims=True)
    var = jnp.mean(hc * hc, axis=0, keepdims=True)
    h = jnp.maximum(hc * (g2 * lax.rsqrt(var + BN_EPS)) + be2, 0.0)

    # ---- Linear(256 -> 256) [bf16 weights] + ReLU --------------------------
    h = jnp.dot(h.astype(jnp.bfloat16), w3_ref[...],
                preferred_element_type=jnp.float32) + b3
    h = jnp.maximum(h, 0.0)

    # ---- Linear(256 -> 1) as VPU mul + lane reduce --------------------------
    out = jnp.sum(h * w4, axis=1, keepdims=True) + b4
    o_ref[...] = out.astype(o_ref.dtype)


def generator_forward(x, params, *, tile_b=TILE_B):
    """x: [B, 12] f32, B a multiple of tile_b.  Each tile_b-row slab is
    normalized as its own BatchNorm mini-batch.  Returns [B, 1] f32."""
    B, F = x.shape
    assert F == IN_FEATURES
    assert B % tile_b == 0, "batch must be a multiple of the BN tile"
    n_tiles = B // tile_b

    return pl.pallas_call(
        _generator_kernel,
        out_shape=jax.ShapeDtypeStruct((B, 1), jnp.float32),
        grid=(n_tiles,),
        in_specs=[
            # x streams per tile
            pl.BlockSpec((tile_b, IN_FEATURES), lambda i: (i, 0)),
            # weights + packed params: constant index map -> VMEM-resident,
            # DMA'd once for the whole call
            pl.BlockSpec((IN_FEATURES, HIDDEN), lambda i: (0, 0)),
            pl.BlockSpec((HIDDEN, HIDDEN), lambda i: (0, 0)),
            pl.BlockSpec((HIDDEN, HIDDEN), lambda i: (0, 0)),
            pl.BlockSpec((PACK_ROWS, HIDDEN), lambda i: (0, 0)),
        ],
        out_specs=pl.BlockSpec((tile_b, 1), lambda i: (i, 0)),
        compiler_params=pltpu.CompilerParams(
            # Independent batch tiles: shard across the 2 TCs on v7x.
            dimension_semantics=("parallel",)),
    )(x, params["w1"], params["w2"], params["w3"], params["pvec"])


def init_params(key):
    """Synthetic init mimicking PyTorch Linear default (+-1/sqrt(fan_in));
    BN gamma=1, beta=0.  w1/w2/w3 stored bf16 (MXU operands); the seven small
    row/scalar params are packed into a single [8, 256] f32 slab."""
    ks = jax.random.split(key, 8)

    def lin(kw, kb, fan_in, fan_out):
        bound = 1.0 / jnp.sqrt(jnp.float32(fan_in))
        w = jax.random.uniform(kw, (fan_in, fan_out), jnp.float32, -bound, bound)
        b = jax.random.uniform(kb, (1, fan_out), jnp.float32, -bound, bound)
        return w, b

    w1, _b1 = lin(ks[0], ks[1], IN_FEATURES, HIDDEN)   # bias dead under BN
    w2, _b2 = lin(ks[2], ks[3], HIDDEN, HIDDEN)        # bias dead under BN
    w3, b3 = lin(ks[4], ks[5], HIDDEN, HIDDEN)
    w4, b4 = lin(ks[6], ks[7], HIDDEN, 1)

    pvec = jnp.zeros((PACK_ROWS, HIDDEN), jnp.float32)
    pvec = pvec.at[0, :].set(1.0)                      # g1
    # row 1: be1 = 0
    pvec = pvec.at[2, :].set(1.0)                      # g2
    # row 3: be2 = 0
    pvec = pvec.at[4, :].set(b3.reshape(HIDDEN))       # b3
    pvec = pvec.at[5, :].set(w4.reshape(HIDDEN))       # w4 as a lane row
    pvec = pvec.at[6, 0].set(b4[0, 0])                 # b4 scalar
    # row 7: padding (keeps the slab one full (8,128) tile)

    return dict(
        w1=w1.astype(jnp.bfloat16),
        w2=w2.astype(jnp.bfloat16),
        w3=w3.astype(jnp.bfloat16),
        pvec=pvec,
    )


def _reference_forward(x, p, *, tile_b=TILE_B):
    """Pure-JAX reference with identical math/dtypes (per-tile BN stats)."""
    g1, be1 = p["pvec"][0:1, :], p["pvec"][1:2, :]
    g2, be2 = p["pvec"][2:3, :], p["pvec"][3:4, :]
    b3 = p["pvec"][4:5, :]
    w4 = p["pvec"][5:6, :]
    b4 = p["pvec"][6:7, 0:1]

    outs = []
    for i in range(x.shape[0] // tile_b):
        xs = x[i * tile_b:(i + 1) * tile_b].astype(jnp.bfloat16)

        h = jnp.dot(xs, p["w1"], preferred_element_type=jnp.float32)
        hc = h - h.mean(0, keepdims=True)
        var = (hc * hc).mean(0, keepdims=True)
        h = jnp.maximum(hc * (g1 * lax.rsqrt(var + BN_EPS)) + be1, 0.0)

        h = jnp.dot(h.astype(jnp.bfloat16), p["w2"],
                    preferred_element_type=jnp.float32)
        hc = h - h.mean(0, keepdims=True)
        var = (hc * hc).mean(0, keepdims=True)
        h = jnp.maximum(hc * (g2 * lax.rsqrt(var + BN_EPS)) + be2, 0.0)

        h = jnp.dot(h.astype(jnp.bfloat16), p["w3"],
                    preferred_element_type=jnp.float32) + b3
        h = jnp.maximum(h, 0.0)

        outs.append(jnp.sum(h * w4, axis=1, keepdims=True) + b4)
    return jnp.concatenate(outs, axis=0)


if __name__ == "__main__":
    key = jax.random.PRNGKey(0)
    k_x, k_p = jax.random.split(key)

    B = 512  # 2 grid steps of 256-row BN mini-batches; input is only 24 KiB
    x = jax.random.normal(k_x, (B, IN_FEATURES), jnp.float32)
    params = init_params(k_p)

    out = generator_forward(x, params)
    out = jax.block_until_ready(out)

    ref = _reference_forward(x, params)
    assert out.shape == (B, 1)
    assert out.dtype == jnp.float32
    # bf16 matmul operands (review-requested) -> slightly loose tolerance.
    assert jnp.allclose(out, ref, atol=2e-3, rtol=2e-3)

    print("KERNEL_OK")
</pallas_src>

<mosaic_0001>
module attributes {stable_mosaic.version = 11 : i64} {
  func.func @_generator_kernel(%arg0: i32, %arg1: memref<256x12xf32, #tpu.memory_space<vmem>>, %arg2: memref<12x256xbf16, #tpu.memory_space<vmem>>, %arg3: memref<256x256xbf16, #tpu.memory_space<vmem>>, %arg4: memref<256x256xbf16, #tpu.memory_space<vmem>>, %arg5: memref<8x256xf32, #tpu.memory_space<vmem>>, %arg6: memref<256x1xf32, #tpu.memory_space<vmem>>) attributes {dimension_semantics = [#tpu.dimension_semantics<parallel>], iteration_bounds = array<i64: 2>, scalar_prefetch = 0 : i64, scratch_operands = 0 : i64, tpu.core_type = #tpu.core_type<tc>, window_params = [{transform_indices = @transform_0, window_bounds = array<i64: 256, 12>}, {pipeline_mode = #tpu.pipeline_mode<synchronous>, transform_indices = @transform_1, window_bounds = array<i64: 12, 256>}, {pipeline_mode = #tpu.pipeline_mode<synchronous>, transform_indices = @transform_2, window_bounds = array<i64: 256, 256>}, {pipeline_mode = #tpu.pipeline_mode<synchronous>, transform_indices = @transform_3, window_bounds = array<i64: 256, 256>}, {pipeline_mode = #tpu.pipeline_mode<synchronous>, transform_indices = @transform_4, window_bounds = array<i64: 8, 256>}, {transform_indices = @transform_5, window_bounds = array<i64: 256, 1>}]} {
    %c0 = arith.constant 0 : index
    %c0_0 = arith.constant 0 : index
    %0 = vector.load %arg5[%c0, %c0_0] : memref<8x256xf32, #tpu.memory_space<vmem>>, vector<1x256xf32>
    %c1 = arith.constant 1 : index
    %c0_1 = arith.constant 0 : index
    %1 = vector.load %arg5[%c1, %c0_1] : memref<8x256xf32, #tpu.memory_space<vmem>>, vector<1x256xf32>
    %c2 = arith.constant 2 : index
    %c0_2 = arith.constant 0 : index
    %2 = vector.load %arg5[%c2, %c0_2] : memref<8x256xf32, #tpu.memory_space<vmem>>, vector<1x256xf32>
    %c3 = arith.constant 3 : index
    %c0_3 = arith.constant 0 : index
    %3 = vector.load %arg5[%c3, %c0_3] : memref<8x256xf32, #tpu.memory_space<vmem>>, vector<1x256xf32>
    %c4 = arith.constant 4 : index
    %c0_4 = arith.constant 0 : index
    %4 = vector.load %arg5[%c4, %c0_4] : memref<8x256xf32, #tpu.memory_space<vmem>>, vector<1x256xf32>
    %c5 = arith.constant 5 : index
    %c0_5 = arith.constant 0 : index
    %5 = vector.load %arg5[%c5, %c0_5] : memref<8x256xf32, #tpu.memory_space<vmem>>, vector<1x256xf32>
    %c6 = arith.constant 6 : index
    %c0_6 = arith.constant 0 : index
    %6 = vector.load %arg5[%c6, %c0_6] : memref<8x256xf32, #tpu.memory_space<vmem>>, vector<1x1xf32>
    %c0_7 = arith.constant 0 : index
    %c0_8 = arith.constant 0 : index
    %7 = vector.load %arg1[%c0_7, %c0_8] : memref<256x12xf32, #tpu.memory_space<vmem>>, vector<256x12xf32>
    %8 = arith.truncf %7 : vector<256x12xf32> to vector<256x12xbf16>
    %c0_9 = arith.constant 0 : index
    %c0_10 = arith.constant 0 : index
    %9 = vector.load %arg2[%c0_9, %c0_10] : memref<12x256xbf16, #tpu.memory_space<vmem>>, vector<12x256xbf16>
    %cst = arith.constant dense<0.000000e+00> : vector<256x256xf32>
    %10 = tpu.matmul %8, %9, %cst {dimension_numbers = #tpu.dot_dimension_numbers<[1], [0], [0], [1], [0, 0, 1, 1], [], []>} : vector<256x12xbf16>, vector<12x256xbf16>, vector<256x256xf32> -> vector<256x256xf32>
    %cst_11 = arith.constant dense<0.000000e+00> : vector<256xf32>
    %11 = vector.multi_reduction <add>, %10, %cst_11 [0] : vector<256x256xf32> to vector<256xf32>
    %12 = vector.shape_cast %11 : vector<256xf32> to vector<1x256xf32>
    %cst_12 = arith.constant 2.560000e+02 : f32
    %13 = vector.broadcast %cst_12 : f32 to vector<1x256xf32>
    %14 = arith.divf %12, %13 : vector<1x256xf32>
    %15 = vector.broadcast %14 : vector<1x256xf32> to vector<256x256xf32>
    %16 = arith.subf %10, %15 : vector<256x256xf32>
    %17 = arith.mulf %16, %16 : vector<256x256xf32>
    %cst_13 = arith.constant dense<0.000000e+00> : vector<256xf32>
    %18 = vector.multi_reduction <add>, %17, %cst_13 [0] : vector<256x256xf32> to vector<256xf32>
    %19 = vector.shape_cast %18 : vector<256xf32> to vector<1x256xf32>
    %cst_14 = arith.constant 2.560000e+02 : f32
    %20 = vector.broadcast %cst_14 : f32 to vector<1x256xf32>
    %21 = arith.divf %19, %20 : vector<1x256xf32>
    %cst_15 = arith.constant 9.99999974E-6 : f32
    %22 = vector.broadcast %cst_15 : f32 to vector<1x256xf32>
    %23 = arith.addf %21, %22 : vector<1x256xf32>
    %24 = math.rsqrt %23 : vector<1x256xf32>
    %25 = arith.mulf %0, %24 : vector<1x256xf32>
    %26 = vector.broadcast %25 : vector<1x256xf32> to vector<256x256xf32>
    %27 = arith.mulf %16, %26 : vector<256x256xf32>
    %28 = vector.broadcast %1 : vector<1x256xf32> to vector<256x256xf32>
    %29 = arith.addf %27, %28 : vector<256x256xf32>
    %cst_16 = arith.constant 0.000000e+00 : f32
    %30 = vector.broadcast %cst_16 : f32 to vector<256x256xf32>
    %31 = arith.maximumf %29, %30 : vector<256x256xf32>
    %32 = arith.truncf %31 : vector<256x256xf32> to vector<256x256xbf16>
    %c0_17 = arith.constant 0 : index
    %c0_18 = arith.constant 0 : index
    %33 = vector.load %arg3[%c0_17, %c0_18] : memref<256x256xbf16, #tpu.memory_space<vmem>>, vector<256x256xbf16>
    %cst_19 = arith.constant dense<0.000000e+00> : vector<256x256xf32>
    %34 = tpu.matmul %32, %33, %cst_19 {dimension_numbers = #tpu.dot_dimension_numbers<[1], [0], [0], [1], [0, 0, 1, 1], [], []>} : vector<256x256xbf16>, vector<256x256xbf16>, vector<256x256xf32> -> vector<256x256xf32>
    %cst_20 = arith.constant dense<0.000000e+00> : vector<256xf32>
    %35 = vector.multi_reduction <add>, %34, %cst_20 [0] : vector<256x256xf32> to vector<256xf32>
    %36 = vector.shape_cast %35 : vector<256xf32> to vector<1x256xf32>
    %cst_21 = arith.constant 2.560000e+02 : f32
    %37 = vector.broadcast %cst_21 : f32 to vector<1x256xf32>
    %38 = arith.divf %36, %37 : vector<1x256xf32>
    %39 = vector.broadcast %38 : vector<1x256xf32> to vector<256x256xf32>
    %40 = arith.subf %34, %39 : vector<256x256xf32>
    %41 = arith.mulf %40, %40 : vector<256x256xf32>
    %cst_22 = arith.constant dense<0.000000e+00> : vector<256xf32>
    %42 = vector.multi_reduction <add>, %41, %cst_22 [0] : vector<256x256xf32> to vector<256xf32>
    %43 = vector.shape_cast %42 : vector<256xf32> to vector<1x256xf32>
    %cst_23 = arith.constant 2.560000e+02 : f32
    %44 = vector.broadcast %cst_23 : f32 to vector<1x256xf32>
    %45 = arith.divf %43, %44 : vector<1x256xf32>
    %cst_24 = arith.constant 9.99999974E-6 : f32
    %46 = vector.broadcast %cst_24 : f32 to vector<1x256xf32>
    %47 = arith.addf %45, %46 : vector<1x256xf32>
    %48 = math.rsqrt %47 : vector<1x256xf32>
    %49 = arith.mulf %2, %48 : vector<1x256xf32>
    %50 = vector.broadcast %49 : vector<1x256xf32> to vector<256x256xf32>
    %51 = arith.mulf %40, %50 : vector<256x256xf32>
    %52 = vector.broadcast %3 : vector<1x256xf32> to vector<256x256xf32>
    %53 = arith.addf %51, %52 : vector<256x256xf32>
    %cst_25 = arith.constant 0.000000e+00 : f32
    %54 = vector.broadcast %cst_25 : f32 to vector<256x256xf32>
    %55 = arith.maximumf %53, %54 : vector<256x256xf32>
    %56 = arith.truncf %55 : vector<256x256xf32> to vector<256x256xbf16>
    %c0_26 = arith.constant 0 : index
    %c0_27 = arith.constant 0 : index
    %57 = vector.load %arg4[%c0_26, %c0_27] : memref<256x256xbf16, #tpu.memory_space<vmem>>, vector<256x256xbf16>
    %cst_28 = arith.constant dense<0.000000e+00> : vector<256x256xf32>
    %58 = tpu.matmul %56, %57, %cst_28 {dimension_numbers = #tpu.dot_dimension_numbers<[1], [0], [0], [1], [0, 0, 1, 1], [], []>} : vector<256x256xbf16>, vector<256x256xbf16>, vector<256x256xf32> -> vector<256x256xf32>
    %59 = vector.broadcast %4 : vector<1x256xf32> to vector<256x256xf32>
    %60 = arith.addf %58, %59 : vector<256x256xf32>
    %cst_29 = arith.constant 0.000000e+00 : f32
    %61 = vector.broadcast %cst_29 : f32 to vector<256x256xf32>
    %62 = arith.maximumf %60, %61 : vector<256x256xf32>
    %63 = vector.broadcast %5 : vector<1x256xf32> to vector<256x256xf32>
    %64 = arith.mulf %62, %63 : vector<256x256xf32>
    %cst_30 = arith.constant dense<0.000000e+00> : vector<256xf32>
    %65 = vector.multi_reduction <add>, %64, %cst_30 [1] : vector<256x256xf32> to vector<256xf32>
    %66 = vector.shape_cast %65 : vector<256xf32> to vector<256x1xf32>
    %67 = vector.broadcast %6 : vector<1x1xf32> to vector<256x1xf32>
    %68 = arith.addf %66, %67 : vector<256x1xf32>
    %c0_31 = arith.constant 0 : index
    %c0_32 = arith.constant 0 : index
    %69 = vector.load %arg6[%c0_31, %c0_32] : memref<256x1xf32, #tpu.memory_space<vmem>>, vector<256x1xf32>
    tpu.vector_store %arg6[%c0_31, %c0_32], %68 {strides = array<i32>} : memref<256x1xf32, #tpu.memory_space<vmem>>, vector<256x1xf32>,
    return
  }
  func.func @transform_0(%arg0: i32) -> (i32, i32) {
    %c0_i32 = arith.constant 0 : i32
    %c0_i32_0 = arith.constant 0 : i32
    return %arg0, %c0_i32 : i32, i32
  }
  func.func @transform_1(%arg0: i32) -> (i32, i32) {
    %c0_i32 = arith.constant 0 : i32
    %c0_i32_0 = arith.constant 0 : i32
    %c0_i32_1 = arith.constant 0 : i32
    return %c0_i32, %c0_i32_0 : i32, i32
  }
  func.func @transform_2(%arg0: i32) -> (i32, i32) {
    %c0_i32 = arith.constant 0 : i32
    %c0_i32_0 = arith.constant 0 : i32
    %c0_i32_1 = arith.constant 0 : i32
    return %c0_i32, %c0_i32_0 : i32, i32
  }
  func.func @transform_3(%arg0: i32) -> (i32, i32) {
    %c0_i32 = arith.constant 0 : i32
    %c0_i32_0 = arith.constant 0 : i32
    %c0_i32_1 = arith.constant 0 : i32
    return %c0_i32, %c0_i32_0 : i32, i32
  }
  func.func @transform_4(%arg0: i32) -> (i32, i32) {
    %c0_i32 = arith.constant 0 : i32
    %c0_i32_0 = arith.constant 0 : i32
    %c0_i32_1 = arith.constant 0 : i32
    return %c0_i32, %c0_i32_0 : i32, i32
  }
  func.func @transform_5(%arg0: i32) -> (i32, i32) {
    %c0_i32 = arith.constant 0 : i32
    %c0_i32_0 = arith.constant 0 : i32
    return %arg0, %c0_i32 : i32, i32
  }
}

</mosaic_0001>

<bundles_post_ra>
// kernel: tpu_custom_call.1
= control target key start
LH: loop header
LB: loop body
LE: loop exit
PB: predicated region body
PF: predicated region fallthrough
CT: control target
= control target key end

     0   :  { %s3042_s18 = smov 0   ;;  %s5369_s0 = inlined_call_operand.vmem [shape: f32[512,12], index: 0, kind: input, shape index: {}]   ;;  %s5370_s1 = inlined_call_operand.vmem [shape: bf16[12,256], index: 1, kind: input, shape index: {}]   ;;  %s5371_s2 = inlined_call_operand.vmem [shape: bf16[256,256], index: 2, kind: input, shape index: {}]   ;;  %s5372_s3 = inlined_call_operand.vmem [shape: bf16[256,256], index: 3, kind: input, shape index: {}]   ;;  %s5373_s4 = inlined_call_operand.vmem [shape: f32[8,256], index: 4, kind: input, shape index: {}]   ;;  %s5374_s5 = inlined_call_operand.vmem [shape: f32[512,1], index: 5, kind: output, shape index: {}]  }
   0x1 LB: > { %s2784_s19 = sadd.s32 4294967295, %s3008_s18   ;;  %p2788_p0 = scmp.ge.s32.totalorder %s3008_s18, 1  ;;  %s3008_s18 = sphi %s3042_s18, %s15_s18  }
   0x2   : > { %p188_p1 = scmp.lt.s32.totalorder %s3008_s18, 3 }
   0x4   : > { %p189_p2 = pnand %p2788_p0, %p188_p1 }
   0x6   : > { %192 = sbr.rel (%p189_p2) target bundleno = 1486 (0x5ce), region = 40 }
   0xd   : > { %v2895_v0 = vld [vmem:[%s5370_s1 + $0x4] ss:$8 sps:$4 sm:$0x3f]   ;;  %vm348_vm0 = vcmask 1045504   ;;  %s2789_s24 = sshll.u32 %s2784_s19, 5  ;;  %v3010_v2 = vmov 0  }
   0xe   : > { %v2897_v1 = vld [vmem:[%s5370_s1] ss:$8 sps:$4 sm:$0x3f]   ;;  %2800 = vmatprep.subr.msk.bf16.mxu0 %vm348_vm0, %v2895_v0  ;;  %387 = vmatprep.mubr.bf16.mxu0 %v3010_v2  ;;  %p217_p3 = scmp.lt.s32.totalorder %s2789_s24, 63  ;;  %vm299_vm1 = vcmask 97280   ;;  %vm2695_vm2 = vcmask 7168  }
   0xf   : > { %v350_v3 = vsel %vm348_vm0, %v2897_v1, 0  ;;  %2883 = vmatprep.subr.msk.bf16.mxu1 %vm348_vm0, %v2895_v0  ;;  %467 = vmatprep.mubr.bf16.mxu1 %v3010_v2 }
  0x10   : > { %356 = vmatpush1.bf16.msra.mxu0 %v350_v3  ;;  %s5644_s24 = smov (!%p217_p3, %s2789_s24), 63  ;;  %2884 = vmatpush1.bf16.msra.mxu1 %v350_v3 }
  0x11   : > { %s2790_s25 = sshll.u32 %s5644_s24, 3 }
  0x12   : > { %s3066_s28 = scalar_lea.vmem %s5369_s0, %s2790_s25  ;;  %s5268_s16 = scalar_lea.vmem %s5374_s5, %s2790_s25 }
  0x13   : > { %v241_v4 = vld [vmem:[%s3066_s28] sm:$0xff]  ;;  %v242_v5 = vld [vmem:[%s3066_s28 + $0x8] sm:$0xff]  ;;  %v243_v9 = vld [vmem:[%s3066_s28 + $0x10] sm:$0xff] }
  0x14   : > { %v273_v6 = vpack.c.bf16 %v242_v5, %v241_v4  ;;  %v257_v7 = vld [vmem:[%s3066_s28 + $0x80] sm:$0xff]  ;;  %v258_v8 = vld [vmem:[%s3066_s28 + $0x88] sm:$0xff]  ;;  %v244_v10 = vld [vmem:[%s3066_s28 + $0x18] sm:$0xff] }
  0x15   : > { %v281_v11 = vpack.c.bf16 %v258_v8, %v257_v7  ;;  %v274_v12 = vpack.c.bf16 %v244_v10, %v243_v9  ;;  %v259_v13 = vld [vmem:[%s3066_s28 + $0x90] sm:$0xff]  ;;  %v260_v14 = vld [vmem:[%s3066_s28 + $0x98] sm:$0xff]  ;;  %v245_v15 = vld [vmem:[%s3066_s28 + $0x20] sm:$0xff] }
  0x16   : > { %2801 = vmatmul.mubr.msk.bf16.vlgmr.msra.gmra.mrb[0].mxu0 %vm299_vm1, %v273_v6  ;;  %v246_v16 = vld [vmem:[%s3066_s28 + $0x28] sm:$0xff]  ;;  %v282_v17 = vpack.c.bf16 %v260_v14, %v259_v13  ;;  %v261_v18 = vld [vmem:[%s3066_s28 + $0xa0] sm:$0xff]  ;;  %v247_v21 = vld [vmem:[%s3066_s28 + $0x30] sm:$0xff] }
  0x17   : > { %397 = vmatprep.mubr.bf16.mxu0 %v3010_v2  ;;  %2809 = vmatmul.mubr.msk.bf16.vlgmr.msra.gmra.mrb[0].mxu1 %vm299_vm1, %v281_v11  ;;  %v262_v19 = vld [vmem:[%s3066_s28 + $0xa8] sm:$0xff]  ;;  %v275_v20 = vpack.c.bf16 %v246_v16, %v245_v15  ;;  %v248_v22 = vld [vmem:[%s3066_s28 + $0x38] sm:$0xff]  ;;  %v263_v24 = vld [vmem:[%s3066_s28 + $0xb0] sm:$0xff] }
  0x18   : > { %477 = vmatprep.mubr.bf16.mxu1 %v3010_v2  ;;  %v283_v23 = vpack.c.bf16 %v262_v19, %v261_v18  ;;  %v264_v25 = vld [vmem:[%s3066_s28 + $0xb8] sm:$0xff]  ;;  %v276_v26 = vpack.c.bf16 %v248_v22, %v247_v21  ;;  %v249_v28 = vld [vmem:[%s3066_s28 + $0x40] sm:$0xff]  ;;  %v250_v29 = vld [vmem:[%s3066_s28 + $0x48] sm:$0xff] }
  0x19   : > { %v284_v27 = vpack.c.bf16 %v264_v25, %v263_v24  ;;  %v277_v30 = vpack.c.bf16 %v250_v29, %v249_v28  ;;  %v265_v31 = vld [vmem:[%s3066_s28 + $0xc0] sm:$0xff]  ;;  %v266_v32 = vld [vmem:[%s3066_s28 + $0xc8] sm:$0xff]  ;;  %v251_v34 = vld [vmem:[%s3066_s28 + $0x50] sm:$0xff] }
  0x1a   : > { %v285_v33 = vpack.c.bf16 %v266_v32, %v265_v31  ;;  %v252_v35 = vld [vmem:[%s3066_s28 + $0x58] sm:$0xff]  ;;  %v267_v37 = vld [vmem:[%s3066_s28 + $0xd0] sm:$0xff]  ;;  %v253_v40 = vld [vmem:[%s3066_s28 + $0x60] sm:$0xff] }
  0x1b   : > { %v278_v36 = vpack.c.bf16 %v252_v35, %v251_v34  ;;  %v268_v38 = vld [vmem:[%s3066_s28 + $0xd8] sm:$0xff]  ;;  %v254_v41 = vld [vmem:[%s3066_s28 + $0x68] sm:$0xff]  ;;  %v269_v43 = vld [vmem:[%s3066_s28 + $0xe0] sm:$0xff] }
  0x1c   : > { %v286_v39 = vpack.c.bf16 %v268_v38, %v267_v37  ;;  %v279_v42 = vpack.c.bf16 %v254_v41, %v253_v40  ;;  %v270_v44 = vld [vmem:[%s3066_s28 + $0xe8] sm:$0xff]  ;;  %v255_v46 = vld [vmem:[%s3066_s28 + $0x70] sm:$0xff]  ;;  %v256_v47 = vld [vmem:[%s3066_s28 + $0x78] sm:$0xff] }
  0x1d   : > { %v287_v45 = vpack.c.bf16 %v270_v44, %v269_v43  ;;  %v280_v48 = vpack.c.bf16 %v256_v47, %v255_v46  ;;  %v271_v49 = vld [vmem:[%s3066_s28 + $0xf0] sm:$0xff]  ;;  %v272_v50 = vld [vmem:[%s3066_s28 + $0xf8] sm:$0xff] }
  0x1e   : > { %2802 = vmatmul.mubr.msk.bf16.gmra.mrb[4].mxu0 %vm299_vm1, %v274_v12  ;;  %v288_v51 = vpack.c.bf16 %v272_v50, %v271_v49 }
  0x1f   : > { %407 = vmatprep.mubr.bf16.mxu0 %v3010_v2  ;;  %2810 = vmatmul.mubr.msk.bf16.gmra.mrb[4].mxu1 %vm299_vm1, %v282_v17 }
  0x20   : > { %487 = vmatprep.mubr.bf16.mxu1 %v3010_v2 }
  0x26   : > { %2803 = vmatmul.mubr.msk.bf16.gmra.mrb[8].mxu0 %vm299_vm1, %v275_v20 }
  0x27   : > { %417 = vmatprep.mubr.bf16.mxu0 %v3010_v2  ;;  %2811 = vmatmul.mubr.msk.bf16.gmra.mrb[8].mxu1 %vm299_vm1, %v283_v23 }
  0x28   : > { %497 = vmatprep.mubr.bf16.mxu1 %v3010_v2 }
  0x2e   : > { %2804 = vmatmul.mubr.msk.bf16.gmra.mrb[12].mxu0 %vm299_vm1, %v276_v26 }
  0x2f   : > { %427 = vmatprep.mubr.bf16.mxu0 %v3010_v2  ;;  %2812 = vmatmul.mubr.msk.bf16.gmra.mrb[12].mxu1 %vm299_vm1, %v284_v27 }
  0x30   : > { %507 = vmatprep.mubr.bf16.mxu1 %v3010_v2 }
  0x36   : > { %2805 = vmatmul.mubr.msk.bf16.gmra.mrb[16].mxu0 %vm299_vm1, %v277_v30 }
  0x37   : > { %437 = vmatprep.mubr.bf16.mxu0 %v3010_v2  ;;  %2813 = vmatmul.mubr.msk.bf16.gmra.mrb[16].mxu1 %vm299_vm1, %v285_v33 }
  0x38   : > { %517 = vmatprep.mubr.bf16.mxu1 %v3010_v2 }
  0x3e   : > { %2806 = vmatmul.mubr.msk.bf16.gmra.mrb[20].mxu0 %vm299_vm1, %v278_v36 }
  0x3f   : > { %447 = vmatprep.mubr.bf16.mxu0 %v3010_v2  ;;  %2814 = vmatmul.mubr.msk.bf16.gmra.mrb[20].mxu1 %vm299_vm1, %v286_v39 }
  0x40   : > { %527 = vmatprep.mubr.bf16.mxu1 %v3010_v2 }
  0x46   : > { %2807 = vmatmul.mubr.msk.bf16.gmra.mrb[24].mxu0 %vm299_vm1, %v279_v42 }
  0x47   : > { %457 = vmatprep.mubr.bf16.mxu0 %v3010_v2  ;;  %2815 = vmatmul.mubr.msk.bf16.gmra.mrb[24].mxu1 %vm299_vm1, %v287_v45 }
  0x48   : > { %537 = vmatprep.mubr.bf16.mxu1 %v3010_v2 }
  0x4e   : > { %2808 = vmatmul.mubr.msk.bf16.gmra.mrb[28].mxu0 %vm299_vm1, %v280_v48 }
  0x4f   : > { %2816 = vmatmul.mubr.msk.bf16.gmra.mrb[28].mxu1 %vm299_vm1, %v288_v51 }
  0xe9   : > { %v3130_v52 = vpop.f32.mrb[0].mxu0 }
  0xea   : > { %v3132_v53 = vpop.f32.mrb[1].mxu0  ;;  %v3140_v57 = vpop.f32.mrb[0].mxu1 }
  0xeb   : > { %v3134_v54 = vpop.f32.mrb[2].mxu0  ;;  %v3144_v59 = vpop.f32.mrb[1].mxu1 }
  0xec   : > { %v548_v55 = vadd.f32 %v3134_v54, %v3130_v52  ;;  %v3138_v56 = vpop.f32.mrb[3].mxu0  ;;  %5467 = vst [vmem:[#allocation2_spill] sm:$0xff] %v3144_v59  ;;  %v3146_v60 = vpop.f32.mrb[2].mxu1 }
  0xed   : > { %v585_v58 = vadd.f32 %v3138_v56, %v3132_v53  ;;  %v3148_v61 = vpop.f32.mrb[3].mxu1 }
  0xf1   : > { %v3150_v62 = vpop.f32.mrb[4].mxu0 }
  0xf2   : > { %v549_v63 = vadd.f32 %v548_v55, %v3150_v62  ;;  %v3153_v0 = vpop.f32.mrb[5].mxu0  ;;  %v3161_v5 = vpop.f32.mrb[4].mxu1 }
  0xf3   : > { %v586_v1 = vadd.f32 %v585_v58, %v3153_v0  ;;  %v3156_v2 = vpop.f32.mrb[6].mxu0  ;;  %v3164_v7 = vpop.f32.mrb[5].mxu1 }
  0xf4   : > { %v550_v3 = vadd.f32 %v549_v63, %v3156_v2  ;;  %v3159_v4 = vpop.f32.mrb[7].mxu0  ;;  %v3166_v8 = vpop.f32.mrb[6].mxu1 }
  0xf5   : > { %v587_v6 = vadd.f32 %v586_v1, %v3159_v4  ;;  %v3168_v9 = vpop.f32.mrb[7].mxu1 }
  0xf9   : > { %v3170_v10 = vpop.f32.mrb[8].mxu0 }
  0xfa   : > { %v551_v11 = vadd.f32 %v550_v3, %v3170_v10  ;;  %v3173_v12 = vpop.f32.mrb[9].mxu0  ;;  %v3181_v17 = vpop.f32.mrb[8].mxu1 }
  0xfb   : > { %v588_v13 = vadd.f32 %v587_v6, %v3173_v12  ;;  %v3176_v14 = vpop.f32.mrb[10].mxu0  ;;  %v3184_v19 = vpop.f32.mrb[9].mxu1 }
  0xfc   : > { %v552_v15 = vadd.f32 %v551_v11, %v3176_v14  ;;  %v3179_v16 = vpop.f32.mrb[11].mxu0  ;;  %v3186_v20 = vpop.f32.mrb[10].mxu1 }
  0xfd   : > { %5468 = vst [vmem:[#allocation3_spill] sm:$0xff] %v3179_v16  ;;  %v589_v18 = vadd.f32 %v588_v13, %v3179_v16  ;;  %v3188_v21 = vpop.f32.mrb[11].mxu1 }
 0x101   : > { %v3190_v22 = vpop.f32.mrb[12].mxu0 }
 0x102   : > { %v553_v23 = vadd.f32 %v552_v15, %v3190_v22  ;;  %v3193_v24 = vpop.f32.mrb[13].mxu0  ;;  %v3201_v29 = vpop.f32.mrb[12].mxu1 }
 0x103   : > { %5469 = vst [vmem:[#allocation4_spill] sm:$0xff] %v3193_v24  ;;  %v590_v25 = vadd.f32 %v589_v18, %v3193_v24  ;;  %v3196_v26 = vpop.f32.mrb[14].mxu0  ;;  %v3204_v31 = vpop.f32.mrb[13].mxu1 }
 0x104   : > { %v554_v27 = vadd.f32 %v553_v23, %v3196_v26  ;;  %v3199_v28 = vpop.f32.mrb[15].mxu0  ;;  %v3206_v32 = vpop.f32.mrb[14].mxu1 }
 0x105   : > { %5470 = vst [vmem:[#allocation5_spill] sm:$0xff] %v3199_v28  ;;  %v591_v30 = vadd.f32 %v590_v25, %v3199_v28  ;;  %v3208_v33 = vpop.f32.mrb[15].mxu1 }
 0x109   : > { %v3210_v34 = vpop.f32.mrb[16].mxu0 }
 0x10a   : > { %v555_v35 = vadd.f32 %v554_v27, %v3210_v34  ;;  %v3213_v36 = vpop.f32.mrb[17].mxu0  ;;  %v3221_v41 = vpop.f32.mrb[16].mxu1 }
 0x10b   : > { %5471 = vst [vmem:[#allocation6_spill] sm:$0xff] %v3213_v36  ;;  %v592_v37 = vadd.f32 %v591_v30, %v3213_v36  ;;  %v3216_v38 = vpop.f32.mrb[18].mxu0  ;;  %v3224_v43 = vpop.f32.mrb[17].mxu1 }
 0x10c   : > { %v556_v39 = vadd.f32 %v555_v35, %v3216_v38  ;;  %v3219_v40 = vpop.f32.mrb[19].mxu0  ;;  %v3226_v44 = vpop.f32.mrb[18].mxu1 }
 0x10d   : > { %5472 = vst [vmem:[#allocation7_spill] sm:$0xff] %v3219_v40  ;;  %v593_v42 = vadd.f32 %v592_v37, %v3219_v40  ;;  %v3228_v45 = vpop.f32.mrb[19].mxu1 }
 0x111   : > { %v3230_v46 = vpop.f32.mrb[20].mxu0 }
 0x112   : > { %v557_v47 = vadd.f32 %v556_v39, %v3230_v46  ;;  %v3233_v48 = vpop.f32.mrb[21].mxu0  ;;  %v3241_v58 = vpop.f32.mrb[20].mxu1 }
 0x113   : > { %5473 = vst [vmem:[#allocation8_spill] sm:$0xff] %v3233_v48  ;;  %v594_v49 = vadd.f32 %v593_v42, %v3233_v48  ;;  %v3236_v50 = vpop.f32.mrb[22].mxu0  ;;  %v3244_v1 = vpop.f32.mrb[21].mxu1 }
 0x114   : > { %v558_v51 = vadd.f32 %v557_v47, %v3236_v50  ;;  %v3239_v55 = vpop.f32.mrb[23].mxu0  ;;  %v3246_v3 = vpop.f32.mrb[22].mxu1 }
 0x115   : > { %5474 = vst [vmem:[#allocation9_spill] sm:$0xff] %v3239_v55  ;;  %v595_v63 = vadd.f32 %v594_v49, %v3239_v55  ;;  %v3248_v6 = vpop.f32.mrb[23].mxu1 }
 0x119   : > { %v3250_v11 = vpop.f32.mrb[24].mxu0 }
 0x11a   : > { %v559_v13 = vadd.f32 %v558_v51, %v3250_v11  ;;  %v3253_v15 = vpop.f32.mrb[25].mxu0  ;;  %v3261_v30 = vpop.f32.mrb[24].mxu1 }
 0x11b   : > { %5475 = vst [vmem:[#allocation10_spill] sm:$0xff] %v3253_v15  ;;  %v596_v18 = vadd.f32 %v595_v63, %v3253_v15  ;;  %v3256_v23 = vpop.f32.mrb[26].mxu0  ;;  %v3264_v37 = vpop.f32.mrb[25].mxu1 }
 0x11c   : > { %v560_v25 = vadd.f32 %v559_v13, %v3256_v23  ;;  %v3259_v27 = vpop.f32.mrb[27].mxu0  ;;  %v3266_v39 = vpop.f32.mrb[26].mxu1 }
 0x11d   : > { %5476 = vst [vmem:[#allocation11_spill] sm:$0xff] %v3259_v27  ;;  %v597_v35 = vadd.f32 %v596_v18, %v3259_v27  ;;  %v3268_v42 = vpop.f32.mrb[27].mxu1 }
 0x121   : > { %v3270_v47 = vpop.f32.mrb[28].mxu0 }
 0x122   : > { %v561_v49 = vadd.f32 %v560_v25, %v3270_v47  ;;  %v3273_v51 = vpop.f32.mrb[29].mxu0  ;;  %v3281_v18 = vpop.f32.mrb[28].mxu1 }
 0x123   : > { %5477 = vst [vmem:[#allocation12_spill] sm:$0xff] %v3273_v51  ;;  %v598_v63 = vadd.f32 %v597_v35, %v3273_v51  ;;  %v3276_v13 = vpop.f32.mrb[30].mxu0  ;;  %v3284_v48 = vpop.f32.mrb[29].mxu1 }
 0x124   : > { %v562_v15 = vadd.f32 %v561_v49, %v3276_v13  ;;  %v3279_v55 = vpop.f32.mrb[31].mxu0  ;;  %5479 = vst [vmem:[#allocation14_spill] sm:$0xff] %v3284_v48  ;;  %v3287_v36 = vpop.f32.mrb[30].mxu1 }
 0x125   : > { %5478 = vst [vmem:[#allocation13_spill] sm:$0xff] %v3279_v55  ;;  %v599_v27 = vadd.f32 %v598_v63, %v3279_v55  ;;  %v3290_v28 = vpop.f32.mrb[31].mxu1 }
 0x126   : > { %v563_v40 = vadd.f32 %v562_v15, %v3140_v57  ;;  %5480 = vst [vmem:[#allocation15_spill] sm:$0xff] %v3290_v28 }
 0x127   : > { %v600_v25 = vadd.f32 %v599_v27, %v3144_v59 }
 0x128   : > { %v564_v35 = vadd.f32 %v563_v40, %v3146_v60 }
 0x129   : > { %v601_v49 = vadd.f32 %v600_v25, %v3148_v61 }
 0x12a   : > { %v565_v51 = vadd.f32 %v564_v35, %v3161_v5 }
 0x12b   : > { %v602_v24 = vadd.f32 %v601_v49, %v3164_v7 }
 0x12c   : > { %v566_v63 = vadd.f32 %v565_v51, %v3166_v8 }
 0x12d   : > { %v603_v55 = vadd.f32 %v602_v24, %v3168_v9 }
 0x12e   : > { %v567_v15 = vadd.f32 %v566_v63, %v3181_v17 }
 0x12f   : > { %v604_v16 = vadd.f32 %v603_v55, %v3184_v19 }
 0x130   : > { %v568_v27 = vadd.f32 %v567_v15, %v3186_v20 }
 0x131   : > { %v605_v59 = vadd.f32 %v604_v16, %v3188_v21 }
 0x132   : > { %v569_v40 = vadd.f32 %v568_v27, %v3201_v29 }
 0x133   : > { %v606_v25 = vadd.f32 %v605_v59, %v3204_v31 }
 0x134   : > { %v570_v35 = vadd.f32 %v569_v40, %v3206_v32  ;;  %v2900_v40 = vld [vmem:[%s5371_s2 + $0x4] ss:$8 sps:$4 sm:$0xff]  }
 0x135   : > { %v607_v49 = vadd.f32 %v606_v25, %v3208_v33  ;;  %1290 = vmatprep.subr.bf16.mxu1 %v2900_v40  ;;  %v2906_v40 = vld [vmem:[%s5371_s2 + $0x24] ss:$8 sps:$4 sm:$0xff]  }
 0x136   : > { %v571_v51 = vadd.f32 %v570_v35, %v3221_v41  ;;  %v2898_v35 = vld [vmem:[%s5371_s2] ss:$8 sps:$4 sm:$0xff]  }
 0x137   : > { %v608_v24 = vadd.f32 %v607_v49, %v3224_v43  ;;  %1291 = vmatpush1.bf16.msra.mxu1 %v2898_v35  ;;  %v2904_v35 = vld [vmem:[%s5371_s2 + $0x20] ss:$8 sps:$4 sm:$0xff]  }
 0x138   : > { %v572_v63 = vadd.f32 %v571_v51, %v3226_v44 }
 0x139   : > { %v609_v55 = vadd.f32 %v608_v24, %v3228_v45 }
 0x13a   : > { %v573_v15 = vadd.f32 %v572_v63, %v3241_v58  ;;  %v2903_v63 = vld [vmem:[%s5371_s2 + $0x14] ss:$8 sps:$4 sm:$0xff]  }
 0x13b   : > { %v610_v16 = vadd.f32 %v609_v55, %v3244_v1  ;;  %1292 = vmatprep.subr.bf16.mxu1 %v2903_v63  ;;  %v2909_v63 = vld [vmem:[%s5371_s2 + $0x34] ss:$8 sps:$4 sm:$0xff]  }
 0x13c   : > { %v574_v27 = vadd.f32 %v573_v15, %v3246_v3  ;;  %v2901_v15 = vld [vmem:[%s5371_s2 + $0x10] ss:$8 sps:$4 sm:$0xff]  }
 0x13d   : > { %v611_v59 = vadd.f32 %v610_v16, %v3248_v6  ;;  %1293 = vmatpush1.bf16.msra.mxu1 %v2901_v15  ;;  %v2907_v15 = vld [vmem:[%s5371_s2 + $0x30] ss:$8 sps:$4 sm:$0xff]  }
 0x13e   : > { %v575_v25 = vadd.f32 %v574_v27, %v3261_v30  ;;  %1294 = vmatprep.subr.bf16.mxu1 %v2906_v40  ;;  %v2912_v40 = vld [vmem:[%s5371_s2 + $0x44] ss:$8 sps:$4 sm:$0xff]  }
 0x13f   : > { %v612_v49 = vadd.f32 %v611_v59, %v3264_v37 }
 0x140   : > { %v576_v51 = vadd.f32 %v575_v25, %v3266_v39 }
 0x141   : > { %v613_v24 = vadd.f32 %v612_v49, %v3268_v42  ;;  %1295 = vmatpush1.bf16.msra.mxu1 %v2904_v35 }
 0x142   : > { %v577_v55 = vadd.f32 %v576_v51, %v3281_v18  ;;  %1296 = vmatprep.subr.bf16.mxu1 %v2909_v63 }
 0x143   : > { %v614_v16 = vadd.f32 %v613_v24, %v3284_v48 }
 0x144   : > { %v578_v27 = vadd.f32 %v577_v55, %v3287_v36 }
 0x145   : > { %v615_v59 = vadd.f32 %v614_v16, %v3290_v28  ;;  %1297 = vmatpush1.bf16.msra.mxu1 %v2907_v15 }
 0x146   : > { %v579_v25 = vrot.slane %v578_v27, 4  ;;  %1298 = vmatprep.subr.bf16.mxu1 %v2912_v40 }
 0x147   : > { %v616_v49 = vrot.slane %v615_v59, 4 }
 0x148   : > { %v580_v51 = vadd.f32 %v579_v25, %v578_v27 }
 0x149   : > { %v617_v24 = vadd.f32 %v616_v49, %v615_v59  ;;  %v2910_v59 = vld [vmem:[%s5371_s2 + $0x40] ss:$8 sps:$4 sm:$0xff]   ;;  %v2915_v49 = vld [vmem:[%s5371_s2 + $0x54] ss:$8 sps:$4 sm:$0xff]  }
 0x14a   : > { %v581_v55 = vrot.slane %v580_v51, 2  ;;  %1299 = vmatpush1.bf16.msra.mxu1 %v2910_v59 }
 0x14b   : > { %v618_v16 = vrot.slane %v617_v24, 2  ;;  %1300 = vmatprep.subr.bf16.mxu1 %v2915_v49 }
 0x14c   : > { %v582_v28 = vadd.f32 %v581_v55, %v580_v51  ;;  %v2913_v51 = vld [vmem:[%s5371_s2 + $0x50] ss:$8 sps:$4 sm:$0xff]  }
 0x14d   : > { %v619_v25 = vadd.f32 %v618_v16, %v617_v24 }
 0x14e   : > { %v583_v27 = vrot.slane %v582_v28, 1  ;;  %1301 = vmatpush1.bf16.msra.mxu1 %v2913_v51  ;;  %v2925_v51 = vld [vmem:[%s5371_s2 + $0x90] ss:$8 sps:$4 sm:$0xff]  }
 0x14f   : > { %v620_v55 = vrot.slane %v619_v25, 1 }
 0x150   : > { %v584_v35 = vadd.f32 %v583_v27, %v582_v28 }
 0x152   : > { %v623_v63 = vmul.f32 0.00390625, %v584_v35 }
 0x154   : > { %v3359_v15 = vsub.f32 %v3130_v52, %v623_v63  ;;  %v3362_v48 = vsub.f32 %v3134_v54, %v623_v63  ;;  %v3365_v28 = vsub.f32 %v3150_v62, %v623_v63  ;;  %v3368_v24 = vsub.f32 %v3156_v2, %v623_v63  ;;  %v2918_v54 = vld [vmem:[%s5371_s2 + $0x64] ss:$8 sps:$4 sm:$0xff]  }
 0x155   : > { %v3371_v16 = vsub.f32 %v3170_v10, %v623_v63  ;;  %v3374_v40 = vsub.f32 %v3176_v14, %v623_v63  ;;  %v3377_v27 = vsub.f32 %v3190_v22, %v623_v63  ;;  %v3380_v52 = vsub.f32 %v3196_v26, %v623_v63  ;;  %v2916_v22 = vld [vmem:[%s5371_s2 + $0x60] ss:$8 sps:$4 sm:$0xff]   ;;  %1302 = vmatprep.subr.bf16.mxu1 %v2918_v54 }
 0x156   : > { %5481 = vst [vmem:[#allocation16_spill] sm:$0xff] %v3359_v15  ;;  %5482 = vst [vmem:[#allocation17_spill] sm:$0xff] %v3362_v48  ;;  %v3386_v62 = vsub.f32 %v3210_v34, %v623_v63  ;;  %v3389_v2 = vsub.f32 %v3216_v38, %v623_v63  ;;  %v3392_v10 = vsub.f32 %v3230_v46, %v623_v63  ;;  %1303 = vmatpush1.bf16.msra.mxu1 %v2916_v22 }
 0x157   : > { %5483 = vst [vmem:[#allocation18_spill] sm:$0xff] %v3365_v28  ;;  %5484 = vst [vmem:[#allocation19_spill] sm:$0xff] %v3368_v24  ;;  %v3395_v14 = vsub.f32 %v3236_v50, %v623_v63  ;;  %v3401_v26 = vsub.f32 %v3250_v11, %v623_v63  ;;  %v3404_v59 = vsub.f32 %v3256_v23, %v623_v63 }
 0x158   : > { %5485 = vst [vmem:[#allocation20_spill] sm:$0xff] %v3371_v16  ;;  %5486 = vst [vmem:[#allocation21_spill] sm:$0xff] %v3374_v40  ;;  %v3407_v34 = vsub.f32 %v3270_v47, %v623_v63  ;;  %v3410_v38 = vsub.f32 %v3276_v13, %v623_v63  ;;  %v3413_v46 = vsub.f32 %v3140_v57, %v623_v63 }
 0x159   : > { %5487 = vst [vmem:[#allocation22_spill] sm:$0xff] %v3377_v27  ;;  %5488 = vst [vmem:[#allocation23_spill] sm:$0xff] %v3389_v2  ;;  %v3416_v50 = vsub.f32 %v3146_v60, %v623_v63  ;;  %v3419_v35 = vsub.f32 %v3161_v5, %v623_v63  ;;  %v3422_v11 = vsub.f32 %v3166_v8, %v623_v63  ;;  %v2921_v60 = vld [vmem:[%s5371_s2 + $0x74] ss:$8 sps:$4 sm:$0xff]  }
 0x15a   : > { %5489 = vst [vmem:[#allocation24_spill] sm:$0xff] %v3392_v10  ;;  %5490 = vst [vmem:[#allocation25_spill] sm:$0xff] %v3395_v14  ;;  %v3425_v23 = vsub.f32 %v3181_v17, %v623_v63  ;;  %v3428_v47 = vsub.f32 %v3186_v20, %v623_v63  ;;  %v3431_v13 = vsub.f32 %v3201_v29, %v623_v63  ;;  %v2919_v29 = vld [vmem:[%s5371_s2 + $0x70] ss:$8 sps:$4 sm:$0xff]   ;;  %1304 = vmatprep.subr.bf16.mxu1 %v2921_v60 }
 0x15b   : > { %5491 = vst [vmem:[#allocation26_spill] sm:$0xff] %v3401_v26  ;;  %5492 = vst [vmem:[#allocation27_spill] sm:$0xff] %v3404_v59  ;;  %v3434_v57 = vsub.f32 %v3206_v32, %v623_v63  ;;  %v3440_v5 = vsub.f32 %v3221_v41, %v623_v63  ;;  %v3443_v8 = vsub.f32 %v3226_v44, %v623_v63  ;;  %1305 = vmatpush1.bf16.msra.mxu1 %v2919_v29 }
 0x15c   : > { %5493 = vst [vmem:[#allocation28_spill] sm:$0xff] %v3407_v34  ;;  %5494 = vst [vmem:[#allocation29_spill] sm:$0xff] %v3410_v38  ;;  %v3446_v17 = vsub.f32 %v3241_v58, %v623_v63  ;;  %v3449_v20 = vsub.f32 %v3246_v3, %v623_v63  ;;  %v3455_v32 = vsub.f32 %v3261_v30, %v623_v63  ;;  %v2924_v3 = vld [vmem:[%s5371_s2 + $0x84] ss:$8 sps:$4 sm:$0xff]   ;;  %v2922_v30 = vld [vmem:[%s5371_s2 + $0x80] ss:$8 sps:$4 sm:$0xff]  }
 0x15d   : > { %v3458_v49 = vsub.f32 %v3266_v39, %v623_v63  ;;  %v3461_v41 = vsub.f32 %v3281_v18, %v623_v63  ;;  %v3464_v44 = vsub.f32 %v3287_v36, %v623_v63  ;;  %v621_v58 = vadd.f32 %v620_v55, %v619_v25  ;;  %1306 = vmatprep.subr.bf16.mxu1 %v2924_v3  ;;  %v2927_v25 = vld [vmem:[%s5371_s2 + $0x94] ss:$8 sps:$4 sm:$0xff]  }
 0x15e   : > { %5495 = vst [vmem:[#allocation30_spill] sm:$0xff] %v3446_v17  ;;  %5496 = vst [vmem:[#allocation31_spill] sm:$0xff] %v3449_v20  ;;  %v689_v39 = vmul.f32 %v3359_v15, %v3359_v15  ;;  %v691_v18 = vmul.f32 %v3362_v48, %v3362_v48  ;;  %v693_v63 = vmul.f32 %v3365_v28, %v3365_v28  ;;  %v5505_v28 = vld [vmem:[#allocation7_spill] sm:$0xff]  ;;  %v5508_v15 = vld [vmem:[#allocation9_spill] sm:$0xff] }
 0x15f   : > { %5497 = vst [vmem:[#allocation32_spill] sm:$0xff] %v3455_v32  ;;  %5498 = vst [vmem:[#allocation33_spill] sm:$0xff] %v3458_v49  ;;  %v624_v36 = vmul.f32 0.00390625, %v621_v58  ;;  %1307 = vmatpush1.bf16.msra.mxu1 %v2922_v30  ;;  %v695_v55 = vmul.f32 %v3368_v24, %v3368_v24  ;;  %v697_v54 = vmul.f32 %v3371_v16, %v3371_v16  ;;  %v5501_v24 = vld [vmem:[#allocation3_spill] sm:$0xff]  ;;  %v5516_v32 = vld [vmem:[#allocation13_spill] sm:$0xff] }
 0x160   : > { %5499 = vst [vmem:[#allocation34_spill] sm:$0xff] %v3461_v41  ;;  %5500 = vst [vmem:[#allocation35_spill] sm:$0xff] %v3464_v44  ;;  %v699_v22 = vmul.f32 %v3374_v40, %v3374_v40  ;;  %v701_v60 = vmul.f32 %v3377_v27, %v3377_v27  ;;  %1308 = vmatprep.subr.bf16.mxu1 %v2927_v25  ;;  %v753_v29 = vadd.f32 %v691_v18, %v689_v39  ;;  %v5502_v39 = vld [vmem:[#allocation4_spill] sm:$0xff]  ;;  %v5518_v17 = vld [vmem:[#allocation2_spill] sm:$0xff] }
 0x161   : > { %v3493_v58 = vsub.f32 %v3132_v53, %v624_v36  ;;  %v3496_v3 = vsub.f32 %v3138_v56, %v624_v36  ;;  %v3499_v30 = vsub.f32 %v3153_v0, %v624_v36  ;;  %v3502_v16 = vsub.f32 %v3159_v4, %v624_v36  ;;  %v2930_v53 = vld [vmem:[%s5371_s2 + $0xa4] ss:$8 sps:$4 sm:$0xff]   ;;  %v5503_v0 = vld [vmem:[#allocation5_spill] sm:$0xff] }
 0x162   : > { %v3505_v40 = vsub.f32 %v3173_v12, %v624_v36  ;;  %v3508_v27 = vsub.f32 %v5501_v24, %v624_v36  ;;  %v3511_v18 = vsub.f32 %v5502_v39, %v624_v36  ;;  %v754_v56 = vadd.f32 %v753_v29, %v693_v63  ;;  %v2928_v24 = vld [vmem:[%s5371_s2 + $0xa0] ss:$8 sps:$4 sm:$0xff]   ;;  %v5506_v39 = vld [vmem:[#allocation8_spill] sm:$0xff] }
 0x163   : > { %1309 = vmatpush1.bf16.msra.mxu1 %v2925_v51  ;;  %v3517_v25 = vsub.f32 %v5503_v0, %v624_v36  ;;  %v5504_v51 = vld [vmem:[#allocation6_spill] sm:$0xff]  ;;  %v3523_v12 = vsub.f32 %v5505_v28, %v624_v36  ;;  %v3529_v48 = vsub.f32 %v5506_v39, %v624_v36  ;;  %v3532_v44 = vsub.f32 %v5508_v15, %v624_v36  ;;  %v5512_v0 = vld [vmem:[#allocation11_spill] sm:$0xff]  ;;  %v5514_v28 = vld [vmem:[#allocation12_spill] sm:$0xff] }
 0x164   : > { %v3520_v4 = vsub.f32 %v5504_v51, %v624_v36  ;;  %v5510_v63 = vld [vmem:[#allocation10_spill] sm:$0xff]  ;;  %v3538_v41 = vsub.f32 %v5512_v0, %v624_v36  ;;  %1310 = vmatprep.subr.bf16.mxu1 %v2930_v53  ;;  %v755_v51 = vadd.f32 %v754_v56, %v695_v55  ;;  %v3541_v49 = vsub.f32 %v5514_v28, %v624_v36 }
 0x165   : > { %5507 = vst [vmem:[#allocation3_spill] sm:$0xff] %v3529_v48  ;;  %5509 = vst [vmem:[#allocation4_spill] sm:$0xff] %v3532_v44  ;;  %v3535_v29 = vsub.f32 %v5510_v63, %v624_v36  ;;  %v3544_v20 = vsub.f32 %v5516_v32, %v624_v36  ;;  %v3547_v39 = vsub.f32 %v5518_v17, %v624_v36  ;;  %v2933_v32 = vld [vmem:[%s5371_s2 + $0xb4] ss:$8 sps:$4 sm:$0xff]  }
 0x166   : > { %5513 = vst [vmem:[#allocation6_spill] sm:$0xff] %v3538_v41  ;;  %5515 = vst [vmem:[#allocation7_spill] sm:$0xff] %v3541_v49  ;;  %v3550_v15 = vsub.f32 %v3148_v61, %v624_v36  ;;  %v3553_v63 = vsub.f32 %v3164_v7, %v624_v36  ;;  %v3556_v0 = vsub.f32 %v3168_v9, %v624_v36  ;;  %v2931_v9 = vld [vmem:[%s5371_s2 + $0xb0] ss:$8 sps:$4 sm:$0xff]  }
 0x167   : > { %5511 = vst [vmem:[#allocation5_spill] sm:$0xff] %v3535_v29  ;;  %5517 = vst [vmem:[#allocation8_spill] sm:$0xff] %v3544_v20  ;;  %1311 = vmatpush1.bf16.msra.mxu1 %v2928_v24  ;;  %v3559_v55 = vsub.f32 %v3184_v19, %v624_v36  ;;  %v756_v53 = vadd.f32 %v755_v51, %v697_v54  ;;  %v3565_v17 = vsub.f32 %v3188_v21, %v624_v36  ;;  %v5521_v51 = vld [vmem:[#allocation14_spill] sm:$0xff] }
 0x168   : > { %5519 = vst [vmem:[#allocation9_spill] sm:$0xff] %v3547_v39  ;;  %5520 = vst [vmem:[#allocation10_spill] sm:$0xff] %v3550_v15  ;;  %v3568_v61 = vsub.f32 %v3204_v31, %v624_v36  ;;  %v3571_v7 = vsub.f32 %v3208_v33, %v624_v36  ;;  %v3577_v19 = vsub.f32 %v3224_v43, %v624_v36  ;;  %1312 = vmatprep.subr.bf16.mxu1 %v2933_v32 }
 0x169   : > { %v3580_v56 = vsub.f32 %v3228_v45, %v624_v36  ;;  %v3583_v54 = vsub.f32 %v3244_v1, %v624_v36  ;;  %v3586_v21 = vsub.f32 %v3248_v6, %v624_v36  ;;  %v757_v31 = vadd.f32 %v756_v53, %v699_v22  ;;  %v5522_v45 = vld [vmem:[#allocation15_spill] sm:$0xff] }
 0x16a   : > { %v3589_v33 = vsub.f32 %v3264_v37, %v624_v36  ;;  %v3592_v24 = vsub.f32 %v3268_v42, %v624_v36  ;;  %v3595_v43 = vsub.f32 %v5521_v51, %v624_v36  ;;  %v3598_v28 = vsub.f32 %v5522_v45, %v624_v36  ;;  %v2936_v1 = vld [vmem:[%s5371_s2 + $0xc4] ss:$8 sps:$4 sm:$0xff]   ;;  %v2934_v37 = vld [vmem:[%s5371_s2 + $0xc0] ss:$8 sps:$4 sm:$0xff]   ;;  %v2939_v36 = vld [vmem:[%s5371_s2 + $0xd4] ss:$8 sps:$4 sm:$0xff]  }
 0x16b   : > { %1313 = vmatpush1.bf16.msra.mxu1 %v2931_v9  ;;  %v703_v6 = vmul.f32 %v3380_v52, %v3380_v52  ;;  %v758_v22 = vadd.f32 %v757_v31, %v701_v60  ;;  %v705_v42 = vmul.f32 %v3386_v62, %v3386_v62  ;;  %v707_v53 = vmul.f32 %v3389_v2, %v3389_v2  ;;  %v2937_v51 = vld [vmem:[%s5371_s2 + $0xd0] ss:$8 sps:$4 sm:$0xff]  }
 0x16c   : > { %1314 = vmatprep.subr.bf16.mxu1 %v2936_v1  ;;  %v690_v60 = vmul.f32 %v3493_v58, %v3493_v58  ;;  %v692_v31 = vmul.f32 %v3496_v3, %v3496_v3  ;;  %v709_v45 = vmul.f32 %v3392_v10, %v3392_v10 }
 0x16d   : > { %v759_v32 = vadd.f32 %v758_v22, %v703_v6  ;;  %v2942_v6 = vld [vmem:[%s5371_s2 + $0xe4] ss:$8 sps:$4 sm:$0xff]   ;;  %v711_v22 = vmul.f32 %v3395_v14, %v3395_v14 }
 0x16f   : > { %1315 = vmatpush1.bf16.msra.mxu1 %v2934_v37  ;;  %v760_v9 = vadd.f32 %v759_v32, %v705_v42  ;;  %v694_v42 = vmul.f32 %v3499_v30, %v3499_v30  ;;  %v790_v32 = vadd.f32 %v692_v31, %v690_v60  ;;  %v715_v60 = vmul.f32 %v3404_v59, %v3404_v59 }
 0x170   : > { %1316 = vmatprep.subr.bf16.mxu1 %v2939_v36  ;;  %v2940_v36 = vld [vmem:[%s5371_s2 + $0xe0] ss:$8 sps:$4 sm:$0xff]  }
 0x171   : > { %v761_v1 = vadd.f32 %v760_v9, %v707_v53  ;;  %v713_v53 = vmul.f32 %v3401_v26, %v3401_v26  ;;  %v791_v10 = vadd.f32 %v790_v32, %v694_v42  ;;  %v700_v32 = vmul.f32 %v3508_v27, %v3508_v27 }
 0x173   : > { %1317 = vmatpush1.bf16.msra.mxu1 %v2937_v51  ;;  %v762_v37 = vadd.f32 %v761_v1, %v709_v45  ;;  %v696_v51 = vmul.f32 %v3502_v16, %v3502_v16  ;;  %v2945_v45 = vld [vmem:[%s5371_s2 + $0xf4] ss:$8 sps:$4 sm:$0xff]   ;;  %v698_v1 = vmul.f32 %v3505_v40, %v3505_v40 }
 0x174   : > { %1318 = vmatprep.subr.bf16.mxu1 %v2942_v6 }
 0x175   : > { %v763_v9 = vadd.f32 %v762_v37, %v711_v22  ;;  %v792_v6 = vadd.f32 %v791_v10, %v696_v51  ;;  %v2943_v22 = vld [vmem:[%s5371_s2 + $0xf0] ss:$8 sps:$4 sm:$0xff]   ;;  %v717_v37 = vmul.f32 %v3407_v34, %v3407_v34  ;;  %v702_v10 = vmul.f32 %v3511_v18, %v3511_v18 }
 0x177   : > { %1319 = vmatpush1.bf16.msra.mxu1 %v2940_v36  ;;  %v764_v31 = vadd.f32 %v763_v9, %v713_v53  ;;  %v793_v36 = vadd.f32 %v792_v6, %v698_v1  ;;  %v719_v53 = vmul.f32 %v3410_v38, %v3410_v38  ;;  %v723_v1 = vmul.f32 %v3416_v50, %v3416_v50 }
 0x178   : > { %1320 = vmatprep.subr.bf16.mxu1 %v2945_v45  ;;  %v721_v45 = vmul.f32 %v3413_v46, %v3413_v46 }
 0x179   : > { %v765_v42 = vadd.f32 %v764_v31, %v715_v60  ;;  %v794_v51 = vadd.f32 %v793_v36, %v700_v32  ;;  %v704_v60 = vmul.f32 %v3517_v25, %v3517_v25  ;;  %v708_v36 = vmul.f32 %v3523_v12, %v3523_v12 }
 0x17b   : > { %1321 = vmatpush1.bf16.msra.mxu1 %v2943_v22  ;;  %v766_v9 = vadd.f32 %v765_v42, %v717_v37  ;;  %v795_v31 = vadd.f32 %v794_v51, %v702_v10  ;;  %v706_v22 = vmul.f32 %v3520_v4, %v3520_v4  ;;  %v725_v42 = vmul.f32 %v3419_v35, %v3419_v35 }
 0x17c   : > { %v710_v51 = vmul.f32 %v3529_v48, %v3529_v48 }
 0x17d   : > { %v767_v59 = vadd.f32 %v766_v9, %v719_v53  ;;  %v796_v37 = vadd.f32 %v795_v31, %v704_v60  ;;  %v727_v9 = vmul.f32 %v3422_v11, %v3422_v11  ;;  %v712_v31 = vmul.f32 %v3532_v44, %v3532_v44 }
 0x17f   : > { %v768_v6 = vadd.f32 %v767_v59, %v721_v45  ;;  %v797_v53 = vadd.f32 %v796_v37, %v706_v22  ;;  %v729_v45 = vmul.f32 %v3425_v23, %v3425_v23  ;;  %v714_v37 = vmul.f32 %v3535_v29, %v3535_v29 }
 0x181   : > { %v769_v32 = vadd.f32 %v768_v6, %v723_v1  ;;  %v798_v59 = vadd.f32 %v797_v53, %v708_v36  ;;  %v731_v6 = vmul.f32 %v3428_v47, %v3428_v47  ;;  %v716_v53 = vmul.f32 %v3538_v41, %v3538_v41 }
 0x183   : > { %v770_v10 = vadd.f32 %v769_v32, %v725_v42  ;;  %v799_v1 = vadd.f32 %v798_v59, %v710_v51  ;;  %v733_v32 = vmul.f32 %v3431_v13, %v3431_v13  ;;  %v718_v59 = vmul.f32 %v3541_v49, %v3541_v49 }
 0x185   : > { %v771_v60 = vadd.f32 %v770_v10, %v727_v9  ;;  %v800_v42 = vadd.f32 %v799_v1, %v712_v31  ;;  %v735_v10 = vmul.f32 %v3434_v57, %v3434_v57  ;;  %v720_v1 = vmul.f32 %v3544_v20, %v3544_v20 }
 0x187   : > { %v772_v22 = vadd.f32 %v771_v60, %v729_v45  ;;  %v801_v9 = vadd.f32 %v800_v42, %v714_v37  ;;  %v737_v60 = vmul.f32 %v3440_v5, %v3440_v5  ;;  %v722_v42 = vmul.f32 %v3547_v39, %v3547_v39 }
 0x189   : > { %v773_v36 = vadd.f32 %v772_v22, %v731_v6  ;;  %v802_v45 = vadd.f32 %v801_v9, %v716_v53  ;;  %v739_v22 = vmul.f32 %v3443_v8, %v3443_v8  ;;  %v724_v9 = vmul.f32 %v3550_v15, %v3550_v15 }
 0x18b   : > { %v774_v51 = vadd.f32 %v773_v36, %v733_v32  ;;  %v803_v6 = vadd.f32 %v802_v45, %v718_v59  ;;  %v5523_v36 = vld [vmem:[#allocation30_spill] sm:$0xff]  ;;  %v726_v45 = vmul.f32 %v3553_v63, %v3553_v63 }
 0x18c   : > { %v741_v38 = vmul.f32 %v5523_v36, %v5523_v36 }
 0x18d   : > { %v775_v31 = vadd.f32 %v774_v51, %v735_v10  ;;  %v804_v32 = vadd.f32 %v803_v6, %v720_v1  ;;  %v5524_v51 = vld [vmem:[#allocation31_spill] sm:$0xff]  ;;  %v728_v6 = vmul.f32 %v3556_v0, %v3556_v0 }
 0x18e   : > { %v743_v34 = vmul.f32 %v5524_v51, %v5524_v51 }
 0x18f   : > { %v776_v37 = vadd.f32 %v775_v31, %v737_v60  ;;  %v805_v10 = vadd.f32 %v804_v32, %v722_v42  ;;  %v5525_v31 = vld [vmem:[#allocation32_spill] sm:$0xff]  ;;  %v730_v32 = vmul.f32 %v3559_v55, %v3559_v55 }
 0x190   : > { %v745_v39 = vmul.f32 %v5525_v31, %v5525_v31 }
 0x191   : > { %v777_v53 = vadd.f32 %v776_v37, %v739_v22  ;;  %v806_v60 = vadd.f32 %v805_v10, %v724_v9  ;;  %v5526_v37 = vld [vmem:[#allocation33_spill] sm:$0xff]  ;;  %v732_v10 = vmul.f32 %v3565_v17, %v3565_v17 }
 0x192   : > { %v747_v15 = vmul.f32 %v5526_v37, %v5526_v37 }
 0x193   : > { %v778_v59 = vadd.f32 %v777_v53, %v741_v38  ;;  %v807_v22 = vadd.f32 %v806_v60, %v726_v45  ;;  %v5527_v53 = vld [vmem:[#allocation34_spill] sm:$0xff]  ;;  %v734_v60 = vmul.f32 %v3568_v61, %v3568_v61 }
 0x194   : > { %v749_v20 = vmul.f32 %v5527_v53, %v5527_v53 }
 0x195   : > { %v779_v1 = vadd.f32 %v778_v59, %v743_v34  ;;  %v808_v38 = vadd.f32 %v807_v22, %v728_v6  ;;  %v5528_v59 = vld [vmem:[#allocation35_spill] sm:$0xff]  ;;  %v736_v6 = vmul.f32 %v3571_v7, %v3571_v7 }
 0x196   : > { %v751_v49 = vmul.f32 %v5528_v59, %v5528_v59 }
 0x197   : > { %v780_v42 = vadd.f32 %v779_v1, %v745_v39  ;;  %v809_v34 = vadd.f32 %v808_v38, %v730_v32  ;;  %v740_v32 = vmul.f32 %v3580_v56, %v3580_v56 }
 0x199   : > { %v781_v9 = vadd.f32 %v780_v42, %v747_v15  ;;  %v810_v39 = vadd.f32 %v809_v34, %v732_v10  ;;  %v738_v15 = vmul.f32 %v3577_v19, %v3577_v19 }
 0x19b   : > { %v782_v45 = vadd.f32 %v781_v9, %v749_v20  ;;  %v811_v22 = vadd.f32 %v810_v39, %v734_v60  ;;  %v742_v20 = vmul.f32 %v3583_v54, %v3583_v54  ;;  %v748_v39 = vmul.f32 %v3592_v24, %v3592_v24 }
 0x19d   : > { %v783_v1 = vadd.f32 %v782_v45, %v751_v49  ;;  %v812_v42 = vadd.f32 %v811_v22, %v736_v6  ;;  %v744_v49 = vmul.f32 %v3586_v21, %v3586_v21  ;;  %v746_v45 = vmul.f32 %v3589_v33, %v3589_v33 }
 0x19f   : > { %v784_v26 = vrot.slane %v783_v1, 4  ;;  %v813_v38 = vadd.f32 %v812_v42, %v738_v15  ;;  %v752_v15 = vmul.f32 %v3598_v28, %v3598_v28 }
 0x1a1   : > { %v785_v41 = vadd.f32 %v784_v26, %v783_v1  ;;  %v814_v9 = vadd.f32 %v813_v38, %v740_v32  ;;  %v750_v26 = vmul.f32 %v3595_v43, %v3595_v43 }
 0x1a3   : > { %v815_v10 = vadd.f32 %v814_v9, %v742_v20  ;;  %v786_v34 = vrot.slane %v785_v41, 2 }
 0x1a5   : > { %v816_v60 = vadd.f32 %v815_v10, %v744_v49  ;;  %v787_v22 = vadd.f32 %v786_v34, %v785_v41 }
 0x1a7   : > { %v817_v6 = vadd.f32 %v816_v60, %v746_v45  ;;  %v788_v32 = vrot.slane %v787_v22, 1  ;;  %v3011_v60 = vmov 1966171168  }
 0x1a9   : > { %v818_v1 = vadd.f32 %v817_v6, %v748_v39  ;;  %v789_v9 = vadd.f32 %v788_v32, %v787_v22  ;;  %v837_v39 = vunpack.c.l.s4 %v3011_v60  ;;  %v839_v6 = vlaneseq }
 0x1ab   : > { %v819_v42 = vadd.f32 %v818_v1, %v750_v26  ;;  %v827_v49 = vmul.f32 0.00390625, %v789_v9  ;;  %v838_v2 = vunpack.c.0.s8 %v837_v39  ;;  %v840_v26 = vshrl.u32 %v839_v6, 7  ;;  %v5533_v6 = vld [vmem:[#allocation17_spill] sm:$0xff] }
 0x1ad   : > { %v820_v38 = vadd.f32 %v819_v42, %v752_v15  ;;  %v829_v48 = vadd.f32 1e-05, %v827_v49  ;;  %v3738_v15 = vsub.s32 %v838_v2, %v840_v26 }
 0x1af   : > { %v821_v20 = vrot.slane %v820_v38, 4  ;;  %2994 = vrsqrt.f32 %v829_v48  ;;  %5529 = vst [vmem:[#allocation11_spill] sm:$0xff] %v3738_v15 }
 0x1b1   : > { %v822_v29 = vadd.f32 %v821_v20, %v820_v38 }
 0x1b3   : > { %v823_v14 = vrot.slane %v822_v29, 2 }
 0x1b5   : > { %v824_v10 = vadd.f32 %v823_v14, %v822_v29  ;;  %v229_v14 = vld [vmem:[%s5373_s4] ss:$8 sm:$0x3]  ;;  %v2793_v29 = vld [vmem:[%s5373_s4 + $0x1] ss:$8 sm:$0x3] }
 0x1b7   : > { %v825_v44 = vrot.slane %v824_v10, 1 }
 0x1b9   : > { %v826_v45 = vadd.f32 %v825_v44, %v824_v10  ;;  %v2995_v1 = vpop.eup %2994  ;;  %v3745_v44 = vsub.s32 1, %v840_v26  ;;  %v3761_v10 = vsub.s32 0, %v840_v26  ;;  %v5534_v26 = vld [vmem:[#allocation18_spill] sm:$0xff] }
 0x1bb   : > { %v828_v41 = vmul.f32 0.00390625, %v826_v45  ;;  %5530 = vst [vmem:[#allocation12_spill] sm:$0xff] %v3745_v44  ;;  %v3754_v20 = vrot.slane %v2793_v29, %v3745_v44  ;;  %5531 = vst [vmem:[#allocation13_spill] sm:$0xff] %v3761_v10 }
 0x1bd   : > { %v830_v34 = vadd.f32 1e-05, %v828_v41  ;;  %v3767_v41 = vrot.slane %v2793_v29, %v3761_v10 }
 0x1bf   : > { %2996 = vrsqrt.f32 %v830_v34  ;;  %v5532_v34 = vld [vmem:[#allocation16_spill] sm:$0xff] }
 0x1c9   : > { %v2997_v22 = vpop.eup %2996 }
 0x1ca   : > { %v835_v42 = vcombine.low %v2995_v1, %v2997_v22 }
 0x1cc   : > { %v842_v32 = vrot.slane %v835_v42, %v3738_v15 }
 0x1ce   : > { %v849_v48 = vrot.slane %v842_v32, %v3738_v15  ;;  %v5535_v32 = vld [vmem:[#allocation19_spill] sm:$0xff] }
 0x1d0   : > { %v851_v38 = vmul.f32 %v849_v48, %v229_v14  ;;  %v5536_v48 = vld [vmem:[#allocation20_spill] sm:$0xff] }
 0x1d2   : > { %v3751_v2 = vrot.slane %v851_v38, %v3745_v44  ;;  %v3764_v45 = vrot.slane %v851_v38, %v3761_v10  ;;  %v5537_v38 = vld [vmem:[#allocation21_spill] sm:$0xff] }
 0x1d4   : > { %v926_v9 = vmul.f32 %v3751_v2, %v3598_v28  ;;  %v863_v60 = vmul.f32 %v3764_v45, %v5532_v34  ;;  %v864_v39 = vmul.f32 %v3751_v2, %v3493_v58  ;;  %v865_v28 = vmul.f32 %v3764_v45, %v5533_v6 }
 0x1d5   : > { %v866_v1 = vmul.f32 %v3751_v2, %v3496_v3  ;;  %v3779_v22 = vmul.f32 %v3764_v45, %v5534_v26  ;;  %v868_v42 = vmul.f32 %v3751_v2, %v3499_v30  ;;  %v3785_v14 = vmul.f32 %v3764_v45, %v5535_v32 }
 0x1d6   : > { %v3759_v49 = vadd.f32 %v3754_v20, %v926_v9  ;;  %v870_v58 = vmul.f32 %v3751_v2, %v3502_v16  ;;  %v3791_v29 = vmul.f32 %v3764_v45, %v5536_v48  ;;  %v3795_v3 = vmul.f32 %v3751_v2, %v3505_v40 }
 0x1d7   : > { %v3799_v9 = vmul.f32 %v3764_v45, %v5537_v38  ;;  %v3803_v30 = vmul.f32 %v3751_v2, %v3508_v27  ;;  %v895_v34 = vmul.f32 %v3764_v45, %v3413_v46  ;;  %v897_v16 = vmul.f32 %v3764_v45, %v3416_v50 }
 0x1d8   : > { %v899_v6 = vmul.f32 %v3764_v45, %v3419_v35  ;;  %v900_v40 = vmul.f32 %v3751_v2, %v3553_v63  ;;  %v901_v26 = vmul.f32 %v3764_v45, %v3422_v11  ;;  %v902_v32 = vmul.f32 %v3751_v2, %v3556_v0 }
 0x1d9   : > { %v903_v27 = vmul.f32 %v3764_v45, %v3425_v23  ;;  %v904_v46 = vmul.f32 %v3751_v2, %v3559_v55  ;;  %v905_v50 = vmul.f32 %v3764_v45, %v3428_v47  ;;  %v906_v35 = vmul.f32 %v3751_v2, %v3565_v17 }
 0x1da   : > { %v907_v63 = vmul.f32 %v3764_v45, %v3431_v13  ;;  %v908_v11 = vmul.f32 %v3751_v2, %v3568_v61  ;;  %v909_v0 = vmul.f32 %v3764_v45, %v3434_v57  ;;  %v910_v23 = vmul.f32 %v3751_v2, %v3571_v7 }
 0x1db   : > { %v911_v55 = vmul.f32 %v3764_v45, %v3440_v5  ;;  %v912_v47 = vmul.f32 %v3751_v2, %v3577_v19  ;;  %v913_v17 = vmul.f32 %v3764_v45, %v3443_v8  ;;  %v914_v13 = vmul.f32 %v3751_v2, %v3580_v56 }
 0x1dc   : > { %v915_v61 = vmul.f32 %v3764_v45, %v5523_v36  ;;  %v916_v57 = vmul.f32 %v3751_v2, %v3583_v54  ;;  %v917_v7 = vmul.f32 %v3764_v45, %v5524_v51  ;;  %v918_v5 = vmul.f32 %v3751_v2, %v3586_v21 }
 0x1dd   : > { %v919_v19 = vmul.f32 %v3764_v45, %v5525_v31  ;;  %v920_v8 = vmul.f32 %v3751_v2, %v3589_v33  ;;  %v921_v56 = vmul.f32 %v3764_v45, %v5526_v37  ;;  %v922_v36 = vmul.f32 %v3751_v2, %v3592_v24 }
 0x1de   : > { %v923_v54 = vmul.f32 %v3764_v45, %v5527_v53  ;;  %v924_v51 = vmul.f32 %v3751_v2, %v3595_v43  ;;  %v925_v21 = vmul.f32 %v3764_v45, %v5528_v59  ;;  %v938_v31 = vadd.f32 %v3767_v41, %v863_v60 }
 0x1df   : > { %v939_v48 = vadd.f32 %v3754_v20, %v864_v39  ;;  %v940_v33 = vadd.f32 %v3767_v41, %v865_v28  ;;  %v941_v37 = vadd.f32 %v3754_v20, %v866_v1  ;;  %v943_v38 = vadd.f32 %v3754_v20, %v868_v42 }
 0x1e0   : > { %v3869_v24 = vadd.f32 %v3767_v41, %v895_v34  ;;  %v3872_v53 = vadd.f32 %v3767_v41, %v897_v16  ;;  %v945_v43 = vadd.f32 %v3754_v20, %v870_v58  ;;  %v3876_v59 = vadd.f32 %v3767_v41, %v899_v6 }
 0x1e1   : > { %v3879_v60 = vadd.f32 %v3754_v20, %v900_v40  ;;  %v3882_v39 = vadd.f32 %v3767_v41, %v901_v26  ;;  %v3885_v28 = vadd.f32 %v3754_v20, %v902_v32  ;;  %v3888_v1 = vadd.f32 %v3767_v41, %v903_v27 }
 0x1e2   : > { %v3891_v42 = vadd.f32 %v3754_v20, %v904_v46  ;;  %v3894_v58 = vadd.f32 %v3767_v41, %v905_v50  ;;  %v3897_v34 = vadd.f32 %v3754_v20, %v906_v35  ;;  %v3900_v16 = vadd.f32 %v3767_v41, %v907_v63 }
 0x1e3   : > { %v3903_v6 = vadd.f32 %v3754_v20, %v908_v11  ;;  %v3906_v40 = vadd.f32 %v3767_v41, %v909_v0  ;;  %v3909_v26 = vadd.f32 %v3754_v20, %v910_v23  ;;  %v3912_v32 = vadd.f32 %v3767_v41, %v911_v55 }
 0x1e4   : > { %v3915_v27 = vadd.f32 %v3754_v20, %v912_v47  ;;  %v3918_v46 = vadd.f32 %v3767_v41, %v913_v17  ;;  %v3921_v50 = vadd.f32 %v3754_v20, %v914_v13  ;;  %v3924_v35 = vadd.f32 %v3767_v41, %v915_v61 }
 0x1e5   : > { %v3927_v63 = vadd.f32 %v3754_v20, %v916_v57  ;;  %v3930_v11 = vadd.f32 %v3767_v41, %v917_v7  ;;  %v3933_v0 = vadd.f32 %v3754_v20, %v918_v5  ;;  %v3936_v23 = vadd.f32 %v3767_v41, %v919_v19 }
 0x1e6   : > { %v3939_v55 = vadd.f32 %v3754_v20, %v920_v8  ;;  %v3942_v47 = vadd.f32 %v3767_v41, %v921_v56  ;;  %v3945_v17 = vadd.f32 %v3754_v20, %v922_v36  ;;  %v3948_v13 = vadd.f32 %v3767_v41, %v923_v54 }
 0x1e7   : > { %v3951_v61 = vadd.f32 %v3754_v20, %v924_v51  ;;  %v3954_v57 = vadd.f32 %v3767_v41, %v925_v21  ;;  %v1002_v7 = vmax.f32 %v938_v31, 0.0  ;;  %v1004_v5 = vmax.f32 %v940_v33, 0.0 }
 0x1e8   : > { %v1003_v19 = vmax.f32 %v939_v48, 0.0  ;;  %v1005_v8 = vmax.f32 %v941_v37, 0.0  ;;  %v876_v56 = vmul.f32 %v3751_v2, %v3511_v18  ;;  %v878_v36 = vmul.f32 %v3751_v2, %v3517_v25 }
 0x1e9   : > { %v1007_v10 = vmax.f32 %v943_v38, 0.0  ;;  %v1009_v44 = vmax.f32 %v945_v43, 0.0  ;;  %v1066_v54 = vpack.c.bf16 %v1004_v5, %v1002_v7  ;;  %v942_v51 = vadd.f32 %v3767_v41, %v3779_v22 }
 0x1ea   : > { %v1067_v15 = vpack.c.bf16 %v1005_v8, %v1003_v19  ;;  %v944_v21 = vadd.f32 %v3767_v41, %v3785_v14  ;;  %v947_v31 = vadd.f32 %v3754_v20, %v3795_v3  ;;  %v949_v48 = vadd.f32 %v3754_v20, %v3803_v30  ;;  %v5538_v14 = vld [vmem:[#allocation22_spill] sm:$0xff] }
 0x1eb   : > { %v1069_v18 = vpack.c.bf16 %v1009_v44, %v1007_v10  ;;  %v946_v25 = vadd.f32 %v3767_v41, %v3791_v29  ;;  %v948_v33 = vadd.f32 %v3767_v41, %v3799_v9  ;;  %v951_v37 = vadd.f32 %v3754_v20, %v876_v56 }
 0x1ec   : > { %1322 = vmatprep.mubr.bf16.mxu1 %v1067_v15  ;;  %v953_v22 = vadd.f32 %v3754_v20, %v878_v36  ;;  %v875_v38 = vmul.f32 %v3764_v45, %v5538_v14  ;;  %v877_v3 = vmul.f32 %v3764_v45, %v3380_v52  ;;  %v880_v15 = vmul.f32 %v3751_v2, %v3520_v4  ;;  %v5539_v52 = vld [vmem:[#allocation23_spill] sm:$0xff] }
 0x1ed   : > { %1323 = vmatmul.mubr.bf16.vlgmr.msra.gmra.mrb[32].mxu1 %v1066_v54  ;;  %v882_v44 = vmul.f32 %v3751_v2, %v3523_v12  ;;  %v1006_v10 = vmax.f32 %v942_v51, 0.0  ;;  %v1008_v29 = vmax.f32 %v944_v21, 0.0  ;;  %v1011_v9 = vmax.f32 %v947_v31, 0.0  ;;  %v5540_v4 = vld [vmem:[#allocation3_spill] sm:$0xff] }
 0x1ee   : > { %1332 = vmatprep.mubr.bf16.mxu1 %v1069_v18  ;;  %v1013_v30 = vmax.f32 %v949_v48, 0.0  ;;  %v1010_v43 = vmax.f32 %v946_v25, 0.0  ;;  %v1012_v7 = vmax.f32 %v948_v33, 0.0  ;;  %v1015_v5 = vmax.f32 %v951_v37, 0.0 }
 0x1ef   : > { %v1017_v19 = vmax.f32 %v953_v22, 0.0  ;;  %v3984_v8 = vmul.f32 %v3764_v45, %v3386_v62  ;;  %v3988_v56 = vmul.f32 %v3764_v45, %v5539_v52  ;;  %v3992_v36 = vmul.f32 %v3751_v2, %v5540_v4 }
 0x1f0   : > { %v3995_v12 = vadd.f32 %v3767_v41, %v875_v38  ;;  %v3998_v54 = vadd.f32 %v3767_v41, %v877_v3  ;;  %v4001_v51 = vadd.f32 %v3754_v20, %v880_v15  ;;  %v4004_v62 = vadd.f32 %v3754_v20, %v882_v44 }
 0x1f1   : > { %v1068_v21 = vpack.c.bf16 %v1008_v29, %v1006_v10  ;;  %v1071_v31 = vpack.c.bf16 %v1013_v30, %v1011_v9  ;;  %v1034_v48 = vmax.f32 %v3869_v24, 0.0  ;;  %v1036_v18 = vmax.f32 %v3872_v53, 0.0 }
 0x1f2   : > { %v1039_v25 = vmax.f32 %v3879_v60, 0.0  ;;  %v1070_v33 = vpack.c.bf16 %v1012_v7, %v1010_v43  ;;  %v1073_v37 = vpack.c.bf16 %v1017_v19, %v1015_v5  ;;  %v1041_v22 = vmax.f32 %v3885_v28, 0.0 }
 0x1f3   : > { %v1038_v14 = vmax.f32 %v3876_v59, 0.0  ;;  %v4011_v38 = vpack.c.bf16 %v1036_v18, %v1034_v48  ;;  %v1040_v3 = vmax.f32 %v3882_v39, 0.0  ;;  %v1043_v15 = vmax.f32 %v3891_v42, 0.0 }
 0x1f4   : > { %v1045_v24 = vmax.f32 %v3897_v34, 0.0  ;;  %v4016_v44 = vpack.c.bf16 %v1041_v22, %v1039_v25  ;;  %v1042_v53 = vmax.f32 %v3888_v1, 0.0  ;;  %v1044_v60 = vmax.f32 %v3894_v58, 0.0 }
 0x1f5   : > { %1333 = vmatmul.mubr.bf16.gmra.mrb[36].mxu1 %v1068_v21  ;;  %v1047_v10 = vmax.f32 %v3903_v6, 0.0  ;;  %v4021_v28 = vpack.c.bf16 %v1040_v3, %v1038_v14  ;;  %v1049_v29 = vmax.f32 %v3909_v26, 0.0  ;;  %v1046_v39 = vmax.f32 %v3900_v16, 0.0  ;;  %v5544_v3 = vld [vmem:[#allocation5_spill] sm:$0xff] }
 0x1f6   : > { %1342 = vmatprep.mubr.bf16.mxu1 %v1071_v31  ;;  %v4023_v59 = vpack.c.bf16 %v1045_v24, %v1043_v15  ;;  %v4027_v9 = vpack.c.bf16 %v1044_v60, %v1042_v53  ;;  %v1048_v42 = vmax.f32 %v3906_v40, 0.0  ;;  %v1051_v34 = vmax.f32 %v3915_v27, 0.0  ;;  %v5545_v15 = vld [vmem:[#allocation6_spill] sm:$0xff] }
 0x1f7   : > { %v1053_v1 = vmax.f32 %v3921_v50, 0.0  ;;  %v4032_v30 = vpack.c.bf16 %v1049_v29, %v1047_v10  ;;  %v1050_v58 = vmax.f32 %v3912_v32, 0.0  ;;  %v1052_v6 = vmax.f32 %v3918_v46, 0.0 }
 0x1f8   : > { %v1055_v43 = vmax.f32 %v3927_v63, 0.0  ;;  %v4037_v7 = vpack.c.bf16 %v1048_v42, %v1046_v39  ;;  %v1057_v16 = vmax.f32 %v3933_v0, 0.0  ;;  %v1054_v40 = vmax.f32 %v3924_v35, 0.0 }
 0x1f9   : > { %v4039_v26 = vpack.c.bf16 %v1053_v1, %v1051_v34  ;;  %v4043_v5 = vpack.c.bf16 %v1052_v6, %v1050_v58  ;;  %v1056_v27 = vmax.f32 %v3930_v11, 0.0  ;;  %v1059_v50 = vmax.f32 %v3939_v55, 0.0  ;;  %v5546_v1 = vld [vmem:[#allocation26_spill] sm:$0xff]  ;;  %v5547_v6 = vld [vmem:[#allocation27_spill] sm:$0xff] }
 0x1fa   : > { %v1061_v32 = vmax.f32 %v3945_v17, 0.0  ;;  %v4048_v46 = vpack.c.bf16 %v1057_v16, %v1055_v43  ;;  %v1058_v63 = vmax.f32 %v3936_v23, 0.0  ;;  %v1060_v19 = vmax.f32 %v3942_v47, 0.0  ;;  %v5541_v47 = vld [vmem:[#allocation4_spill] sm:$0xff] }
 0x1fb   : > { %v1063_v52 = vmax.f32 %v3951_v61, 0.0  ;;  %v4053_v0 = vpack.c.bf16 %v1056_v27, %v1054_v40  ;;  %v1065_v11 = vmax.f32 %v3759_v49, 0.0  ;;  %v1062_v55 = vmax.f32 %v3948_v13, 0.0  ;;  %v5548_v27 = vld [vmem:[#allocation7_spill] sm:$0xff] }
 0x1fc   : > { %v4055_v35 = vpack.c.bf16 %v1061_v32, %v1059_v50  ;;  %v1014_v17 = vmax.f32 %v3995_v12, 0.0  ;;  %v1016_v4 = vmax.f32 %v3998_v54, 0.0  ;;  %v4061_v21 = vpack.c.bf16 %v1060_v19, %v1058_v63  ;;  %v5549_v32 = vld [vmem:[#allocation8_spill] sm:$0xff] }
 0x1fd   : > { %1343 = vmatmul.mubr.bf16.gmra.mrb[40].mxu1 %v1070_v33  ;;  %v1064_v23 = vmax.f32 %v3954_v57, 0.0  ;;  %v886_v61 = vmul.f32 %v3751_v2, %v5541_v47  ;;  %v1019_v31 = vmax.f32 %v4001_v51, 0.0  ;;  %v1021_v48 = vmax.f32 %v4004_v62, 0.0  ;;  %v5542_v51 = vld [vmem:[#allocation24_spill] sm:$0xff] }
 0x1fe   : > { %1352 = vmatprep.mubr.bf16.mxu1 %v1073_v37  ;;  %v4068_v18 = vpack.c.bf16 %v1065_v11, %v1063_v52  ;;  %v954_v13 = vadd.f32 %v3767_v41, %v3984_v8  ;;  %v956_v12 = vadd.f32 %v3767_v41, %v3988_v56  ;;  %v1072_v54 = vpack.c.bf16 %v1016_v4, %v1014_v17  ;;  %v5543_v37 = vld [vmem:[#allocation25_spill] sm:$0xff] }
 0x1ff   : > { %v4070_v49 = vpack.c.bf16 %v1064_v23, %v1062_v55  ;;  %v959_v57 = vadd.f32 %v3754_v20, %v3992_v36  ;;  %v961_v25 = vadd.f32 %v3754_v20, %v886_v61  ;;  %v1075_v33 = vpack.c.bf16 %v1021_v48, %v1019_v31  ;;  %v5550_v61 = vld [vmem:[#allocation28_spill] sm:$0xff]  ;;  %v5551_v48 = vld [vmem:[#allocation29_spill] sm:$0xff] }
 0x200   : > { %v883_v62 = vmul.f32 %v3764_v45, %v5542_v51  ;;  %v885_v22 = vmul.f32 %v3764_v45, %v5543_v37  ;;  %v1018_v14 = vmax.f32 %v954_v13, 0.0  ;;  %v1020_v8 = vmax.f32 %v956_v12, 0.0 }
 0x201   : > { %v888_v56 = vmul.f32 %v3751_v2, %v5544_v3  ;;  %v890_v24 = vmul.f32 %v3751_v2, %v5545_v15  ;;  %v1023_v36 = vmax.f32 %v959_v57, 0.0  ;;  %v1025_v53 = vmax.f32 %v961_v25, 0.0  ;;  %v5552_v57 = vld [vmem:[#allocation9_spill] sm:$0xff] }
 0x202   : > { %v958_v60 = vadd.f32 %v3767_v41, %v883_v62  ;;  %v960_v10 = vadd.f32 %v3767_v41, %v885_v22  ;;  %v1074_v29 = vpack.c.bf16 %v1020_v8, %v1018_v14  ;;  %v887_v58 = vmul.f32 %v3764_v45, %v5546_v1 }
 0x203   : > { %v963_v39 = vadd.f32 %v3754_v20, %v888_v56  ;;  %v965_v42 = vadd.f32 %v3754_v20, %v890_v24  ;;  %v1077_v34 = vpack.c.bf16 %v1025_v53, %v1023_v36  ;;  %v889_v43 = vmul.f32 %v3764_v45, %v5547_v6 }
 0x204   : > { %v1022_v16 = vmax.f32 %v958_v60, 0.0  ;;  %v1024_v40 = vmax.f32 %v960_v10, 0.0  ;;  %v892_v50 = vmul.f32 %v3751_v2, %v5548_v27  ;;  %v894_v63 = vmul.f32 %v3751_v2, %v5549_v32 }
 0x205   : > { %1353 = vmatmul.mubr.bf16.gmra.mrb[44].mxu1 %v1072_v54  ;;  %v1027_v19 = vmax.f32 %v963_v39, 0.0  ;;  %v1029_v52 = vmax.f32 %v965_v42, 0.0  ;;  %v962_v11 = vadd.f32 %v3767_v41, %v887_v58  ;;  %v964_v55 = vadd.f32 %v3767_v41, %v889_v43 }
 0x206   : > { %1362 = vmatprep.mubr.bf16.mxu1 %v1075_v33  ;;  %v1076_v17 = vpack.c.bf16 %v1024_v40, %v1022_v16  ;;  %v967_v4 = vadd.f32 %v3754_v20, %v892_v50  ;;  %v969_v23 = vadd.f32 %v3754_v20, %v894_v63  ;;  %v891_v31 = vmul.f32 %v3764_v45, %v5550_v61  ;;  %v5553_v33 = vld [vmem:[#allocation10_spill] sm:$0xff] }
 0x207   : > { %v1079_v47 = vpack.c.bf16 %v1029_v52, %v1027_v19  ;;  %v893_v13 = vmul.f32 %v3764_v45, %v5551_v48  ;;  %v1026_v12 = vmax.f32 %v962_v11, 0.0  ;;  %v1028_v54 = vmax.f32 %v964_v55, 0.0 }
 0x208   : > { %v896_v25 = vmul.f32 %v3751_v2, %v5552_v57  ;;  %v898_v51 = vmul.f32 %v3751_v2, %v5553_v33  ;;  %v1031_v62 = vmax.f32 %v967_v4, 0.0  ;;  %v1033_v37 = vmax.f32 %v969_v23, 0.0 }
 0x209   : > { %v966_v22 = vadd.f32 %v3767_v41, %v891_v31  ;;  %v968_v14 = vadd.f32 %v3767_v41, %v893_v13  ;;  %v1078_v8 = vpack.c.bf16 %v1028_v54, %v1026_v12 }
 0x20a   : > { %v971_v3 = vadd.f32 %v3754_v20, %v896_v25  ;;  %v973_v56 = vadd.f32 %v3754_v20, %v898_v51  ;;  %v1081_v45 = vpack.c.bf16 %v1033_v37, %v1031_v62 }
 0x20b   : > { %v1030_v15 = vmax.f32 %v966_v22, 0.0  ;;  %v1032_v24 = vmax.f32 %v968_v14, 0.0 }
 0x20c   : > { %v1035_v36 = vmax.f32 %v971_v3, 0.0  ;;  %v1037_v53 = vmax.f32 %v973_v56, 0.0 }
 0x20d   : > { %1363 = vmatmul.mubr.bf16.gmra.mrb[48].mxu1 %v1074_v29  ;;  %v1080_v60 = vpack.c.bf16 %v1032_v24, %v1030_v15 }
 0x20e   : > { %1372 = vmatprep.mubr.bf16.mxu1 %v1077_v34  ;;  %v1083_v2 = vpack.c.bf16 %v1037_v53, %v1035_v36 }
 0x215   : > { %1373 = vmatmul.mubr.bf16.gmra.mrb[52].mxu1 %v1076_v17 }
 0x216   : > { %1382 = vmatprep.mubr.bf16.mxu1 %v1079_v47 }
 0x21d   : > { %1383 = vmatmul.mubr.bf16.gmra.mrb[56].mxu1 %v1078_v8 }
 0x21e   : > { %1392 = vmatprep.mubr.bf16.mxu1 %v1081_v45 }
 0x225   : > { %1393 = vmatmul.mubr.bf16.gmra.mrb[60].mxu1 %v1080_v60 }
 0x226   : > { %1402 = vmatprep.mubr.bf16.mxu1 %v1083_v2 }
 0x22d   : > { %1403 = vmatmul.mubr.bf16.gmra.mrb[64].mxu1 %v4011_v38 }
 0x22e   : > { %1412 = vmatprep.mubr.bf16.mxu1 %v4016_v44 }
 0x235   : > { %1413 = vmatmul.mubr.bf16.gmra.mrb[68].mxu1 %v4021_v28 }
 0x236   : > { %1422 = vmatprep.mubr.bf16.mxu1 %v4023_v59 }
 0x23d   : > { %1423 = vmatmul.mubr.bf16.gmra.mrb[72].mxu1 %v4027_v9 }
 0x23e   : > { %1432 = vmatprep.mubr.bf16.mxu1 %v4032_v30 }
 0x245   : > { %1433 = vmatmul.mubr.bf16.gmra.mrb[76].mxu1 %v4037_v7 }
 0x246   : > { %1442 = vmatprep.mubr.bf16.mxu1 %v4039_v26 }
 0x24d   : > { %1443 = vmatmul.mubr.bf16.gmra.mrb[80].mxu1 %v4043_v5 }
 0x24e   : > { %1452 = vmatprep.mubr.bf16.mxu1 %v4048_v46 }
 0x255   : > { %1453 = vmatmul.mubr.bf16.gmra.mrb[84].mxu1 %v4053_v0 }
 0x256   : > { %1462 = vmatprep.mubr.bf16.mxu1 %v4055_v35 }
 0x25d   : > { %1463 = vmatmul.mubr.bf16.gmra.mrb[88].mxu1 %v4061_v21 }
 0x25e   : > { %1472 = vmatprep.mubr.bf16.mxu1 %v4068_v18 }
 0x265   : > { %1473 = vmatmul.mubr.bf16.gmra.mrb[92].mxu1 %v4070_v49 }
 0x2c0   : > { %v4130_v20 = vpop.f32.mrb[32].mxu1 }
 0x2c1   : > { %v4132_v41 = vpop.f32.mrb[33].mxu1 }
 0x2c2   : > { %v4134_v38 = vpop.f32.mrb[34].mxu1 }
 0x2c3   : > { %v1483_v44 = vadd.f32 %v4134_v38, %v4130_v20  ;;  %v4138_v28 = vpop.f32.mrb[35].mxu1 }
 0x2c4   : > { %v1520_v59 = vadd.f32 %v4138_v28, %v4132_v41 }
 0x2c8   : > { %v4142_v9 = vpop.f32.mrb[36].mxu1 }
 0x2c9   : > { %v1484_v30 = vadd.f32 %v1483_v44, %v4142_v9  ;;  %v4145_v7 = vpop.f32.mrb[37].mxu1 }
 0x2ca   : > { %v1521_v26 = vadd.f32 %v1520_v59, %v4145_v7  ;;  %v4148_v5 = vpop.f32.mrb[38].mxu1 }
 0x2cb   : > { %v1485_v46 = vadd.f32 %v1484_v30, %v4148_v5  ;;  %v4151_v0 = vpop.f32.mrb[39].mxu1 }
 0x2cc   : > { %v1522_v35 = vadd.f32 %v1521_v26, %v4151_v0 }
 0x2d0   : > { %v4154_v21 = vpop.f32.mrb[40].mxu1 }
 0x2d1   : > { %v1486_v18 = vadd.f32 %v1485_v46, %v4154_v21  ;;  %v4157_v49 = vpop.f32.mrb[41].mxu1 }
 0x2d2   : > { %v1523_v10 = vadd.f32 %v1522_v35, %v4157_v49  ;;  %v4160_v29 = vpop.f32.mrb[42].mxu1 }
 0x2d3   : > { %v1487_v39 = vadd.f32 %v1486_v18, %v4160_v29  ;;  %v4163_v42 = vpop.f32.mrb[43].mxu1 }
 0x2d4   : > { %v1524_v34 = vadd.f32 %v1523_v10, %v4163_v42 }
 0x2d8   : > { %v4166_v1 = vpop.f32.mrb[44].mxu1 }
 0x2d9   : > { %v1488_v58 = vadd.f32 %v1487_v39, %v4166_v1  ;;  %v4169_v6 = vpop.f32.mrb[45].mxu1 }
 0x2da   : > { %v1525_v43 = vadd.f32 %v1524_v34, %v4169_v6  ;;  %v4172_v16 = vpop.f32.mrb[46].mxu1 }
 0x2db   : > { %v1489_v40 = vadd.f32 %v1488_v58, %v4172_v16  ;;  %v4175_v27 = vpop.f32.mrb[47].mxu1 }
 0x2dc   : > { %v1526_v50 = vadd.f32 %v1525_v43, %v4175_v27 }
 0x2e0   : > { %v4178_v32 = vpop.f32.mrb[48].mxu1 }
 0x2e1   : > { %v1490_v63 = vadd.f32 %v1489_v40, %v4178_v32  ;;  %v4181_v19 = vpop.f32.mrb[49].mxu1 }
 0x2e2   : > { %v1527_v52 = vadd.f32 %v1526_v50, %v4181_v19  ;;  %v4184_v11 = vpop.f32.mrb[50].mxu1 }
 0x2e3   : > { %v1491_v55 = vadd.f32 %v1490_v63, %v4184_v11  ;;  %v4187_v17 = vpop.f32.mrb[51].mxu1 }
 0x2e4   : > { %v1528_v4 = vadd.f32 %v1527_v52, %v4187_v17 }
 0x2e8   : > { %v4190_v23 = vpop.f32.mrb[52].mxu1 }
 0x2e9   : > { %v1492_v47 = vadd.f32 %v1491_v55, %v4190_v23  ;;  %v4193_v61 = vpop.f32.mrb[53].mxu1 }
 0x2ea   : > { %v1529_v31 = vadd.f32 %v1528_v4, %v4193_v61  ;;  %v4196_v48 = vpop.f32.mrb[54].mxu1 }
 0x2eb   : > { %v1493_v13 = vadd.f32 %v1492_v47, %v4196_v48  ;;  %v4199_v12 = vpop.f32.mrb[55].mxu1 }
 0x2ec   : > { %v1530_v54 = vadd.f32 %v1529_v31, %v4199_v12 }
 0x2f0   : > { %v4202_v57 = vpop.f32.mrb[56].mxu1 }
 0x2f1   : > { %v1494_v25 = vadd.f32 %v1493_v13, %v4202_v57  ;;  %v4205_v33 = vpop.f32.mrb[57].mxu1 }
 0x2f2   : > { %v1531_v51 = vadd.f32 %v1530_v54, %v4205_v33  ;;  %v4208_v62 = vpop.f32.mrb[58].mxu1 }
 0x2f3   : > { %v1495_v37 = vadd.f32 %v1494_v25, %v4208_v62  ;;  %v4211_v22 = vpop.f32.mrb[59].mxu1 }
 0x2f4   : > { %v1532_v14 = vadd.f32 %v1531_v51, %v4211_v22 }
 0x2f8   : > { %v4214_v8 = vpop.f32.mrb[60].mxu1 }
 0x2f9   : > { %v1496_v3 = vadd.f32 %v1495_v37, %v4214_v8  ;;  %v4217_v56 = vpop.f32.mrb[61].mxu1 }
 0x2fa   : > { %v1533_v45 = vadd.f32 %v1532_v14, %v4217_v56  ;;  %v4220_v15 = vpop.f32.mrb[62].mxu1 }
 0x2fb   : > { %v1497_v24 = vadd.f32 %v1496_v3, %v4220_v15  ;;  %v4223_v36 = vpop.f32.mrb[63].mxu1 }
 0x2fc   : > { %v1534_v53 = vadd.f32 %v1533_v45, %v4223_v36 }
 0x300   : > { %v4226_v60 = vpop.f32.mrb[64].mxu1 }
 0x301   : > { %v1498_v2 = vadd.f32 %v1497_v24, %v4226_v60  ;;  %v4229_v44 = vpop.f32.mrb[65].mxu1 }
 0x302   : > { %v1535_v59 = vadd.f32 %v1534_v53, %v4229_v44  ;;  %v4232_v30 = vpop.f32.mrb[66].mxu1 }
 0x303   : > { %v1499_v26 = vadd.f32 %v1498_v2, %v4232_v30  ;;  %v4235_v46 = vpop.f32.mrb[67].mxu1 }
 0x304   : > { %v1536_v35 = vadd.f32 %v1535_v59, %v4235_v46 }
 0x308   : > { %v4238_v18 = vpop.f32.mrb[68].mxu1 }
 0x309   : > { %v1500_v10 = vadd.f32 %v1499_v26, %v4238_v18  ;;  %v4241_v39 = vpop.f32.mrb[69].mxu1 }
 0x30a   : > { %5554 = vst [vmem:[#allocation2_spill] sm:$0xff] %v4241_v39  ;;  %v1537_v34 = vadd.f32 %v1536_v35, %v4241_v39  ;;  %v4244_v58 = vpop.f32.mrb[70].mxu1 }
 0x30b   : > { %v1501_v43 = vadd.f32 %v1500_v10, %v4244_v58  ;;  %v4247_v40 = vpop.f32.mrb[71].mxu1 }
 0x30c   : > { %5555 = vst [vmem:[#allocation14_spill] sm:$0xff] %v4247_v40  ;;  %v1538_v50 = vadd.f32 %v1537_v34, %v4247_v40 }
 0x310   : > { %v4250_v63 = vpop.f32.mrb[72].mxu1 }
 0x311   : > { %v1502_v52 = vadd.f32 %v1501_v43, %v4250_v63  ;;  %v4253_v55 = vpop.f32.mrb[73].mxu1 }
 0x312   : > { %5556 = vst [vmem:[#allocation15_spill] sm:$0xff] %v4253_v55  ;;  %v1539_v4 = vadd.f32 %v1538_v50, %v4253_v55  ;;  %v4256_v47 = vpop.f32.mrb[74].mxu1 }
 0x313   : > { %v1503_v31 = vadd.f32 %v1502_v52, %v4256_v47  ;;  %v4259_v13 = vpop.f32.mrb[75].mxu1 }
 0x314   : > { %5557 = vst [vmem:[#allocation30_spill] sm:$0xff] %v4259_v13  ;;  %v1540_v54 = vadd.f32 %v1539_v4, %v4259_v13  ;;  %v2954_v13 = vld [vmem:[%s5372_s3 + $0x24] ss:$8 sps:$4 sm:$0xff]  }
 0x318   : > { %v4262_v25 = vpop.f32.mrb[76].mxu1 }
 0x319   : > { %v1504_v51 = vadd.f32 %v1503_v31, %v4262_v25  ;;  %v4265_v37 = vpop.f32.mrb[77].mxu1 }
 0x31a   : > { %5558 = vst [vmem:[#allocation31_spill] sm:$0xff] %v4265_v37  ;;  %v1541_v14 = vadd.f32 %v1540_v54, %v4265_v37  ;;  %v4268_v3 = vpop.f32.mrb[78].mxu1 }
 0x31b   : > { %v1505_v45 = vadd.f32 %v1504_v51, %v4268_v3  ;;  %v4271_v24 = vpop.f32.mrb[79].mxu1 }
 0x31c   : > { %5559 = vst [vmem:[#allocation32_spill] sm:$0xff] %v4271_v24  ;;  %v1542_v53 = vadd.f32 %v1541_v14, %v4271_v24  ;;  %v2949_v24 = vld [vmem:[%s5372_s3 + $0x10] ss:$8 sps:$4 sm:$0xff]  }
 0x320   : > { %v4274_v2 = vpop.f32.mrb[80].mxu1 }
 0x321   : > { %v1506_v59 = vadd.f32 %v1505_v45, %v4274_v2  ;;  %v4277_v26 = vpop.f32.mrb[81].mxu1 }
 0x322   : > { %5560 = vst [vmem:[#allocation33_spill] sm:$0xff] %v4277_v26  ;;  %v1543_v35 = vadd.f32 %v1542_v53, %v4277_v26  ;;  %v4280_v10 = vpop.f32.mrb[82].mxu1 }
 0x323   : > { %v1507_v34 = vadd.f32 %v1506_v59, %v4280_v10  ;;  %v4283_v43 = vpop.f32.mrb[83].mxu1 }
 0x324   : > { %5561 = vst [vmem:[#allocation34_spill] sm:$0xff] %v4283_v43  ;;  %v1544_v50 = vadd.f32 %v1543_v35, %v4283_v43 }
 0x328   : > { %v4286_v52 = vpop.f32.mrb[84].mxu1 }
 0x329   : > { %v1508_v4 = vadd.f32 %v1507_v34, %v4286_v52  ;;  %v4289_v31 = vpop.f32.mrb[85].mxu1 }
 0x32a   : > { %5562 = vst [vmem:[#allocation35_spill] sm:$0xff] %v4289_v31  ;;  %v1545_v54 = vadd.f32 %v1544_v50, %v4289_v31  ;;  %v4292_v51 = vpop.f32.mrb[86].mxu1 }
 0x32b   : > { %v1509_v14 = vadd.f32 %v1508_v4, %v4292_v51  ;;  %v4295_v45 = vpop.f32.mrb[87].mxu1 }
 0x32c   : > { %5563 = vst [vmem:[#allocation16_spill] sm:$0xff] %v4295_v45  ;;  %v1546_v53 = vadd.f32 %v1545_v54, %v4295_v45  ;;  %v2948_v54 = vld [vmem:[%s5372_s3 + $0x4] ss:$8 sps:$4 sm:$0xff]  }
 0x32d   : > { %2235 = vmatprep.subr.bf16.mxu0 %v2948_v54 }
 0x330   : > { %v4298_v59 = vpop.f32.mrb[88].mxu1 }
 0x331   : > { %v1510_v35 = vadd.f32 %v1509_v14, %v4298_v59  ;;  %v4301_v43 = vpop.f32.mrb[89].mxu1  ;;  %v2946_v14 = vld [vmem:[%s5372_s3] ss:$8 sps:$4 sm:$0xff]  }
 0x332   : > { %5564 = vst [vmem:[#allocation17_spill] sm:$0xff] %v4301_v43  ;;  %v1547_v34 = vadd.f32 %v1546_v53, %v4301_v43  ;;  %v4304_v26 = vpop.f32.mrb[90].mxu1  ;;  %2236 = vmatpush1.bf16.msra.mxu0 %v2946_v14 }
 0x333   : > { %v1511_v50 = vadd.f32 %v1510_v35, %v4304_v26  ;;  %v4307_v31 = vpop.f32.mrb[91].mxu1  ;;  %v2951_v35 = vld [vmem:[%s5372_s3 + $0x14] ss:$8 sps:$4 sm:$0xff]  }
 0x334   : > { %5565 = vst [vmem:[#allocation18_spill] sm:$0xff] %v4307_v31  ;;  %v1548_v4 = vadd.f32 %v1547_v34, %v4307_v31  ;;  %2237 = vmatprep.subr.bf16.mxu0 %v2951_v35  ;;  %v2957_v35 = vld [vmem:[%s5372_s3 + $0x34] ss:$8 sps:$4 sm:$0xff]  }
 0x336   : > { %2238 = vmatpush1.bf16.msra.mxu0 %v2949_v24 }
 0x337   : > { %2239 = vmatprep.subr.bf16.mxu0 %v2954_v13  ;;  %v2960_v13 = vld [vmem:[%s5372_s3 + $0x44] ss:$8 sps:$4 sm:$0xff]  }
 0x338   : > { %v4316_v45 = vpop.f32.mrb[92].mxu1 }
 0x339   : > { %v1512_v53 = vadd.f32 %v1511_v50, %v4316_v45  ;;  %v4319_v43 = vpop.f32.mrb[93].mxu1 }
 0x33a   : > { %5566 = vst [vmem:[#allocation19_spill] sm:$0xff] %v4319_v43  ;;  %v1549_v34 = vadd.f32 %v1548_v4, %v4319_v43  ;;  %v4325_v31 = vpop.f32.mrb[94].mxu1  ;;  %v2952_v43 = vld [vmem:[%s5372_s3 + $0x20] ss:$8 sps:$4 sm:$0xff]  }
 0x33b   : > { %v1513_v54 = vadd.f32 %v1512_v53, %v4325_v31  ;;  %v4331_v37 = vpop.f32.mrb[95].mxu1  ;;  %2240 = vmatpush1.bf16.msra.mxu0 %v2952_v43  ;;  %v2958_v43 = vld [vmem:[%s5372_s3 + $0x40] ss:$8 sps:$4 sm:$0xff]  }
 0x33c   : > { %5567 = vst [vmem:[#allocation20_spill] sm:$0xff] %v4331_v37  ;;  %v1550_v50 = vadd.f32 %v1549_v34, %v4331_v37  ;;  %v2955_v34 = vld [vmem:[%s5372_s3 + $0x30] ss:$8 sps:$4 sm:$0xff]   ;;  %2241 = vmatprep.subr.bf16.mxu0 %v2957_v35 }
 0x33d   : > { %v1514_v14 = vrot.slane %v1513_v54, 4 }
 0x33e   : > { %v1551_v4 = vrot.slane %v1550_v50, 4 }
 0x33f   : > { %v1515_v55 = vadd.f32 %v1514_v14, %v1513_v54  ;;  %2242 = vmatpush1.bf16.msra.mxu0 %v2955_v34 }
 0x340   : > { %v1552_v40 = vadd.f32 %v1551_v4, %v1550_v50  ;;  %2243 = vmatprep.subr.bf16.mxu0 %v2960_v13 }
 0x341   : > { %v1516_v53 = vrot.slane %v1515_v55, 2 }
 0x342   : > { %v1553_v24 = vrot.slane %v1552_v40, 2 }
 0x343   : > { %v1517_v37 = vadd.f32 %v1516_v53, %v1515_v55  ;;  %2244 = vmatpush1.bf16.msra.mxu0 %v2958_v43  ;;  %v2963_v55 = vld [vmem:[%s5372_s3 + $0x54] ss:$8 sps:$4 sm:$0xff]   ;;  %v2961_v53 = vld [vmem:[%s5372_s3 + $0x50] ss:$8 sps:$4 sm:$0xff]  }
 0x344   : > { %v1554_v54 = vadd.f32 %v1553_v24, %v1552_v40  ;;  %2245 = vmatprep.subr.bf16.mxu0 %v2963_v55  ;;  %v2975_v55 = vld [vmem:[%s5372_s3 + $0x94] ss:$8 sps:$4 sm:$0xff]  }
 0x345   : > { %v1518_v39 = vrot.slane %v1517_v37, 1 }
 0x346   : > { %v1555_v4 = vrot.slane %v1554_v54, 1 }
 0x347   : > { %v1519_v50 = vadd.f32 %v1518_v39, %v1517_v37  ;;  %2246 = vmatpush1.bf16.msra.mxu0 %v2961_v53 }
 0x349   : > { %v1557_v14 = vmul.f32 0.00390625, %v1519_v50 }
 0x34b   : > { %v4359_v35 = vsub.f32 %v4130_v20, %v1557_v14  ;;  %v4362_v40 = vsub.f32 %v4134_v38, %v1557_v14  ;;  %v4365_v39 = vsub.f32 %v4142_v9, %v1557_v14  ;;  %v4368_v37 = vsub.f32 %v4148_v5, %v1557_v14 }
 0x34c   : > { %v4371_v24 = vsub.f32 %v4154_v21, %v1557_v14  ;;  %v4374_v34 = vsub.f32 %v4160_v29, %v1557_v14  ;;  %v4377_v13 = vsub.f32 %v4166_v1, %v1557_v14  ;;  %v4380_v20 = vsub.f32 %v4172_v16, %v1557_v14  ;;  %v2966_v29 = vld [vmem:[%s5372_s3 + $0x64] ss:$8 sps:$4 sm:$0xff]  }
 0x34d   : > { %5568 = vst [vmem:[#allocation21_spill] sm:$0xff] %v4359_v35  ;;  %5569 = vst [vmem:[#allocation22_spill] sm:$0xff] %v4362_v40  ;;  %v4383_v38 = vsub.f32 %v4178_v32, %v1557_v14  ;;  %v4386_v9 = vsub.f32 %v4184_v11, %v1557_v14  ;;  %v4389_v5 = vsub.f32 %v4190_v23, %v1557_v14  ;;  %v2964_v23 = vld [vmem:[%s5372_s3 + $0x60] ss:$8 sps:$4 sm:$0xff]   ;;  %2247 = vmatprep.subr.bf16.mxu0 %v2966_v29 }
 0x34e   : > { %5570 = vst [vmem:[#allocation23_spill] sm:$0xff] %v4365_v39  ;;  %5571 = vst [vmem:[#allocation3_spill] sm:$0xff] %v4368_v37  ;;  %v4392_v21 = vsub.f32 %v4196_v48, %v1557_v14  ;;  %v4398_v1 = vsub.f32 %v4202_v57, %v1557_v14  ;;  %v4401_v16 = vsub.f32 %v4208_v62, %v1557_v14  ;;  %2248 = vmatpush1.bf16.msra.mxu0 %v2964_v23 }
 0x34f   : > { %5572 = vst [vmem:[#allocation4_spill] sm:$0xff] %v4371_v24  ;;  %5573 = vst [vmem:[#allocation24_spill] sm:$0xff] %v4374_v34  ;;  %v4404_v32 = vsub.f32 %v4214_v8, %v1557_v14  ;;  %v4407_v11 = vsub.f32 %v4220_v15, %v1557_v14  ;;  %v4413_v48 = vsub.f32 %v4226_v60, %v1557_v14 }
 0x350   : > { %5574 = vst [vmem:[#allocation25_spill] sm:$0xff] %v4377_v13  ;;  %5575 = vst [vmem:[#allocation5_spill] sm:$0xff] %v4386_v9  ;;  %v4416_v43 = vsub.f32 %v4232_v30, %v1557_v14  ;;  %v4419_v57 = vsub.f32 %v4238_v18, %v1557_v14  ;;  %v4422_v62 = vsub.f32 %v4244_v58, %v1557_v14 }
 0x351   : > { %5576 = vst [vmem:[#allocation6_spill] sm:$0xff] %v4389_v5  ;;  %5577 = vst [vmem:[#allocation26_spill] sm:$0xff] %v4392_v21  ;;  %v4425_v8 = vsub.f32 %v4250_v63, %v1557_v14  ;;  %v4428_v15 = vsub.f32 %v4256_v47, %v1557_v14  ;;  %v4431_v50 = vsub.f32 %v4262_v25, %v1557_v14  ;;  %v2969_v47 = vld [vmem:[%s5372_s3 + $0x74] ss:$8 sps:$4 sm:$0xff]  }
 0x352   : > { %5578 = vst [vmem:[#allocation27_spill] sm:$0xff] %v4398_v1  ;;  %5579 = vst [vmem:[#allocation7_spill] sm:$0xff] %v4401_v16  ;;  %v4434_v60 = vsub.f32 %v4268_v3, %v1557_v14  ;;  %v4437_v30 = vsub.f32 %v4274_v2, %v1557_v14  ;;  %v4440_v18 = vsub.f32 %v4280_v10, %v1557_v14  ;;  %2249 = vmatprep.subr.bf16.mxu0 %v2969_v47  ;;  %v2973_v47 = vld [vmem:[%s5372_s3 + $0x90] ss:$8 sps:$4 sm:$0xff]  }
 0x353   : > { %5580 = vst [vmem:[#allocation8_spill] sm:$0xff] %v4404_v32  ;;  %5581 = vst [vmem:[#allocation28_spill] sm:$0xff] %v4407_v11  ;;  %v4443_v58 = vsub.f32 %v4286_v52, %v1557_v14  ;;  %v4446_v63 = vsub.f32 %v4292_v51, %v1557_v14  ;;  %v4452_v25 = vsub.f32 %v4298_v59, %v1557_v14  ;;  %v2967_v52 = vld [vmem:[%s5372_s3 + $0x70] ss:$8 sps:$4 sm:$0xff]   ;;  %v2972_v59 = vld [vmem:[%s5372_s3 + $0x84] ss:$8 sps:$4 sm:$0xff]  }
 0x354   : > { %v4455_v3 = vsub.f32 %v4304_v26, %v1557_v14  ;;  %v4458_v2 = vsub.f32 %v4316_v45, %v1557_v14  ;;  %v4461_v10 = vsub.f32 %v4325_v31, %v1557_v14  ;;  %v1556_v51 = vadd.f32 %v1555_v4, %v1554_v54  ;;  %2250 = vmatpush1.bf16.msra.mxu0 %v2967_v52  ;;  %v2970_v26 = vld [vmem:[%s5372_s3 + $0x80] ss:$8 sps:$4 sm:$0xff]  }
 0x355   : > { %v1623_v45 = vmul.f32 %v4359_v35, %v4359_v35  ;;  %v1625_v31 = vmul.f32 %v4362_v40, %v4362_v40  ;;  %2251 = vmatprep.subr.bf16.mxu0 %v2972_v59  ;;  %v1627_v54 = vmul.f32 %v4365_v39, %v4365_v39  ;;  %v1629_v4 = vmul.f32 %v4368_v37, %v4368_v37 }
 0x356   : > { %5582 = vst [vmem:[#allocation29_spill] sm:$0xff] %v4461_v10  ;;  %v1558_v14 = vmul.f32 0.00390625, %v1556_v51  ;;  %v1631_v53 = vmul.f32 %v4371_v24, %v4371_v24  ;;  %v1633_v29 = vmul.f32 %v4374_v34, %v4374_v34  ;;  %v1635_v23 = vmul.f32 %v4377_v13, %v4377_v13  ;;  %v5607_v10 = vld [vmem:[#allocation18_spill] sm:$0xff] }
 0x357   : > { %v1687_v52 = vadd.f32 %v1625_v31, %v1623_v45 }
 0x358   : > { %2252 = vmatpush1.bf16.msra.mxu0 %v2970_v26  ;;  %v4493_v51 = vsub.f32 %v4132_v41, %v1558_v14  ;;  %v4496_v59 = vsub.f32 %v4138_v28, %v1558_v14  ;;  %v4499_v26 = vsub.f32 %v4145_v7, %v1558_v14  ;;  %v4502_v34 = vsub.f32 %v4151_v0, %v1558_v14 }
 0x359   : > { %2253 = vmatprep.subr.bf16.mxu0 %v2975_v55  ;;  %v4505_v13 = vsub.f32 %v4157_v49, %v1558_v14  ;;  %v4508_v24 = vsub.f32 %v4163_v42, %v1558_v14  ;;  %v4511_v45 = vsub.f32 %v4169_v6, %v1558_v14  ;;  %v1688_v41 = vadd.f32 %v1687_v52, %v1627_v54  ;;  %v2978_v49 = vld [vmem:[%s5372_s3 + $0xa4] ss:$8 sps:$4 sm:$0xff]  }
 0x35a   : > { %v4514_v28 = vsub.f32 %v4175_v27, %v1558_v14  ;;  %v4517_v7 = vsub.f32 %v4181_v19, %v1558_v14  ;;  %v4520_v0 = vsub.f32 %v4187_v17, %v1558_v14  ;;  %v4526_v42 = vsub.f32 %v4193_v61, %v1558_v14  ;;  %v2976_v19 = vld [vmem:[%s5372_s3 + $0xa0] ss:$8 sps:$4 sm:$0xff]  }
 0x35b   : > { %v4529_v6 = vsub.f32 %v4199_v12, %v1558_v14  ;;  %v4532_v31 = vsub.f32 %v4205_v33, %v1558_v14  ;;  %v4535_v27 = vsub.f32 %v4211_v22, %v1558_v14  ;;  %v1689_v17 = vadd.f32 %v1688_v41, %v1629_v4  ;;  %v5591_v22 = vld [vmem:[#allocation2_spill] sm:$0xff]  ;;  %v5593_v4 = vld [vmem:[#allocation15_spill] sm:$0xff] }
 0x35c   : > { %2254 = vmatpush1.bf16.msra.mxu0 %v2973_v47  ;;  %5583 = vst [vmem:[#allocation9_spill] sm:$0xff] %v4526_v42  ;;  %v4541_v54 = vsub.f32 %v4217_v56, %v1558_v14  ;;  %v4544_v61 = vsub.f32 %v4223_v36, %v1558_v14  ;;  %v4547_v12 = vsub.f32 %v4229_v44, %v1558_v14  ;;  %v5592_v47 = vld [vmem:[#allocation14_spill] sm:$0xff]  ;;  %v5595_v44 = vld [vmem:[#allocation31_spill] sm:$0xff] }
 0x35d   : > { %5584 = vst [vmem:[#allocation10_spill] sm:$0xff] %v4529_v6  ;;  %5585 = vst [vmem:[#allocation36_spill] sm:$0xff] %v4532_v31  ;;  %2255 = vmatprep.subr.bf16.mxu0 %v2978_v49  ;;  %v4550_v33 = vsub.f32 %v4235_v46, %v1558_v14  ;;  %v4553_v55 = vsub.f32 %v5591_v22, %v1558_v14  ;;  %v4556_v52 = vsub.f32 %v5592_v47, %v1558_v14  ;;  %v5594_v36 = vld [vmem:[#allocation30_spill] sm:$0xff]  ;;  %v5597_v49 = vld [vmem:[#allocation32_spill] sm:$0xff] }
 0x35e   : > { %5586 = vst [vmem:[#allocation37_spill] sm:$0xff] %v4535_v27  ;;  %5587 = vst [vmem:[#allocation38_spill] sm:$0xff] %v4541_v54  ;;  %v4559_v41 = vsub.f32 %v5593_v4, %v1558_v14  ;;  %v1690_v56 = vadd.f32 %v1689_v17, %v1631_v53  ;;  %v4562_v37 = vsub.f32 %v5594_v36, %v1558_v14  ;;  %v2981_v22 = vld [vmem:[%s5372_s3 + $0xb4] ss:$8 sps:$4 sm:$0xff]   ;;  %v5601_v4 = vld [vmem:[#allocation34_spill] sm:$0xff] }
 0x35f   : > { %5588 = vst [vmem:[#allocation39_spill] sm:$0xff] %v4544_v61  ;;  %5589 = vst [vmem:[#allocation40_spill] sm:$0xff] %v4547_v12  ;;  %v4565_v39 = vsub.f32 %v5595_v44, %v1558_v14  ;;  %v4568_v46 = vsub.f32 %v5597_v49, %v1558_v14  ;;  %v5599_v47 = vld [vmem:[#allocation33_spill] sm:$0xff]  ;;  %v4577_v35 = vsub.f32 %v5601_v4, %v1558_v14  ;;  %v5602_v53 = vld [vmem:[#allocation35_spill] sm:$0xff] }
 0x360   : > { %5590 = vst [vmem:[#allocation41_spill] sm:$0xff] %v4550_v33  ;;  %2256 = vmatpush1.bf16.msra.mxu0 %v2976_v19  ;;  %v4574_v40 = vsub.f32 %v5599_v47, %v1558_v14  ;;  %v4580_v19 = vsub.f32 %v5602_v53, %v1558_v14  ;;  %v5604_v17 = vld [vmem:[#allocation16_spill] sm:$0xff]  ;;  %v1691_v49 = vadd.f32 %v1690_v56, %v1633_v29  ;;  %v2984_v29 = vld [vmem:[%s5372_s3 + $0xc4] ss:$8 sps:$4 sm:$0xff]  }
 0x361   : > { %5596 = vst [vmem:[#allocation2_spill] sm:$0xff] %v4565_v39  ;;  %5598 = vst [vmem:[#allocation14_spill] sm:$0xff] %v4568_v46  ;;  %v4583_v36 = vsub.f32 %v5604_v17, %v1558_v14  ;;  %v2979_v44 = vld [vmem:[%s5372_s3 + $0xb0] ss:$8 sps:$4 sm:$0xff]   ;;  %v4592_v47 = vsub.f32 %v5607_v10, %v1558_v14  ;;  %2257 = vmatprep.subr.bf16.mxu0 %v2981_v22  ;;  %v1637_v17 = vmul.f32 %v4380_v20, %v4380_v20  ;;  %v2982_v10 = vld [vmem:[%s5372_s3 + $0xc0] ss:$8 sps:$4 sm:$0xff]  }
 0x362   : > { %5600 = vst [vmem:[#allocation15_spill] sm:$0xff] %v4574_v40  ;;  %5603 = vst [vmem:[#allocation30_spill] sm:$0xff] %v4580_v19  ;;  %v5606_v46 = vld [vmem:[#allocation17_spill] sm:$0xff]  ;;  %v5608_v40 = vld [vmem:[#allocation19_spill] sm:$0xff]  ;;  %v1626_v22 = vmul.f32 %v4496_v59, %v4496_v59 }
 0x363   : > { %5605 = vst [vmem:[#allocation31_spill] sm:$0xff] %v4583_v36  ;;  %v4589_v39 = vsub.f32 %v5606_v46, %v1558_v14  ;;  %v4595_v4 = vsub.f32 %v5608_v40, %v1558_v14  ;;  %v5609_v53 = vld [vmem:[#allocation20_spill] sm:$0xff]  ;;  %v1692_v36 = vadd.f32 %v1691_v49, %v1635_v23  ;;  %v1639_v40 = vmul.f32 %v4383_v38, %v4383_v38 }
 0x364   : > { %v4598_v19 = vsub.f32 %v5609_v53, %v1558_v14  ;;  %2258 = vmatpush1.bf16.msra.mxu0 %v2979_v44  ;;  %v1641_v14 = vmul.f32 %v4386_v9, %v4386_v9  ;;  %v1624_v23 = vmul.f32 %v4493_v51, %v4493_v51  ;;  %v2987_v44 = vld [vmem:[%s5372_s3 + $0xd4] ss:$8 sps:$4 sm:$0xff]   ;;  %v1643_v49 = vmul.f32 %v4389_v5, %v4389_v5  ;;  %v2988_v9 = vld [vmem:[%s5372_s3 + $0xe0] ss:$8 sps:$4 sm:$0xff]  }
 0x365   : > { %v1693_v56 = vadd.f32 %v1692_v36, %v1637_v17  ;;  %2259 = vmatprep.subr.bf16.mxu0 %v2984_v29  ;;  %v2985_v36 = vld [vmem:[%s5372_s3 + $0xd0] ss:$8 sps:$4 sm:$0xff]   ;;  %v1645_v17 = vmul.f32 %v4392_v21, %v4392_v21  ;;  %v2993_v21 = vld [vmem:[%s5372_s3 + $0xf4] ss:$8 sps:$4 sm:$0xff]  }
 0x367   : > { %v1694_v46 = vadd.f32 %v1693_v56, %v1639_v40  ;;  %v1724_v40 = vadd.f32 %v1626_v22, %v1624_v23  ;;  %v2990_v56 = vld [vmem:[%s5372_s3 + $0xe4] ss:$8 sps:$4 sm:$0xff]   ;;  %v1649_v23 = vmul.f32 %v4401_v16, %v4401_v16 }
 0x368   : > { %2260 = vmatpush1.bf16.msra.mxu0 %v2982_v10  ;;  %v1628_v10 = vmul.f32 %v4499_v26, %v4499_v26 }
 0x369   : > { %v1695_v53 = vadd.f32 %v1694_v46, %v1641_v14  ;;  %2261 = vmatprep.subr.bf16.mxu0 %v2987_v44  ;;  %v1647_v14 = vmul.f32 %v4398_v1, %v4398_v1  ;;  %v1630_v44 = vmul.f32 %v4502_v34, %v4502_v34 }
 0x36b   : > { %v1696_v29 = vadd.f32 %v1695_v53, %v1643_v49  ;;  %v1632_v49 = vmul.f32 %v4505_v13, %v4505_v13 }
 0x36c   : > { %2262 = vmatpush1.bf16.msra.mxu0 %v2985_v36  ;;  %v1725_v36 = vadd.f32 %v1724_v40, %v1628_v10  ;;  %v1634_v10 = vmul.f32 %v4508_v24, %v4508_v24 }
 0x36d   : > { %v1697_v46 = vadd.f32 %v1696_v29, %v1645_v17  ;;  %2263 = vmatprep.subr.bf16.mxu0 %v2990_v56  ;;  %v2991_v17 = vld [vmem:[%s5372_s3 + $0xf0] ss:$8 sps:$4 sm:$0xff]   ;;  %v1651_v29 = vmul.f32 %v4404_v32, %v4404_v32  ;;  %v1653_v56 = vmul.f32 %v4407_v11, %v4407_v11  ;;  %v5613_v32 = vld [vmem:[#allocation15_spill] sm:$0xff] }
 0x36e   : > { %v1726_v53 = vadd.f32 %v1725_v36, %v1630_v44  ;;  %v1655_v36 = vmul.f32 %v4413_v48, %v4413_v48 }
 0x36f   : > { %v1698_v22 = vadd.f32 %v1697_v46, %v1647_v14  ;;  %v1636_v46 = vmul.f32 %v4511_v45, %v4511_v45 }
 0x370   : > { %2264 = vmatpush1.bf16.msra.mxu0 %v2988_v9  ;;  %v1727_v40 = vadd.f32 %v1726_v53, %v1632_v49  ;;  %v1640_v53 = vmul.f32 %v4517_v7, %v4517_v7 }
 0x371   : > { %v1699_v9 = vadd.f32 %v1698_v22, %v1649_v23  ;;  %2265 = vmatprep.subr.bf16.mxu0 %v2993_v21  ;;  %v1638_v23 = vmul.f32 %v4514_v28, %v4514_v28  ;;  %v1657_v21 = vmul.f32 %v4416_v43, %v4416_v43 }
 0x372   : > { %v1728_v44 = vadd.f32 %v1727_v40, %v1634_v10  ;;  %v1642_v10 = vmul.f32 %v4520_v0, %v4520_v0 }
 0x373   : > { %v1700_v14 = vadd.f32 %v1699_v9, %v1651_v29  ;;  %v1659_v29 = vmul.f32 %v4419_v57, %v4419_v57 }
 0x374   : > { %2266 = vmatpush1.bf16.msra.mxu0 %v2991_v17  ;;  %v1729_v22 = vadd.f32 %v1728_v44, %v1636_v46  ;;  %v1644_v46 = vmul.f32 %v4526_v42, %v4526_v42  ;;  %v1663_v44 = vmul.f32 %v4425_v8, %v4425_v8  ;;  %v5616_v42 = vld [vmem:[#allocation11_spill] sm:$0xff] }
 0x375   : > { %v1701_v16 = vadd.f32 %v1700_v14, %v1653_v56  ;;  %v1661_v56 = vmul.f32 %v4422_v62, %v4422_v62 }
 0x376   : > { %v1730_v17 = vadd.f32 %v1729_v22, %v1638_v23  ;;  %v1646_v23 = vmul.f32 %v4529_v6, %v4529_v6 }
 0x377   : > { %v1702_v49 = vadd.f32 %v1701_v16, %v1655_v36 }
 0x378   : > { %v1731_v40 = vadd.f32 %v1730_v17, %v1640_v53  ;;  %v1648_v53 = vmul.f32 %v4532_v31, %v4532_v31 }
 0x379   : > { %v1703_v9 = vadd.f32 %v1702_v49, %v1657_v21  ;;  %v1665_v21 = vmul.f32 %v4428_v15, %v4428_v15 }
 0x37a   : > { %v1732_v16 = vadd.f32 %v1731_v40, %v1642_v10  ;;  %v1650_v10 = vmul.f32 %v4535_v27, %v4535_v27 }
 0x37b   : > { %v1704_v14 = vadd.f32 %v1703_v9, %v1659_v29  ;;  %v1667_v29 = vmul.f32 %v4431_v50, %v4431_v50 }
 0x37c   : > { %v1733_v22 = vadd.f32 %v1732_v16, %v1644_v46  ;;  %v1652_v46 = vmul.f32 %v4541_v54, %v4541_v54 }
 0x37d   : > { %v1705_v36 = vadd.f32 %v1704_v14, %v1661_v56  ;;  %v1669_v56 = vmul.f32 %v4434_v60, %v4434_v60 }
 0x37e   : > { %v1734_v17 = vadd.f32 %v1733_v22, %v1646_v23  ;;  %v1654_v23 = vmul.f32 %v4544_v61, %v4544_v61 }
 0x37f   : > { %v1706_v49 = vadd.f32 %v1705_v36, %v1663_v44  ;;  %v1671_v44 = vmul.f32 %v4437_v30, %v4437_v30 }
 0x380   : > { %v1735_v40 = vadd.f32 %v1734_v17, %v1648_v53  ;;  %v1656_v53 = vmul.f32 %v4547_v12, %v4547_v12  ;;  %v5612_v12 = vld [vmem:[#allocation14_spill] sm:$0xff] }
 0x381   : > { %v1707_v9 = vadd.f32 %v1706_v49, %v1665_v21  ;;  %v1673_v21 = vmul.f32 %v4440_v18, %v4440_v18 }
 0x382   : > { %v1736_v16 = vadd.f32 %v1735_v40, %v1650_v10  ;;  %v1658_v10 = vmul.f32 %v4550_v33, %v4550_v33 }
 0x383   : > { %v1708_v14 = vadd.f32 %v1707_v9, %v1667_v29  ;;  %v1675_v29 = vmul.f32 %v4443_v58, %v4443_v58 }
 0x384   : > { %v1737_v22 = vadd.f32 %v1736_v16, %v1652_v46  ;;  %v1660_v46 = vmul.f32 %v4553_v55, %v4553_v55 }
 0x385   : > { %v1709_v36 = vadd.f32 %v1708_v14, %v1669_v56  ;;  %v1677_v56 = vmul.f32 %v4446_v63, %v4446_v63 }
 0x386   : > { %v1738_v17 = vadd.f32 %v1737_v22, %v1654_v23  ;;  %v1662_v23 = vmul.f32 %v4556_v52, %v4556_v52 }
 0x387   : > { %v1710_v49 = vadd.f32 %v1709_v36, %v1671_v44  ;;  %v1679_v44 = vmul.f32 %v4452_v25, %v4452_v25 }
 0x388   : > { %v1739_v40 = vadd.f32 %v1738_v17, %v1656_v53  ;;  %v1664_v53 = vmul.f32 %v4559_v41, %v4559_v41 }
 0x389   : > { %v1711_v9 = vadd.f32 %v1710_v49, %v1673_v21  ;;  %v1681_v21 = vmul.f32 %v4455_v3, %v4455_v3 }
 0x38a   : > { %v1740_v16 = vadd.f32 %v1739_v40, %v1658_v10  ;;  %v1666_v10 = vmul.f32 %v4562_v37, %v4562_v37 }
 0x38b   : > { %v1712_v14 = vadd.f32 %v1711_v9, %v1675_v29  ;;  %v1683_v29 = vmul.f32 %v4458_v2, %v4458_v2 }
 0x38c   : > { %v1741_v22 = vadd.f32 %v1740_v16, %v1660_v46  ;;  %v5611_v16 = vld [vmem:[#allocation2_spill] sm:$0xff] }
 0x38d   : > { %v1713_v36 = vadd.f32 %v1712_v14, %v1677_v56  ;;  %v5610_v56 = vld [vmem:[#allocation29_spill] sm:$0xff]  ;;  %v1668_v33 = vmul.f32 %v5611_v16, %v5611_v16 }
 0x38e   : > { %v1742_v17 = vadd.f32 %v1741_v22, %v1662_v23  ;;  %v1685_v14 = vmul.f32 %v5610_v56, %v5610_v56  ;;  %v1670_v23 = vmul.f32 %v5612_v12, %v5612_v12 }
 0x38f   : > { %v1714_v49 = vadd.f32 %v1713_v36, %v1679_v44 }
 0x390   : > { %v1743_v40 = vadd.f32 %v1742_v17, %v1664_v53  ;;  %v1674_v53 = vmul.f32 %v4577_v35, %v4577_v35 }
 0x391   : > { %v1715_v9 = vadd.f32 %v1714_v49, %v1681_v21  ;;  %v1672_v21 = vmul.f32 %v5613_v32, %v5613_v32 }
 0x392   : > { %v1744_v44 = vadd.f32 %v1743_v40, %v1666_v10  ;;  %v5615_v10 = vld [vmem:[#allocation31_spill] sm:$0xff] }
 0x393   : > { %v1716_v46 = vadd.f32 %v1715_v9, %v1683_v29  ;;  %v5614_v29 = vld [vmem:[#allocation30_spill] sm:$0xff]  ;;  %v1678_v40 = vmul.f32 %v5615_v10, %v5615_v10 }
 0x394   : > { %v1745_v22 = vadd.f32 %v1744_v44, %v1668_v33  ;;  %v1676_v9 = vmul.f32 %v5614_v29, %v5614_v29  ;;  %v1680_v33 = vmul.f32 %v4589_v39, %v4589_v39 }
 0x395   : > { %v1717_v36 = vadd.f32 %v1716_v46, %v1685_v14 }
 0x396   : > { %v1746_v49 = vadd.f32 %v1745_v22, %v1670_v23  ;;  %v1682_v23 = vmul.f32 %v4592_v47, %v4592_v47 }
 0x397   : > { %v1718_v11 = vrot.slane %v1717_v36, 4 }
 0x398   : > { %v1747_v17 = vadd.f32 %v1746_v49, %v1672_v21  ;;  %v1686_v21 = vmul.f32 %v4598_v19, %v4598_v19 }
 0x399   : > { %v1719_v61 = vadd.f32 %v1718_v11, %v1717_v36  ;;  %v1684_v11 = vmul.f32 %v4595_v4, %v4595_v4 }
 0x39a   : > { %v1748_v54 = vadd.f32 %v1747_v17, %v1674_v53 }
 0x39b   : > { %v1720_v46 = vrot.slane %v1719_v61, 2 }
 0x39c   : > { %v1749_v14 = vadd.f32 %v1748_v54, %v1676_v9 }
 0x39d   : > { %v1721_v1 = vadd.f32 %v1720_v46, %v1719_v61 }
 0x39e   : > { %v1750_v44 = vadd.f32 %v1749_v14, %v1678_v40 }
 0x39f   : > { %v1722_v53 = vrot.slane %v1721_v1, 1 }
 0x3a0   : > { %v1751_v22 = vadd.f32 %v1750_v44, %v1680_v33 }
 0x3a1   : > { %v1723_v9 = vadd.f32 %v1722_v53, %v1721_v1  ;;  %v2794_v1 = vld [vmem:[%s5373_s4 + $0x2] ss:$8 sm:$0x3] }
 0x3a2   : > { %v1752_v36 = vadd.f32 %v1751_v22, %v1682_v23 }
 0x3a3   : > { %v1761_v40 = vmul.f32 0.00390625, %v1723_v9  ;;  %v5619_v9 = vld [vmem:[#allocation21_spill] sm:$0xff] }
 0x3a4   : > { %v1753_v49 = vadd.f32 %v1752_v36, %v1684_v11 }
 0x3a5   : > { %v1763_v6 = vadd.f32 1e-05, %v1761_v40 }
 0x3a6   : > { %v1754_v54 = vadd.f32 %v1753_v49, %v1686_v21 }
 0x3a7   : > { %2998 = vrsqrt.f32 %v1763_v6 }
 0x3a8   : > { %v1755_v17 = vrot.slane %v1754_v54, 4 }
 0x3aa   : > { %v1756_v27 = vadd.f32 %v1755_v17, %v1754_v54  ;;  %v5618_v54 = vld [vmem:[#allocation13_spill] sm:$0xff] }
 0x3ac   : > { %v1757_v31 = vrot.slane %v1756_v27, 2 }
 0x3ae   : > { %v1758_v14 = vadd.f32 %v1757_v31, %v1756_v27  ;;  %v2795_v31 = vld [vmem:[%s5373_s4 + $0x3] ss:$8 sm:$0x3]  ;;  %v5617_v27 = vld [vmem:[#allocation12_spill] sm:$0xff] }
 0x3af   : > { %v4747_v6 = vrot.slane %v2795_v31, %v5617_v27 }
 0x3b0   : > { %v1759_v5 = vrot.slane %v1758_v14, 1 }
 0x3b1   : > { %v2999_v44 = vpop.eup %2998 }
 0x3b2   : > { %v1760_v33 = vadd.f32 %v1759_v5, %v1758_v14 }
 0x3b4   : > { %v1762_v61 = vmul.f32 0.00390625, %v1760_v33  ;;  %v5620_v33 = vld [vmem:[#allocation22_spill] sm:$0xff] }
 0x3b6   : > { %v1764_v46 = vadd.f32 1e-05, %v1762_v61 }
 0x3b8   : > { %3000 = vrsqrt.f32 %v1764_v46  ;;  %v5621_v46 = vld [vmem:[#allocation23_spill] sm:$0xff] }
 0x3c2   : > { %v3001_v23 = vpop.eup %3000 }
 0x3c3   : > { %v1769_v22 = vcombine.low %v2999_v44, %v3001_v23 }
 0x3c5   : > { %v1776_v11 = vrot.slane %v1769_v22, %v5616_v42  ;;  %v5622_v22 = vld [vmem:[#allocation3_spill] sm:$0xff] }
 0x3c7   : > { %v1783_v36 = vrot.slane %v1776_v11, %v5616_v42  ;;  %v4761_v42 = vrot.slane %v2795_v31, %v5618_v54 }
 0x3c9   : > { %v1785_v5 = vmul.f32 %v2794_v1, %v1783_v36  ;;  %v5623_v1 = vld [vmem:[#allocation4_spill] sm:$0xff] }
 0x3cb   : > { %v4750_v21 = vrot.slane %v1785_v5, %v5617_v27  ;;  %v4758_v17 = vrot.slane %v1785_v5, %v5618_v54 }
 0x3cd   : > { %v1860_v49 = vmul.f32 %v4750_v21, %v4598_v19  ;;  %v1797_v40 = vmul.f32 %v4758_v17, %v5619_v9  ;;  %v1798_v14 = vmul.f32 %v4750_v21, %v4493_v51  ;;  %v1799_v61 = vmul.f32 %v4758_v17, %v5620_v33 }
 0x3ce   : > { %v1800_v19 = vmul.f32 %v4750_v21, %v4496_v59  ;;  %v4773_v44 = vmul.f32 %v4758_v17, %v5621_v46  ;;  %v1802_v23 = vmul.f32 %v4750_v21, %v4499_v26  ;;  %v4779_v11 = vmul.f32 %v4758_v17, %v5622_v22 }
 0x3cf   : > { %v4755_v53 = vadd.f32 %v4747_v6, %v1860_v49  ;;  %v1804_v51 = vmul.f32 %v4750_v21, %v4502_v34  ;;  %v4785_v36 = vmul.f32 %v4758_v17, %v5623_v1  ;;  %v4789_v59 = vmul.f32 %v4750_v21, %v4505_v13 }
 0x3d0   : > { %v4793_v31 = vmul.f32 %v4750_v21, %v4508_v24  ;;  %v1829_v26 = vmul.f32 %v4758_v17, %v4413_v48  ;;  %v1831_v5 = vmul.f32 %v4758_v17, %v4416_v43  ;;  %v1833_v34 = vmul.f32 %v4758_v17, %v4419_v57 }
 0x3d1   : > { %v1834_v49 = vmul.f32 %v4750_v21, %v4553_v55  ;;  %v1835_v13 = vmul.f32 %v4758_v17, %v4422_v62  ;;  %v1836_v9 = vmul.f32 %v4750_v21, %v4556_v52  ;;  %v1837_v24 = vmul.f32 %v4758_v17, %v4425_v8 }
 0x3d2   : > { %v1838_v48 = vmul.f32 %v4750_v21, %v4559_v41  ;;  %v1839_v43 = vmul.f32 %v4758_v17, %v4428_v15  ;;  %v1840_v57 = vmul.f32 %v4750_v21, %v4562_v37  ;;  %v1841_v55 = vmul.f32 %v4758_v17, %v4431_v50 }
 0x3d3   : > { %v1842_v62 = vmul.f32 %v4750_v21, %v5611_v16  ;;  %v1843_v52 = vmul.f32 %v4758_v17, %v4434_v60  ;;  %v1844_v8 = vmul.f32 %v4750_v21, %v5612_v12  ;;  %v1845_v41 = vmul.f32 %v4758_v17, %v4437_v30 }
 0x3d4   : > { %v1846_v15 = vmul.f32 %v4750_v21, %v5613_v32  ;;  %v1847_v37 = vmul.f32 %v4758_v17, %v4440_v18  ;;  %v1848_v50 = vmul.f32 %v4750_v21, %v4577_v35  ;;  %v1849_v16 = vmul.f32 %v4758_v17, %v4443_v58 }
 0x3d5   : > { %v1850_v60 = vmul.f32 %v4750_v21, %v5614_v29  ;;  %v1851_v12 = vmul.f32 %v4758_v17, %v4446_v63  ;;  %v1852_v30 = vmul.f32 %v4750_v21, %v5615_v10  ;;  %v1853_v32 = vmul.f32 %v4758_v17, %v4452_v25 }
 0x3d6   : > { %v1854_v18 = vmul.f32 %v4750_v21, %v4589_v39  ;;  %v1855_v35 = vmul.f32 %v4758_v17, %v4455_v3  ;;  %v1856_v58 = vmul.f32 %v4750_v21, %v4592_v47  ;;  %v1857_v29 = vmul.f32 %v4758_v17, %v4458_v2 }
 0x3d7   : > { %v1858_v63 = vmul.f32 %v4750_v21, %v4595_v4  ;;  %v1859_v10 = vmul.f32 %v4758_v17, %v5610_v56  ;;  %v1872_v25 = vadd.f32 %v4761_v42, %v1797_v40  ;;  %v1873_v33 = vadd.f32 %v4747_v6, %v1798_v14 }
 0x3d8   : > { %v1874_v39 = vadd.f32 %v4761_v42, %v1799_v61  ;;  %v1875_v3 = vadd.f32 %v4747_v6, %v1800_v19  ;;  %v1877_v46 = vadd.f32 %v4747_v6, %v1802_v23  ;;  %v4859_v47 = vadd.f32 %v4761_v42, %v1829_v26 }
 0x3d9   : > { %v1879_v2 = vadd.f32 %v4747_v6, %v1804_v51  ;;  %v4863_v4 = vadd.f32 %v4761_v42, %v1831_v5  ;;  %v4866_v56 = vadd.f32 %v4761_v42, %v1833_v34  ;;  %v4869_v40 = vadd.f32 %v4747_v6, %v1834_v49 }
 0x3da   : > { %v4872_v14 = vadd.f32 %v4761_v42, %v1835_v13  ;;  %v4875_v61 = vadd.f32 %v4747_v6, %v1836_v9  ;;  %v4878_v19 = vadd.f32 %v4761_v42, %v1837_v24  ;;  %v4881_v23 = vadd.f32 %v4747_v6, %v1838_v48 }
 0x3db   : > { %v4884_v22 = vadd.f32 %v4761_v42, %v1839_v43  ;;  %v4887_v51 = vadd.f32 %v4747_v6, %v1840_v57  ;;  %v4890_v1 = vadd.f32 %v4761_v42, %v1841_v55  ;;  %v4893_v26 = vadd.f32 %v4747_v6, %v1842_v62 }
 0x3dc   : > { %v4896_v5 = vadd.f32 %v4761_v42, %v1843_v52  ;;  %v4899_v34 = vadd.f32 %v4747_v6, %v1844_v8  ;;  %v4902_v49 = vadd.f32 %v4761_v42, %v1845_v41  ;;  %v4905_v13 = vadd.f32 %v4747_v6, %v1846_v15 }
 0x3dd   : > { %v4908_v9 = vadd.f32 %v4761_v42, %v1847_v37  ;;  %v4911_v24 = vadd.f32 %v4747_v6, %v1848_v50  ;;  %v4914_v48 = vadd.f32 %v4761_v42, %v1849_v16  ;;  %v4917_v43 = vadd.f32 %v4747_v6, %v1850_v60 }
 0x3de   : > { %v4920_v57 = vadd.f32 %v4761_v42, %v1851_v12  ;;  %v4923_v55 = vadd.f32 %v4747_v6, %v1852_v30  ;;  %v4926_v62 = vadd.f32 %v4761_v42, %v1853_v32  ;;  %v4929_v52 = vadd.f32 %v4747_v6, %v1854_v18  ;;  %v5624_v30 = vld [vmem:[#allocation24_spill] sm:$0xff] }
 0x3df   : > { %v4932_v8 = vadd.f32 %v4761_v42, %v1855_v35  ;;  %v4935_v41 = vadd.f32 %v4747_v6, %v1856_v58  ;;  %v4938_v15 = vadd.f32 %v4761_v42, %v1857_v29  ;;  %v4941_v37 = vadd.f32 %v4747_v6, %v1858_v63 }
 0x3e0   : > { %v4944_v50 = vadd.f32 %v4761_v42, %v1859_v10  ;;  %v1936_v16 = vmax.f32 %v1872_v25, 0.0  ;;  %v1938_v60 = vmax.f32 %v1874_v39, 0.0  ;;  %v1937_v12 = vmax.f32 %v1873_v33, 0.0 }
 0x3e1   : > { %v1807_v32 = vmul.f32 %v4758_v17, %v5624_v30  ;;  %v1939_v18 = vmax.f32 %v1875_v3, 0.0  ;;  %v1941_v35 = vmax.f32 %v1877_v46, 0.0  ;;  %v1943_v27 = vmax.f32 %v1879_v2, 0.0  ;;  %v5625_v2 = vld [vmem:[#allocation25_spill] sm:$0xff] }
 0x3e2   : > { %v1810_v58 = vmul.f32 %v4750_v21, %v4511_v45  ;;  %v1812_v29 = vmul.f32 %v4750_v21, %v4514_v28  ;;  %v2000_v63 = vpack.c.bf16 %v1938_v60, %v1936_v16  ;;  %v1876_v10 = vadd.f32 %v4761_v42, %v4773_v44 }
 0x3e3   : > { %v2001_v54 = vpack.c.bf16 %v1939_v18, %v1937_v12  ;;  %v1878_v25 = vadd.f32 %v4761_v42, %v4779_v11  ;;  %v1881_v33 = vadd.f32 %v4747_v6, %v4789_v59  ;;  %v1883_v39 = vadd.f32 %v4747_v6, %v4793_v31 }
 0x3e4   : > { %v1880_v45 = vadd.f32 %v4761_v42, %v4785_v36  ;;  %v1882_v3 = vadd.f32 %v4761_v42, %v1807_v32  ;;  %v2003_v28 = vpack.c.bf16 %v1943_v27, %v1941_v35  ;;  %v1885_v46 = vadd.f32 %v4747_v6, %v1810_v58 }
 0x3e5   : > { %2267 = vmatprep.mubr.bf16.mxu0 %v2001_v54  ;;  %v1887_v44 = vadd.f32 %v4747_v6, %v1812_v29  ;;  %v1809_v11 = vmul.f32 %v4758_v17, %v5625_v2  ;;  %v1811_v59 = vmul.f32 %v4758_v17, %v4380_v20  ;;  %v1814_v31 = vmul.f32 %v4750_v21, %v4517_v7 }
 0x3e6   : > { %2268 = vmatmul.mubr.bf16.vlgmr.msra.gmra.mrb[32].mxu0 %v2000_v63  ;;  %v1816_v36 = vmul.f32 %v4750_v21, %v4520_v0  ;;  %v1940_v54 = vmax.f32 %v1876_v10, 0.0  ;;  %v1942_v27 = vmax.f32 %v1878_v25, 0.0  ;;  %v1945_v16 = vmax.f32 %v1881_v33, 0.0 }
 0x3e7   : > { %2277 = vmatprep.mubr.bf16.mxu0 %v2003_v28  ;;  %v1947_v60 = vmax.f32 %v1883_v39, 0.0  ;;  %v1944_v12 = vmax.f32 %v1880_v45, 0.0  ;;  %v1946_v30 = vmax.f32 %v1882_v3, 0.0  ;;  %v1999_v32 = vmax.f32 %v4755_v53, 0.0 }
 0x3e8   : > { %v1949_v18 = vmax.f32 %v1885_v46, 0.0  ;;  %v1951_v35 = vmax.f32 %v1887_v44, 0.0  ;;  %v4975_v58 = vadd.f32 %v4761_v42, %v1809_v11  ;;  %v4978_v20 = vadd.f32 %v4761_v42, %v1811_v59 }
 0x3e9   : > { %v4981_v7 = vadd.f32 %v4747_v6, %v1814_v31  ;;  %v4984_v0 = vadd.f32 %v4747_v6, %v1816_v36  ;;  %v2002_v29 = vpack.c.bf16 %v1942_v27, %v1940_v54  ;;  %v2005_v63 = vpack.c.bf16 %v1947_v60, %v1945_v16 }
 0x3ea   : > { %v1968_v10 = vmax.f32 %v4859_v47, 0.0  ;;  %v1970_v53 = vmax.f32 %v4863_v4, 0.0  ;;  %v2004_v25 = vpack.c.bf16 %v1946_v30, %v1944_v12  ;;  %v1973_v33 = vmax.f32 %v4869_v40, 0.0 }
 0x3eb   : > { %v1975_v39 = vmax.f32 %v4875_v61, 0.0  ;;  %v1972_v45 = vmax.f32 %v4866_v56, 0.0  ;;  %v2007_v3 = vpack.c.bf16 %v1951_v35, %v1949_v18  ;;  %v1974_v46 = vmax.f32 %v4872_v14, 0.0 }
 0x3ec   : > { %v4991_v28 = vpack.c.bf16 %v1970_v53, %v1968_v10  ;;  %v1977_v44 = vmax.f32 %v4881_v23, 0.0  ;;  %v1979_v47 = vmax.f32 %v4887_v51, 0.0  ;;  %v1976_v4 = vmax.f32 %v4878_v19, 0.0 }
 0x3ed   : > { %v4995_v2 = vpack.c.bf16 %v1975_v39, %v1973_v33  ;;  %v1978_v40 = vmax.f32 %v4884_v22, 0.0  ;;  %v5000_v61 = vpack.c.bf16 %v1974_v46, %v1972_v45  ;;  %v1981_v56 = vmax.f32 %v4893_v26, 0.0  ;;  %v5629_v45 = vld [vmem:[#allocation6_spill] sm:$0xff] }
 0x3ee   : > { %2278 = vmatmul.mubr.bf16.gmra.mrb[36].mxu0 %v2002_v29  ;;  %v1983_v11 = vmax.f32 %v4899_v34, 0.0  ;;  %v1980_v59 = vmax.f32 %v4890_v1, 0.0  ;;  %v5005_v14 = vpack.c.bf16 %v1979_v47, %v1977_v44  ;;  %v1982_v31 = vmax.f32 %v4896_v5, 0.0  ;;  %v5630_v46 = vld [vmem:[#allocation26_spill] sm:$0xff]  ;;  %v5631_v47 = vld [vmem:[#allocation36_spill] sm:$0xff] }
 0x3ef   : > { %2287 = vmatprep.mubr.bf16.mxu0 %v2005_v63  ;;  %v5007_v23 = vpack.c.bf16 %v1978_v40, %v1976_v4  ;;  %v1985_v51 = vmax.f32 %v4905_v13, 0.0  ;;  %v1987_v19 = vmax.f32 %v4911_v24, 0.0  ;;  %v1984_v22 = vmax.f32 %v4902_v49, 0.0  ;;  %v5632_v40 = vld [vmem:[#allocation37_spill] sm:$0xff] }
 0x3f0   : > { %v5011_v36 = vpack.c.bf16 %v1983_v11, %v1981_v56  ;;  %v1986_v26 = vmax.f32 %v4908_v9, 0.0  ;;  %v5016_v54 = vpack.c.bf16 %v1982_v31, %v1980_v59  ;;  %v1989_v1 = vmax.f32 %v4917_v43, 0.0 }
 0x3f1   : > { %v1991_v34 = vmax.f32 %v4923_v55, 0.0  ;;  %v1988_v27 = vmax.f32 %v4914_v48, 0.0  ;;  %v5021_v16 = vpack.c.bf16 %v1987_v19, %v1985_v51  ;;  %v1990_v13 = vmax.f32 %v4920_v57, 0.0 }
 0x3f2   : > { %v5023_v5 = vpack.c.bf16 %v1986_v26, %v1984_v22  ;;  %v1993_v24 = vmax.f32 %v4929_v52, 0.0  ;;  %v1995_v49 = vmax.f32 %v4935_v41, 0.0  ;;  %v1992_v9 = vmax.f32 %v4926_v62, 0.0  ;;  %v5626_v52 = vld [vmem:[#allocation5_spill] sm:$0xff] }
 0x3f3   : > { %v5027_v60 = vpack.c.bf16 %v1991_v34, %v1989_v1  ;;  %v1994_v43 = vmax.f32 %v4932_v8, 0.0  ;;  %v5032_v55 = vpack.c.bf16 %v1990_v13, %v1988_v27  ;;  %v1997_v48 = vmax.f32 %v4941_v37, 0.0  ;;  %v5633_v34 = vld [vmem:[#allocation27_spill] sm:$0xff] }
 0x3f4   : > { %v1996_v12 = vmax.f32 %v4938_v15, 0.0  ;;  %v1998_v30 = vmax.f32 %v4944_v50, 0.0  ;;  %v1813_v57 = vmul.f32 %v4758_v17, %v4383_v38  ;;  %v1815_v18 = vmul.f32 %v4758_v17, %v5626_v52  ;;  %v5627_v50 = vld [vmem:[#allocation9_spill] sm:$0xff]  ;;  %v5628_v38 = vld [vmem:[#allocation10_spill] sm:$0xff]  ;;  %v5634_v13 = vld [vmem:[#allocation7_spill] sm:$0xff] }
 0x3f5   : > { %v5041_v41 = vpack.c.bf16 %v1995_v49, %v1993_v24  ;;  %v5043_v62 = vpack.c.bf16 %v1994_v43, %v1992_v9  ;;  %v1948_v8 = vmax.f32 %v4975_v58, 0.0  ;;  %v1950_v35 = vmax.f32 %v4978_v20, 0.0  ;;  %v5635_v43 = vld [vmem:[#allocation38_spill] sm:$0xff] }
 0x3f6   : > { %2288 = vmatmul.mubr.bf16.gmra.mrb[40].mxu0 %v2004_v25  ;;  %v5047_v37 = vpack.c.bf16 %v1999_v32, %v1997_v48  ;;  %v5049_v15 = vpack.c.bf16 %v1998_v30, %v1996_v12  ;;  %v1818_v29 = vmul.f32 %v4750_v21, %v5627_v50  ;;  %v1820_v63 = vmul.f32 %v4750_v21, %v5628_v38  ;;  %v5636_v12 = vld [vmem:[#allocation39_spill] sm:$0xff] }
 0x3f7   : > { %2297 = vmatprep.mubr.bf16.mxu0 %v2007_v3  ;;  %v1953_v10 = vmax.f32 %v4981_v7, 0.0  ;;  %v1955_v53 = vmax.f32 %v4984_v0, 0.0  ;;  %v1888_v25 = vadd.f32 %v4761_v42, %v1813_v57  ;;  %v1890_v58 = vadd.f32 %v4761_v42, %v1815_v18 }
 0x3f8   : > { %v2006_v33 = vpack.c.bf16 %v1950_v35, %v1948_v8  ;;  %v1893_v32 = vadd.f32 %v4747_v6, %v1818_v29  ;;  %v1895_v20 = vadd.f32 %v4747_v6, %v1820_v63  ;;  %v1817_v3 = vmul.f32 %v4758_v17, %v5629_v45  ;;  %v5637_v63 = vld [vmem:[#allocation8_spill] sm:$0xff] }
 0x3f9   : > { %v2009_v39 = vpack.c.bf16 %v1955_v53, %v1953_v10  ;;  %v1819_v7 = vmul.f32 %v4758_v17, %v5630_v46  ;;  %v1952_v44 = vmax.f32 %v1888_v25, 0.0  ;;  %v1954_v0 = vmax.f32 %v1890_v58, 0.0  ;;  %v5638_v53 = vld [vmem:[#allocation28_spill] sm:$0xff] }
 0x3fa   : > { %v1822_v4 = vmul.f32 %v4750_v21, %v5631_v47  ;;  %v1824_v56 = vmul.f32 %v4750_v21, %v5632_v40  ;;  %v1957_v11 = vmax.f32 %v1893_v32, 0.0  ;;  %v1959_v59 = vmax.f32 %v1895_v20, 0.0  ;;  %v5639_v32 = vld [vmem:[#allocation40_spill] sm:$0xff] }
 0x3fb   : > { %v1892_v31 = vadd.f32 %v4761_v42, %v1817_v3  ;;  %v1894_v51 = vadd.f32 %v4761_v42, %v1819_v7  ;;  %v2008_v19 = vpack.c.bf16 %v1954_v0, %v1952_v44  ;;  %v1821_v27 = vmul.f32 %v4758_v17, %v5633_v34 }
 0x3fc   : > { %v1897_v22 = vadd.f32 %v4747_v6, %v1822_v4  ;;  %v1899_v26 = vadd.f32 %v4747_v6, %v1824_v56  ;;  %v2011_v1 = vpack.c.bf16 %v1959_v59, %v1957_v11  ;;  %v1823_v24 = vmul.f32 %v4758_v17, %v5634_v13 }
 0x3fd   : > { %v1956_v49 = vmax.f32 %v1892_v31, 0.0  ;;  %v1958_v9 = vmax.f32 %v1894_v51, 0.0  ;;  %v1826_v48 = vmul.f32 %v4750_v21, %v5635_v43  ;;  %v1828_v30 = vmul.f32 %v4750_v21, %v5636_v12 }
 0x3fe   : > { %2298 = vmatmul.mubr.bf16.gmra.mrb[44].mxu0 %v2006_v33  ;;  %v1961_v57 = vmax.f32 %v1897_v22, 0.0  ;;  %v1963_v52 = vmax.f32 %v1899_v26, 0.0  ;;  %v1896_v18 = vadd.f32 %v4761_v42, %v1821_v27  ;;  %v1898_v8 = vadd.f32 %v4761_v42, %v1823_v24 }
 0x3ff   : > { %2307 = vmatprep.mubr.bf16.mxu0 %v2009_v39  ;;  %v2010_v35 = vpack.c.bf16 %v1958_v9, %v1956_v49  ;;  %v1901_v50 = vadd.f32 %v4747_v6, %v1826_v48  ;;  %v1903_v29 = vadd.f32 %v4747_v6, %v1828_v30  ;;  %v1825_v10 = vmul.f32 %v4758_v17, %v5637_v63  ;;  %v5640_v39 = vld [vmem:[#allocation41_spill] sm:$0xff] }
 0x400   : > { %v2013_v38 = vpack.c.bf16 %v1963_v52, %v1961_v57  ;;  %v1827_v25 = vmul.f32 %v4758_v17, %v5638_v53  ;;  %v1960_v58 = vmax.f32 %v1896_v18, 0.0  ;;  %v1962_v33 = vmax.f32 %v1898_v8, 0.0 }
 0x401   : > { %v1830_v20 = vmul.f32 %v4750_v21, %v5639_v32  ;;  %v1832_v45 = vmul.f32 %v4750_v21, %v5640_v39  ;;  %v1965_v3 = vmax.f32 %v1901_v50, 0.0  ;;  %v1967_v46 = vmax.f32 %v1903_v29, 0.0 }
 0x402   : > { %v1900_v7 = vadd.f32 %v4761_v42, %v1825_v10  ;;  %v1902_v44 = vadd.f32 %v4761_v42, %v1827_v25  ;;  %v2012_v0 = vpack.c.bf16 %v1962_v33, %v1960_v58  ;;  %v5641_v42 = vld [vmem:[#allocation13_spill] sm:$0xff] }
 0x403   : > { %v1905_v47 = vadd.f32 %v4747_v6, %v1830_v20  ;;  %v1907_v4 = vadd.f32 %v4747_v6, %v1832_v45  ;;  %v2015_v17 = vpack.c.bf16 %v1967_v46, %v1965_v3  ;;  %v2796_v6 = vld [vmem:[%s5373_s4 + $0x4] ss:$8 sm:$0x3] }
 0x404   : > { %v1964_v40 = vmax.f32 %v1900_v7, 0.0  ;;  %v1966_v56 = vmax.f32 %v1902_v44, 0.0 }
 0x405   : > { %v1969_v11 = vmax.f32 %v1905_v47, 0.0  ;;  %v1971_v59 = vmax.f32 %v1907_v4, 0.0 }
 0x406   : > { %2308 = vmatmul.mubr.bf16.gmra.mrb[48].mxu0 %v2008_v19  ;;  %v2014_v31 = vpack.c.bf16 %v1966_v56, %v1964_v40 }
 0x407   : > { %2317 = vmatprep.mubr.bf16.mxu0 %v2011_v1  ;;  %v2017_v21 = vpack.c.bf16 %v1971_v59, %v1969_v11 }
 0x40e   : > { %2318 = vmatmul.mubr.bf16.gmra.mrb[52].mxu0 %v2010_v35 }
 0x40f   : > { %2327 = vmatprep.mubr.bf16.mxu0 %v2013_v38 }
 0x416   : > { %2328 = vmatmul.mubr.bf16.gmra.mrb[56].mxu0 %v2012_v0 }
 0x417   : > { %2337 = vmatprep.mubr.bf16.mxu0 %v2015_v17 }
 0x41e   : > { %2338 = vmatmul.mubr.bf16.gmra.mrb[60].mxu0 %v2014_v31 }
 0x41f   : > { %2347 = vmatprep.mubr.bf16.mxu0 %v2017_v21 }
 0x426   : > { %2348 = vmatmul.mubr.bf16.gmra.mrb[64].mxu0 %v4991_v28  ;;  %v5116_v28 = vrot.slane %v2796_v6, %v5641_v42 }
 0x427   : > { %2357 = vmatprep.mubr.bf16.mxu0 %v4995_v2  ;;  %v2797_v2 = vld [vmem:[%s5373_s4 + $0x5] ss:$8 sm:$0x3] }
 0x42e   : > { %2358 = vmatmul.mubr.bf16.gmra.mrb[68].mxu0 %v5000_v61  ;;  %v5642_v61 = vld [vmem:[#allocation12_spill] sm:$0xff] }
 0x42f   : > { %2367 = vmatprep.mubr.bf16.mxu0 %v5005_v14  ;;  %v5122_v14 = vrot.slane %v2796_v6, %v5642_v61 }
 0x436   : > { %2368 = vmatmul.mubr.bf16.gmra.mrb[72].mxu0 %v5007_v23 }
 0x437   : > { %2377 = vmatprep.mubr.bf16.mxu0 %v5011_v36  ;;  %v5125_v36 = vrot.slane %v2797_v2, %v5641_v42 }
 0x43e   : > { %2378 = vmatmul.mubr.bf16.gmra.mrb[76].mxu0 %v5016_v54 }
 0x43f   : > { %2387 = vmatprep.mubr.bf16.mxu0 %v5021_v16 }
 0x446   : > { %2388 = vmatmul.mubr.bf16.gmra.mrb[80].mxu0 %v5023_v5  ;;  %v5129_v5 = vrot.slane %v2797_v2, %v5642_v61 }
 0x447   : > { %2397 = vmatprep.mubr.bf16.mxu0 %v5027_v60 }
 0x44e   : > { %2398 = vmatmul.mubr.bf16.gmra.mrb[84].mxu0 %v5032_v55 }
 0x44f   : > { %2407 = vmatprep.mubr.bf16.mxu0 %v5041_v41 }
 0x456   : > { %2408 = vmatmul.mubr.bf16.gmra.mrb[88].mxu0 %v5043_v62 }
 0x457   : > { %2417 = vmatprep.mubr.bf16.mxu0 %v5047_v37 }
 0x45e   : > { %2418 = vmatmul.mubr.bf16.gmra.mrb[92].mxu0 %v5049_v15 }
 0x4b9   : > { %v2269_v23 = vpop.f32.mrb[32].mxu0 }
 0x4ba   : > { %v2270_v54 = vadd.f32 %v2269_v23, %v5116_v28  ;;  %v2271_v16 = vpop.f32.mrb[33].mxu0 }
 0x4bb   : > { %v2272_v60 = vadd.f32 %v2271_v16, %v5122_v14  ;;  %v2273_v55 = vpop.f32.mrb[34].mxu0 }
 0x4bc   : > { %v2428_v41 = vmax.f32 %v2270_v54, 0.0  ;;  %v2274_v62 = vadd.f32 %v2273_v55, %v5116_v28  ;;  %v2275_v37 = vpop.f32.mrb[35].mxu0 }
 0x4bd   : > { %v2429_v15 = vmax.f32 %v2272_v60, 0.0  ;;  %v2276_v51 = vadd.f32 %v2275_v37, %v5122_v14 }
 0x4be   : > { %v2430_v19 = vmax.f32 %v2274_v62, 0.0  ;;  %v2503_v22 = vmul.f32 %v5125_v36, %v2428_v41 }
 0x4bf   : > { %v2431_v26 = vmax.f32 %v2276_v51, 0.0  ;;  %v2504_v1 = vmul.f32 %v5129_v5, %v2429_v15 }
 0x4c0   : > { %v2505_v34 = vmul.f32 %v5125_v36, %v2430_v19 }
 0x4c1   : > { %v2506_v27 = vmul.f32 %v5129_v5, %v2431_v26  ;;  %v2279_v13 = vpop.f32.mrb[36].mxu0  ;;  %v2567_v24 = vadd.f32 %v2504_v1, %v2503_v22 }
 0x4c2   : > { %v2280_v49 = vadd.f32 %v2279_v13, %v5116_v28  ;;  %v2281_v9 = vpop.f32.mrb[37].mxu0 }
 0x4c3   : > { %v2282_v43 = vadd.f32 %v2281_v9, %v5122_v14  ;;  %v2283_v48 = vpop.f32.mrb[38].mxu0  ;;  %2568 = vadd.xlane.f32.xlu0 %v2567_v24  ;;  %v2570_v12 = vadd.f32 %v2506_v27, %v2505_v34 }
 0x4c4   : > { %v2432_v30 = vmax.f32 %v2280_v49, 0.0  ;;  %v2284_v57 = vadd.f32 %v2283_v48, %v5116_v28  ;;  %v2285_v52 = vpop.f32.mrb[39].mxu0 }
 0x4c5   : > { %v2433_v18 = vmax.f32 %v2282_v43, 0.0  ;;  %v2286_v8 = vadd.f32 %v2285_v52, %v5122_v14 }
 0x4c6   : > { %v2434_v35 = vmax.f32 %v2284_v57, 0.0  ;;  %v2507_v50 = vmul.f32 %v5125_v36, %v2432_v30 }
 0x4c7   : > { %v2435_v29 = vmax.f32 %v2286_v8, 0.0  ;;  %2571 = vadd.xlane.f32.xlu0 %v2570_v12  ;;  %v2508_v38 = vmul.f32 %v5129_v5, %v2433_v18 }
 0x4c8   : > { %v2509_v63 = vmul.f32 %v5125_v36, %v2434_v35 }
 0x4c9   : > { %v2510_v10 = vmul.f32 %v5129_v5, %v2435_v29  ;;  %v2289_v53 = vpop.f32.mrb[40].mxu0  ;;  %v2573_v25 = vadd.f32 %v2508_v38, %v2507_v50 }
 0x4ca   : > { %v2290_v58 = vadd.f32 %v2289_v53, %v5116_v28  ;;  %v2291_v33 = vpop.f32.mrb[41].mxu0 }
 0x4cb   : > { %v2292_v32 = vadd.f32 %v2291_v33, %v5122_v14  ;;  %v2293_v20 = vpop.f32.mrb[42].mxu0  ;;  %2574 = vadd.xlane.f32.xlu1 %v2573_v25  ;;  %v2576_v39 = vadd.f32 %v2510_v10, %v2509_v63 }
 0x4cc   : > { %v2436_v45 = vmax.f32 %v2290_v58, 0.0  ;;  %v2294_v3 = vadd.f32 %v2293_v20, %v5116_v28  ;;  %v2295_v46 = vpop.f32.mrb[43].mxu0 }
 0x4cd   : > { %v2437_v7 = vmax.f32 %v2292_v32, 0.0  ;;  %v2296_v44 = vadd.f32 %v2295_v46, %v5122_v14 }
 0x4ce   : > { %v2511_v0 = vmul.f32 %v5125_v36, %v2436_v45  ;;  %v2438_v47 = vmax.f32 %v2294_v3, 0.0 }
 0x4cf   : > { %v2512_v4 = vmul.f32 %v5129_v5, %v2437_v7  ;;  %v2439_v17 = vmax.f32 %v2296_v44, 0.0  ;;  %2577 = vadd.xlane.f32.xlu1 %v2576_v39 }
 0x4d0   : > { %v2513_v40 = vmul.f32 %v5125_v36, %v2438_v47 }
 0x4d1   : > { %v2514_v56 = vmul.f32 %v5129_v5, %v2439_v17  ;;  %v2299_v11 = vpop.f32.mrb[44].mxu0  ;;  %v2579_v59 = vadd.f32 %v2512_v4, %v2511_v0 }
 0x4d2   : > { %v2300_v31 = vadd.f32 %v2299_v11, %v5116_v28  ;;  %v2301_v21 = vpop.f32.mrb[45].mxu0 }
 0x4d3   : > { %v2302_v6 = vadd.f32 %v2301_v21, %v5122_v14  ;;  %v2303_v42 = vpop.f32.mrb[46].mxu0  ;;  %2580 = vadd.xlane.f32.xlu0 %v2579_v59  ;;  %v2582_v2 = vadd.f32 %v2514_v56, %v2513_v40 }
 0x4d4   : > { %v2440_v61 = vmax.f32 %v2300_v31, 0.0  ;;  %v2304_v23 = vadd.f32 %v2303_v42, %v5116_v28  ;;  %v2305_v54 = vpop.f32.mrb[47].mxu0 }
 0x4d5   : > { %v2441_v16 = vmax.f32 %v2302_v6, 0.0  ;;  %v2306_v60 = vadd.f32 %v2305_v54, %v5122_v14  ;;  %2583 = vadd.xlane.f32.xlu1 %v2582_v2 }
 0x4d6   : > { %v2515_v55 = vmul.f32 %v5125_v36, %v2440_v61  ;;  %v2442_v41 = vmax.f32 %v2304_v23, 0.0 }
 0x4d7   : > { %v2516_v62 = vmul.f32 %v5129_v5, %v2441_v16  ;;  %v2443_v37 = vmax.f32 %v2306_v60, 0.0 }
 0x4d8   : > { %v2517_v15 = vmul.f32 %v5125_v36, %v2442_v41 }
 0x4d9   : > { %v2518_v51 = vmul.f32 %v5129_v5, %v2443_v37  ;;  %v2309_v19 = vpop.f32.mrb[48].mxu0  ;;  %v2585_v22 = vadd.f32 %v2516_v62, %v2515_v55 }
 0x4da   : > { %v2310_v26 = vadd.f32 %v2309_v19, %v5116_v28  ;;  %v2311_v1 = vpop.f32.mrb[49].mxu0 }
 0x4db   : > { %v2312_v34 = vadd.f32 %v2311_v1, %v5122_v14  ;;  %v2313_v27 = vpop.f32.mrb[50].mxu0  ;;  %2586 = vadd.xlane.f32.xlu0 %v2585_v22  ;;  %v2588_v13 = vadd.f32 %v2518_v51, %v2517_v15 }
 0x4dc   : > { %v2444_v24 = vmax.f32 %v2310_v26, 0.0  ;;  %v2314_v49 = vadd.f32 %v2313_v27, %v5116_v28  ;;  %v2315_v9 = vpop.f32.mrb[51].mxu0 }
 0x4dd   : > { %v2445_v43 = vmax.f32 %v2312_v34, 0.0  ;;  %v2316_v48 = vadd.f32 %v2315_v9, %v5122_v14  ;;  %2589 = vadd.xlane.f32.xlu1 %v2588_v13 }
 0x4de   : > { %v2519_v12 = vmul.f32 %v5125_v36, %v2444_v24  ;;  %v2446_v30 = vmax.f32 %v2314_v49, 0.0 }
 0x4df   : > { %v2520_v57 = vmul.f32 %v5129_v5, %v2445_v43  ;;  %v2447_v52 = vmax.f32 %v2316_v48, 0.0 }
 0x4e0   : > { %v2521_v18 = vmul.f32 %v5125_v36, %v2446_v30 }
 0x4e1   : > { %v2522_v8 = vmul.f32 %v5129_v5, %v2447_v52  ;;  %v2319_v35 = vpop.f32.mrb[52].mxu0  ;;  %v2591_v50 = vadd.f32 %v2520_v57, %v2519_v12 }
 0x4e2   : > { %v2320_v29 = vadd.f32 %v2319_v35, %v5116_v28  ;;  %v2321_v38 = vpop.f32.mrb[53].mxu0 }
 0x4e3   : > { %v2322_v63 = vadd.f32 %v2321_v38, %v5122_v14  ;;  %v2323_v10 = vpop.f32.mrb[54].mxu0  ;;  %2592 = vadd.xlane.f32.xlu0 %v2591_v50  ;;  %v2594_v53 = vadd.f32 %v2522_v8, %v2521_v18 }
 0x4e4   : > { %v2448_v25 = vmax.f32 %v2320_v29, 0.0  ;;  %v2324_v58 = vadd.f32 %v2323_v10, %v5116_v28  ;;  %v2325_v33 = vpop.f32.mrb[55].mxu0 }
 0x4e5   : > { %v2449_v32 = vmax.f32 %v2322_v63, 0.0  ;;  %v2326_v20 = vadd.f32 %v2325_v33, %v5122_v14  ;;  %2595 = vadd.xlane.f32.xlu1 %v2594_v53 }
 0x4e6   : > { %v2523_v39 = vmul.f32 %v5125_v36, %v2448_v25  ;;  %v2450_v45 = vmax.f32 %v2324_v58, 0.0 }
 0x4e7   : > { %v2524_v3 = vmul.f32 %v5129_v5, %v2449_v32  ;;  %v2451_v46 = vmax.f32 %v2326_v20, 0.0 }
 0x4e8   : > { %v2525_v7 = vmul.f32 %v5125_v36, %v2450_v45 }
 0x4e9   : > { %v2526_v44 = vmul.f32 %v5129_v5, %v2451_v46  ;;  %v2329_v0 = vpop.f32.mrb[56].mxu0  ;;  %v2597_v47 = vadd.f32 %v2524_v3, %v2523_v39 }
 0x4ea   : > { %v2330_v4 = vadd.f32 %v2329_v0, %v5116_v28  ;;  %v2331_v17 = vpop.f32.mrb[57].mxu0 }
 0x4eb   : > { %v2332_v40 = vadd.f32 %v2331_v17, %v5122_v14  ;;  %v2333_v56 = vpop.f32.mrb[58].mxu0  ;;  %2598 = vadd.xlane.f32.xlu0 %v2597_v47  ;;  %v2600_v11 = vadd.f32 %v2526_v44, %v2525_v7 }
 0x4ec   : > { %v2452_v59 = vmax.f32 %v2330_v4, 0.0  ;;  %v2334_v31 = vadd.f32 %v2333_v56, %v5116_v28  ;;  %v2335_v21 = vpop.f32.mrb[59].mxu0 }
 0x4ed   : > { %v2453_v6 = vmax.f32 %v2332_v40, 0.0  ;;  %v2336_v42 = vadd.f32 %v2335_v21, %v5122_v14  ;;  %2601 = vadd.xlane.f32.xlu1 %v2600_v11 }
 0x4ee   : > { %v2527_v2 = vmul.f32 %v5125_v36, %v2452_v59  ;;  %v2454_v61 = vmax.f32 %v2334_v31, 0.0 }
 0x4ef   : > { %v2528_v23 = vmul.f32 %v5129_v5, %v2453_v6  ;;  %v2455_v54 = vmax.f32 %v2336_v42, 0.0 }
 0x4f0   : > { %v2529_v16 = vmul.f32 %v5125_v36, %v2454_v61 }
 0x4f1   : > { %v2530_v60 = vmul.f32 %v5129_v5, %v2455_v54  ;;  %v2339_v55 = vpop.f32.mrb[60].mxu0  ;;  %v2603_v41 = vadd.f32 %v2528_v23, %v2527_v2 }
 0x4f2   : > { %v2340_v62 = vadd.f32 %v2339_v55, %v5116_v28  ;;  %v2341_v37 = vpop.f32.mrb[61].mxu0 }
 0x4f3   : > { %v2342_v15 = vadd.f32 %v2341_v37, %v5122_v14  ;;  %v2343_v51 = vpop.f32.mrb[62].mxu0  ;;  %2604 = vadd.xlane.f32.xlu0 %v2603_v41  ;;  %v2606_v19 = vadd.f32 %v2530_v60, %v2529_v16 }
 0x4f4   : > { %v2456_v22 = vmax.f32 %v2340_v62, 0.0  ;;  %v2344_v26 = vadd.f32 %v2343_v51, %v5116_v28  ;;  %v2345_v1 = vpop.f32.mrb[63].mxu0 }
 0x4f5   : > { %v2457_v34 = vmax.f32 %v2342_v15, 0.0  ;;  %v2346_v27 = vadd.f32 %v2345_v1, %v5122_v14  ;;  %2607 = vadd.xlane.f32.xlu1 %v2606_v19 }
 0x4f6   : > { %v2531_v13 = vmul.f32 %v5125_v36, %v2456_v22  ;;  %v2458_v24 = vmax.f32 %v2344_v26, 0.0 }
 0x4f7   : > { %v2532_v49 = vmul.f32 %v5129_v5, %v2457_v34  ;;  %v2459_v9 = vmax.f32 %v2346_v27, 0.0 }
 0x4f8   : > { %v2533_v43 = vmul.f32 %v5125_v36, %v2458_v24 }
 0x4f9   : > { %v2534_v48 = vmul.f32 %v5129_v5, %v2459_v9  ;;  %v2349_v12 = vpop.f32.mrb[64].mxu0  ;;  %v2609_v30 = vadd.f32 %v2532_v49, %v2531_v13 }
 0x4fa   : > { %v2350_v57 = vadd.f32 %v2349_v12, %v5116_v28  ;;  %v2351_v52 = vpop.f32.mrb[65].mxu0 }
 0x4fb   : > { %v2352_v18 = vadd.f32 %v2351_v52, %v5122_v14  ;;  %v2353_v8 = vpop.f32.mrb[66].mxu0  ;;  %2610 = vadd.xlane.f32.xlu0 %v2609_v30  ;;  %v2612_v35 = vadd.f32 %v2534_v48, %v2533_v43 }
 0x4fc   : > { %v2460_v50 = vmax.f32 %v2350_v57, 0.0  ;;  %v2354_v29 = vadd.f32 %v2353_v8, %v5116_v28  ;;  %v2355_v38 = vpop.f32.mrb[67].mxu0 }
 0x4fd   : > { %v2461_v63 = vmax.f32 %v2352_v18, 0.0  ;;  %v2356_v10 = vadd.f32 %v2355_v38, %v5122_v14  ;;  %2613 = vadd.xlane.f32.xlu1 %v2612_v35 }
 0x4fe   : > { %v2535_v53 = vmul.f32 %v5125_v36, %v2460_v50  ;;  %v2462_v25 = vmax.f32 %v2354_v29, 0.0 }
 0x4ff   : > { %v2536_v58 = vmul.f32 %v5129_v5, %v2461_v63  ;;  %v2463_v33 = vmax.f32 %v2356_v10, 0.0 }
 0x500   : > { %v2537_v32 = vmul.f32 %v5125_v36, %v2462_v25 }
 0x501   : > { %v2538_v20 = vmul.f32 %v5129_v5, %v2463_v33  ;;  %v2359_v39 = vpop.f32.mrb[68].mxu0  ;;  %v2615_v45 = vadd.f32 %v2536_v58, %v2535_v53 }
 0x502   : > { %v2360_v3 = vadd.f32 %v2359_v39, %v5116_v28  ;;  %v2361_v46 = vpop.f32.mrb[69].mxu0 }
 0x503   : > { %v2362_v7 = vadd.f32 %v2361_v46, %v5122_v14  ;;  %v2363_v44 = vpop.f32.mrb[70].mxu0  ;;  %2616 = vadd.xlane.f32.xlu0 %v2615_v45  ;;  %v2618_v0 = vadd.f32 %v2538_v20, %v2537_v32 }
 0x504   : > { %v2464_v47 = vmax.f32 %v2360_v3, 0.0  ;;  %v2364_v4 = vadd.f32 %v2363_v44, %v5116_v28  ;;  %v2365_v17 = vpop.f32.mrb[71].mxu0 }
 0x505   : > { %v2465_v40 = vmax.f32 %v2362_v7, 0.0  ;;  %v2366_v56 = vadd.f32 %v2365_v17, %v5122_v14  ;;  %2619 = vadd.xlane.f32.xlu1 %v2618_v0 }
 0x506   : > { %v2539_v11 = vmul.f32 %v5125_v36, %v2464_v47  ;;  %v2466_v59 = vmax.f32 %v2364_v4, 0.0 }
 0x507   : > { %v2540_v31 = vmul.f32 %v5129_v5, %v2465_v40  ;;  %v2467_v21 = vmax.f32 %v2366_v56, 0.0 }
 0x508   : > { %v2541_v6 = vmul.f32 %v5125_v36, %v2466_v59 }
 0x509   : > { %v2542_v42 = vmul.f32 %v5129_v5, %v2467_v21  ;;  %v2369_v2 = vpop.f32.mrb[72].mxu0  ;;  %v2621_v61 = vadd.f32 %v2540_v31, %v2539_v11 }
 0x50a   : > { %v2370_v23 = vadd.f32 %v2369_v2, %v5116_v28  ;;  %v2371_v54 = vpop.f32.mrb[73].mxu0 }
 0x50b   : > { %v2372_v16 = vadd.f32 %v2371_v54, %v5122_v14  ;;  %v2373_v60 = vpop.f32.mrb[74].mxu0  ;;  %2622 = vadd.xlane.f32.xlu0 %v2621_v61  ;;  %v2624_v55 = vadd.f32 %v2542_v42, %v2541_v6 }
 0x50c   : > { %v2468_v41 = vmax.f32 %v2370_v23, 0.0  ;;  %v2374_v62 = vadd.f32 %v2373_v60, %v5116_v28  ;;  %v2375_v37 = vpop.f32.mrb[75].mxu0 }
 0x50d   : > { %v2469_v15 = vmax.f32 %v2372_v16, 0.0  ;;  %v2376_v51 = vadd.f32 %v2375_v37, %v5122_v14  ;;  %2625 = vadd.xlane.f32.xlu1 %v2624_v55 }
 0x50e   : > { %v2543_v19 = vmul.f32 %v5125_v36, %v2468_v41  ;;  %v2470_v22 = vmax.f32 %v2374_v62, 0.0 }
 0x50f   : > { %v2544_v26 = vmul.f32 %v5129_v5, %v2469_v15  ;;  %v2471_v1 = vmax.f32 %v2376_v51, 0.0 }
 0x510   : > { %v2545_v34 = vmul.f32 %v5125_v36, %v2470_v22 }
 0x511   : > { %v2546_v27 = vmul.f32 %v5129_v5, %v2471_v1  ;;  %v2379_v13 = vpop.f32.mrb[76].mxu0  ;;  %v2627_v24 = vadd.f32 %v2544_v26, %v2543_v19 }
 0x512   : > { %v2380_v49 = vadd.f32 %v2379_v13, %v5116_v28  ;;  %v2381_v9 = vpop.f32.mrb[77].mxu0 }
 0x513   : > { %v2382_v43 = vadd.f32 %v2381_v9, %v5122_v14  ;;  %v2383_v48 = vpop.f32.mrb[78].mxu0  ;;  %2628 = vadd.xlane.f32.xlu0 %v2627_v24  ;;  %v2630_v12 = vadd.f32 %v2546_v27, %v2545_v34 }
 0x514   : > { %v2472_v30 = vmax.f32 %v2380_v49, 0.0  ;;  %v2384_v57 = vadd.f32 %v2383_v48, %v5116_v28  ;;  %v2385_v52 = vpop.f32.mrb[79].mxu0 }
 0x515   : > { %v2473_v18 = vmax.f32 %v2382_v43, 0.0  ;;  %v2386_v8 = vadd.f32 %v2385_v52, %v5122_v14  ;;  %2631 = vadd.xlane.f32.xlu1 %v2630_v12 }
 0x516   : > { %v2547_v35 = vmul.f32 %v5125_v36, %v2472_v30  ;;  %v2474_v50 = vmax.f32 %v2384_v57, 0.0 }
 0x517   : > { %v2548_v29 = vmul.f32 %v5129_v5, %v2473_v18  ;;  %v2475_v38 = vmax.f32 %v2386_v8, 0.0 }
 0x518   : > { %v2549_v63 = vmul.f32 %v5125_v36, %v2474_v50 }
 0x519   : > { %v2550_v10 = vmul.f32 %v5129_v5, %v2475_v38  ;;  %v2389_v53 = vpop.f32.mrb[80].mxu0  ;;  %v2633_v25 = vadd.f32 %v2548_v29, %v2547_v35 }
 0x51a   : > { %v2390_v58 = vadd.f32 %v2389_v53, %v5116_v28  ;;  %v2391_v33 = vpop.f32.mrb[81].mxu0 }
 0x51b   : > { %v2392_v32 = vadd.f32 %v2391_v33, %v5122_v14  ;;  %v2393_v20 = vpop.f32.mrb[82].mxu0  ;;  %2634 = vadd.xlane.f32.xlu0 %v2633_v25  ;;  %v2636_v39 = vadd.f32 %v2550_v10, %v2549_v63 }
 0x51c   : > { %v2476_v45 = vmax.f32 %v2390_v58, 0.0  ;;  %v2394_v3 = vadd.f32 %v2393_v20, %v5116_v28  ;;  %v2395_v46 = vpop.f32.mrb[83].mxu0 }
 0x51d   : > { %v2477_v7 = vmax.f32 %v2392_v32, 0.0  ;;  %v2396_v44 = vadd.f32 %v2395_v46, %v5122_v14  ;;  %2637 = vadd.xlane.f32.xlu1 %v2636_v39 }
 0x51e   : > { %v2551_v0 = vmul.f32 %v5125_v36, %v2476_v45  ;;  %v2478_v47 = vmax.f32 %v2394_v3, 0.0 }
 0x51f   : > { %v2552_v4 = vmul.f32 %v5129_v5, %v2477_v7  ;;  %v2479_v17 = vmax.f32 %v2396_v44, 0.0 }
 0x520   : > { %v2553_v40 = vmul.f32 %v5125_v36, %v2478_v47 }
 0x521   : > { %v2554_v56 = vmul.f32 %v5129_v5, %v2479_v17  ;;  %v2399_v11 = vpop.f32.mrb[84].mxu0  ;;  %v2639_v59 = vadd.f32 %v2552_v4, %v2551_v0 }
 0x522   : > { %v2400_v31 = vadd.f32 %v2399_v11, %v5116_v28  ;;  %v2401_v21 = vpop.f32.mrb[85].mxu0 }
 0x523   : > { %v2402_v6 = vadd.f32 %v2401_v21, %v5122_v14  ;;  %v2403_v42 = vpop.f32.mrb[86].mxu0  ;;  %2640 = vadd.xlane.f32.xlu0 %v2639_v59  ;;  %v2642_v2 = vadd.f32 %v2554_v56, %v2553_v40 }
 0x524   : > { %v2480_v61 = vmax.f32 %v2400_v31, 0.0  ;;  %v2404_v23 = vadd.f32 %v2403_v42, %v5116_v28  ;;  %v2405_v54 = vpop.f32.mrb[87].mxu0 }
 0x525   : > { %v2481_v16 = vmax.f32 %v2402_v6, 0.0  ;;  %v2406_v60 = vadd.f32 %v2405_v54, %v5122_v14  ;;  %2643 = vadd.xlane.f32.xlu1 %v2642_v2 }
 0x526   : > { %v2555_v55 = vmul.f32 %v5125_v36, %v2480_v61  ;;  %v2482_v41 = vmax.f32 %v2404_v23, 0.0 }
 0x527   : > { %v2556_v62 = vmul.f32 %v5129_v5, %v2481_v16  ;;  %v2483_v37 = vmax.f32 %v2406_v60, 0.0 }
 0x528   : > { %v2557_v15 = vmul.f32 %v5125_v36, %v2482_v41 }
 0x529   : > { %v2558_v51 = vmul.f32 %v5129_v5, %v2483_v37  ;;  %v2409_v19 = vpop.f32.mrb[88].mxu0  ;;  %v2645_v22 = vadd.f32 %v2556_v62, %v2555_v55 }
 0x52a   : > { %v2410_v26 = vadd.f32 %v2409_v19, %v5116_v28  ;;  %v2411_v1 = vpop.f32.mrb[89].mxu0 }
 0x52b   : > { %v2412_v34 = vadd.f32 %v2411_v1, %v5122_v14  ;;  %v2413_v27 = vpop.f32.mrb[90].mxu0  ;;  %2646 = vadd.xlane.f32.xlu0 %v2645_v22  ;;  %v2648_v13 = vadd.f32 %v2558_v51, %v2557_v15 }
 0x52c   : > { %v2484_v24 = vmax.f32 %v2410_v26, 0.0  ;;  %v2414_v49 = vadd.f32 %v2413_v27, %v5116_v28  ;;  %v2415_v9 = vpop.f32.mrb[91].mxu0 }
 0x52d   : > { %v2485_v43 = vmax.f32 %v2412_v34, 0.0  ;;  %v2416_v48 = vadd.f32 %v2415_v9, %v5122_v14  ;;  %2649 = vadd.xlane.f32.xlu1 %v2648_v13 }
 0x52e   : > { %v2559_v12 = vmul.f32 %v5125_v36, %v2484_v24  ;;  %v2486_v30 = vmax.f32 %v2414_v49, 0.0 }
 0x52f   : > { %v2560_v57 = vmul.f32 %v5129_v5, %v2485_v43  ;;  %v2487_v52 = vmax.f32 %v2416_v48, 0.0 }
 0x530   : > { %v2561_v18 = vmul.f32 %v5125_v36, %v2486_v30 }
 0x531   : > { %v2562_v8 = vmul.f32 %v5129_v5, %v2487_v52  ;;  %v2419_v35 = vpop.f32.mrb[92].mxu0  ;;  %v2651_v50 = vadd.f32 %v2560_v57, %v2559_v12 }
 0x532   : > { %v2420_v29 = vadd.f32 %v2419_v35, %v5116_v28  ;;  %v2421_v38 = vpop.f32.mrb[93].mxu0 }
 0x533   : > { %v2422_v63 = vadd.f32 %v2421_v38, %v5122_v14  ;;  %v2423_v10 = vpop.f32.mrb[94].mxu0  ;;  %2652 = vadd.xlane.f32.xlu0 %v2651_v50  ;;  %v2654_v53 = vadd.f32 %v2562_v8, %v2561_v18 }
 0x534   : > { %v2488_v25 = vmax.f32 %v2420_v29, 0.0  ;;  %v2424_v58 = vadd.f32 %v2423_v10, %v5116_v28  ;;  %v2425_v33 = vpop.f32.mrb[95].mxu0  ;;  %v5261_v28 = vld [vmem:[%s5373_s4 + $0x6] ss:$0 sm:$0xff] }
 0x535   : > { %v2489_v32 = vmax.f32 %v2422_v63, 0.0  ;;  %v2426_v20 = vadd.f32 %v2425_v33, %v5122_v14  ;;  %2655 = vadd.xlane.f32.xlu1 %v2654_v53 }
 0x536   : > { %v2563_v39 = vmul.f32 %v5125_v36, %v2488_v25  ;;  %v2490_v45 = vmax.f32 %v2424_v58, 0.0 }
 0x537   : > { %v2564_v3 = vmul.f32 %v5129_v5, %v2489_v32  ;;  %v2491_v46 = vmax.f32 %v2426_v20, 0.0 }
 0x538   : > { %v2565_v7 = vmul.f32 %v5125_v36, %v2490_v45 }
 0x539   : > { %v2566_v44 = vmul.f32 %v5129_v5, %v2491_v46  ;;  %v2657_v0 = vadd.f32 %v2564_v3, %v2563_v39 }
 0x53b   : > { %2658 = vadd.xlane.f32.xlu0 %v2657_v0  ;;  %v2660_v47 = vadd.f32 %v2566_v44, %v2565_v7 }
 0x53d   : > { %2661 = vadd.xlane.f32.xlu1 %v2660_v47 }
 0x550   : > { %v2569_v14 = vpop.xlane.xlu0 %2568 }
 0x551   : > { %v2663_v36 = vadd.f32 %v2569_v14, %v5261_v28 }
 0x553   : > { %2696 = vst.msk [vmem:[%s5268_s16] sm:$0xff] %vm2695_vm2, %v2663_v36 }
 0x554   : > { %v2572_v5 = vpop.xlane.xlu0 %2571 }
 0x555   : > { %v2664_v4 = vadd.f32 %v2572_v5, %v5261_v28 }
 0x557   : > { %2697 = vst.msk [vmem:[%s5268_s16 + $0x8] sm:$0xff] %vm2695_vm2, %v2664_v4 }
 0x558   : > { %v2575_v17 = vpop.xlane.xlu1 %2574 }
 0x559   : > { %v2665_v40 = vadd.f32 %v2575_v17, %v5261_v28 }
 0x55b   : > { %2698 = vst.msk [vmem:[%s5268_s16 + $0x10] sm:$0xff] %vm2695_vm2, %v2665_v40 }
 0x55c   : > { %v2578_v56 = vpop.xlane.xlu1 %2577 }
 0x55d   : > { %v2666_v11 = vadd.f32 %v2578_v56, %v5261_v28 }
 0x55f   : > { %2699 = vst.msk [vmem:[%s5268_s16 + $0x18] sm:$0xff] %vm2695_vm2, %v2666_v11 }
 0x560   : > { %v2581_v59 = vpop.xlane.xlu0 %2580 }
 0x561   : > { %v2667_v31 = vadd.f32 %v2581_v59, %v5261_v28 }
 0x562   : > { %v2584_v21 = vpop.xlane.xlu1 %2583 }
 0x563   : > { %2700 = vst.msk [vmem:[%s5268_s16 + $0x20] sm:$0xff] %vm2695_vm2, %v2667_v31  ;;  %v2668_v6 = vadd.f32 %v2584_v21, %v5261_v28 }
 0x565   : > { %2701 = vst.msk [vmem:[%s5268_s16 + $0x28] sm:$0xff] %vm2695_vm2, %v2668_v6 }
 0x568   : > { %v2587_v42 = vpop.xlane.xlu0 %2586 }
 0x569   : > { %v2669_v2 = vadd.f32 %v2587_v42, %v5261_v28 }
 0x56a   : > { %v2590_v61 = vpop.xlane.xlu1 %2589 }
 0x56b   : > { %2702 = vst.msk [vmem:[%s5268_s16 + $0x30] sm:$0xff] %vm2695_vm2, %v2669_v2  ;;  %v2670_v23 = vadd.f32 %v2590_v61, %v5261_v28 }
 0x56d   : > { %2703 = vst.msk [vmem:[%s5268_s16 + $0x38] sm:$0xff] %vm2695_vm2, %v2670_v23 }
 0x570   : > { %v2593_v54 = vpop.xlane.xlu0 %2592 }
 0x571   : > { %v2671_v16 = vadd.f32 %v2593_v54, %v5261_v28 }
 0x572   : > { %v2596_v60 = vpop.xlane.xlu1 %2595 }
 0x573   : > { %2704 = vst.msk [vmem:[%s5268_s16 + $0x40] sm:$0xff] %vm2695_vm2, %v2671_v16  ;;  %v2672_v55 = vadd.f32 %v2596_v60, %v5261_v28 }
 0x575   : > { %2705 = vst.msk [vmem:[%s5268_s16 + $0x48] sm:$0xff] %vm2695_vm2, %v2672_v55 }
 0x578   : > { %v2599_v41 = vpop.xlane.xlu0 %2598 }
 0x579   : > { %v2673_v62 = vadd.f32 %v2599_v41, %v5261_v28 }
 0x57a   : > { %v2602_v37 = vpop.xlane.xlu1 %2601 }
 0x57b   : > { %2706 = vst.msk [vmem:[%s5268_s16 + $0x50] sm:$0xff] %vm2695_vm2, %v2673_v62  ;;  %v2674_v15 = vadd.f32 %v2602_v37, %v5261_v28 }
 0x57d   : > { %2707 = vst.msk [vmem:[%s5268_s16 + $0x58] sm:$0xff] %vm2695_vm2, %v2674_v15 }
 0x580   : > { %v2605_v51 = vpop.xlane.xlu0 %2604 }
 0x581   : > { %v2675_v19 = vadd.f32 %v2605_v51, %v5261_v28 }
 0x582   : > { %v2608_v22 = vpop.xlane.xlu1 %2607 }
 0x583   : > { %2708 = vst.msk [vmem:[%s5268_s16 + $0x60] sm:$0xff] %vm2695_vm2, %v2675_v19  ;;  %v2676_v26 = vadd.f32 %v2608_v22, %v5261_v28 }
 0x585   : > { %2709 = vst.msk [vmem:[%s5268_s16 + $0x68] sm:$0xff] %vm2695_vm2, %v2676_v26 }
 0x588   : > { %v2611_v1 = vpop.xlane.xlu0 %2610 }
 0x589   : > { %v2677_v34 = vadd.f32 %v2611_v1, %v5261_v28 }
 0x58a   : > { %v2614_v27 = vpop.xlane.xlu1 %2613 }
 0x58b   : > { %2710 = vst.msk [vmem:[%s5268_s16 + $0x70] sm:$0xff] %vm2695_vm2, %v2677_v34  ;;  %v2678_v13 = vadd.f32 %v2614_v27, %v5261_v28 }
 0x58d   : > { %2711 = vst.msk [vmem:[%s5268_s16 + $0x78] sm:$0xff] %vm2695_vm2, %v2678_v13 }
 0x590   : > { %v2617_v24 = vpop.xlane.xlu0 %2616 }
 0x591   : > { %v2679_v49 = vadd.f32 %v2617_v24, %v5261_v28 }
 0x592   : > { %v2620_v9 = vpop.xlane.xlu1 %2619 }
 0x593   : > { %2712 = vst.msk [vmem:[%s5268_s16 + $0x80] sm:$0xff] %vm2695_vm2, %v2679_v49  ;;  %v2680_v43 = vadd.f32 %v2620_v9, %v5261_v28 }
 0x595   : > { %2713 = vst.msk [vmem:[%s5268_s16 + $0x88] sm:$0xff] %vm2695_vm2, %v2680_v43 }
 0x598   : > { %v2623_v48 = vpop.xlane.xlu0 %2622 }
 0x599   : > { %v2681_v12 = vadd.f32 %v2623_v48, %v5261_v28 }
 0x59a   : > { %v2626_v30 = vpop.xlane.xlu1 %2625 }
 0x59b   : > { %2714 = vst.msk [vmem:[%s5268_s16 + $0x90] sm:$0xff] %vm2695_vm2, %v2681_v12  ;;  %v2682_v57 = vadd.f32 %v2626_v30, %v5261_v28 }
 0x59d   : > { %2715 = vst.msk [vmem:[%s5268_s16 + $0x98] sm:$0xff] %vm2695_vm2, %v2682_v57 }
 0x5a0   : > { %v2629_v52 = vpop.xlane.xlu0 %2628 }
 0x5a1   : > { %v2683_v18 = vadd.f32 %v2629_v52, %v5261_v28 }
 0x5a2   : > { %v2632_v8 = vpop.xlane.xlu1 %2631 }
 0x5a3   : > { %2716 = vst.msk [vmem:[%s5268_s16 + $0xa0] sm:$0xff] %vm2695_vm2, %v2683_v18  ;;  %v2684_v35 = vadd.f32 %v2632_v8, %v5261_v28 }
 0x5a5   : > { %2717 = vst.msk [vmem:[%s5268_s16 + $0xa8] sm:$0xff] %vm2695_vm2, %v2684_v35 }
 0x5a8   : > { %v2635_v50 = vpop.xlane.xlu0 %2634 }
 0x5a9   : > { %v2685_v29 = vadd.f32 %v2635_v50, %v5261_v28 }
 0x5aa   : > { %v2638_v38 = vpop.xlane.xlu1 %2637 }
 0x5ab   : > { %2718 = vst.msk [vmem:[%s5268_s16 + $0xb0] sm:$0xff] %vm2695_vm2, %v2685_v29  ;;  %v2686_v63 = vadd.f32 %v2638_v38, %v5261_v28 }
 0x5ad   : > { %2719 = vst.msk [vmem:[%s5268_s16 + $0xb8] sm:$0xff] %vm2695_vm2, %v2686_v63 }
 0x5b0   : > { %v2641_v10 = vpop.xlane.xlu0 %2640 }
 0x5b1   : > { %v2687_v53 = vadd.f32 %v2641_v10, %v5261_v28 }
 0x5b2   : > { %v2644_v25 = vpop.xlane.xlu1 %2643 }
 0x5b3   : > { %2720 = vst.msk [vmem:[%s5268_s16 + $0xc0] sm:$0xff] %vm2695_vm2, %v2687_v53  ;;  %v2688_v58 = vadd.f32 %v2644_v25, %v5261_v28 }
 0x5b5   : > { %2721 = vst.msk [vmem:[%s5268_s16 + $0xc8] sm:$0xff] %vm2695_vm2, %v2688_v58 }
 0x5b8   : > { %v2647_v33 = vpop.xlane.xlu0 %2646 }
 0x5b9   : > { %v2689_v32 = vadd.f32 %v2647_v33, %v5261_v28 }
 0x5ba   : > { %v2650_v20 = vpop.xlane.xlu1 %2649 }
 0x5bb   : > { %2722 = vst.msk [vmem:[%s5268_s16 + $0xd0] sm:$0xff] %vm2695_vm2, %v2689_v32  ;;  %v2690_v39 = vadd.f32 %v2650_v20, %v5261_v28 }
 0x5bd   : > { %2723 = vst.msk [vmem:[%s5268_s16 + $0xd8] sm:$0xff] %vm2695_vm2, %v2690_v39 }
 0x5c0   : > { %v2653_v45 = vpop.xlane.xlu0 %2652 }
 0x5c1   : > { %v2691_v3 = vadd.f32 %v2653_v45, %v5261_v28 }
 0x5c2   : > { %v2656_v46 = vpop.xlane.xlu1 %2655 }
 0x5c3   : > { %2724 = vst.msk [vmem:[%s5268_s16 + $0xe0] sm:$0xff] %vm2695_vm2, %v2691_v3  ;;  %v2692_v7 = vadd.f32 %v2656_v46, %v5261_v28 }
 0x5c5   : > { %2725 = vst.msk [vmem:[%s5268_s16 + $0xe8] sm:$0xff] %vm2695_vm2, %v2692_v7 }
 0x5c8   : > { %v2659_v44 = vpop.xlane.xlu0 %2658 }
 0x5c9   : > { %v2693_v0 = vadd.f32 %v2659_v44, %v5261_v28 }
 0x5ca   : > { %v2662_v47 = vpop.xlane.xlu1 %2661 }
 0x5cb   : > { %2726 = vst.msk [vmem:[%s5268_s16 + $0xf0] sm:$0xff] %vm2695_vm2, %v2693_v0  ;;  %v2694_v14 = vadd.f32 %v2662_v47, %v5261_v28 }
 0x5cd   : > { %2727 = vst.msk [vmem:[%s5268_s16 + $0xf8] sm:$0xff] %vm2695_vm2, %v2694_v14 }
 0x5ce PF: > { %s15_s18 = sadd.s32 1, %s3008_s18  }
 0x5cf   : > { %p12_p4 = scmp.ge.s32.totalorder %s15_s18, 4  }
 0x5d1   :  { %14 = sbr.rel (!%p12_p4) target bundleno = 1 (0x1), region = 75 }

</bundles_post_ra>
